<compile_context>
chip_gen: v5e
topology: v5e:2x2
jax: 0.10.0
libtpu: 0.0.40
codegen_flags: <defaults>
</compile_context>

<pallas_src>
import jax
import jax.numpy as jnp
from jax.experimental import pallas as pl
from jax.experimental.pallas import tpu as pltpu

K_SIZE = 4
STRIDE = 2
PAD = 1
BN_EPS = 1e-5


# --------------------- XLA glue: strided-slice im2col ----------------------
def _im2col(x_nchw, dtype=jnp.bfloat16):
    """(B, C, H, W) -> cols (B, C*16, Ho*Wo).

    Row order is (c, kh, kw), matching torch Conv2d weight.reshape(Cout, -1).
    Column order is (oh, ow), i.e. channel-major NCHW flatten of the output.
    """
    B, C, H, W = x_nchw.shape
    xp = jnp.pad(x_nchw.astype(dtype), ((0, 0), (0, 0), (PAD, PAD), (PAD, PAD)))
    Ho = (H + 2 * PAD - K_SIZE) // STRIDE + 1
    Wo = (W + 2 * PAD - K_SIZE) // STRIDE + 1
    slices = []
    for kh in range(K_SIZE):
        for kw in range(K_SIZE):
            slices.append(
                xp[:, :, kh:kh + STRIDE * Ho:STRIDE, kw:kw + STRIDE * Wo:STRIDE])
    cols = jnp.stack(slices, axis=2)                    # (B, C, 16, Ho, Wo)
    return cols.reshape(B, C * K_SIZE * K_SIZE, Ho * Wo), Ho, Wo


def _fold_bn(weight, gamma, beta):
    """Fold eval-mode BN (mean=0, var=1) scale into the conv weight."""
    cout = weight.shape[0]
    w2d = weight.reshape(cout, -1).astype(jnp.float32)      # (Cout, Cin*16)
    if gamma is None:
        shift = jnp.zeros((cout, 1), jnp.float32)
    else:
        scale = (gamma / jnp.sqrt(1.0 + BN_EPS)).astype(jnp.float32)
        w2d = w2d * scale[:, None]
        shift = beta.reshape(cout, 1).astype(jnp.float32)
    return w2d.astype(jnp.bfloat16), shift


# ----------------------------- Pallas kernels ------------------------------
def _cbr_kernel(cols_ref, w_ref, shift_ref, o_ref):
    # One batch element: conv (lane-dense matmul) + BN shift + ReLU.
    y = jnp.dot(w_ref[...], cols_ref[0],
                preferred_element_type=jnp.float32)          # (Cout, Ho*Wo)
    y = jnp.maximum(y + shift_ref[...], 0.0)
    o_ref[0] = y.astype(o_ref.dtype)


def _cbr_linear_kernel(cols_ref, w_ref, shift_ref, lw_ref, o_ref):
    # enc4 conv + BN shift + ReLU fused with Linear(out_features=1).
    y = jnp.dot(w_ref[...], cols_ref[0],
                preferred_element_type=jnp.float32)          # (Cout, Ho*Wo)
    y = jnp.maximum(y + shift_ref[...], 0.0)
    # (Cout, Ho*Wo) is exactly torch's x.view(B, -1) order for this element.
    val = jnp.sum(y * lw_ref[...])
    o_ref[...] = jnp.full(o_ref.shape, val, dtype=o_ref.dtype)


# -------------------------------- wrappers ---------------------------------
def cbr2d(x_nchw, weight, gamma=None, beta=None):
    """Conv2d(4, s=2, p=1, bias=False) [+ BN(eval)] + ReLU. NCHW in/out."""
    B = x_nchw.shape[0]
    cout = weight.shape[0]
    cols, Ho, Wo = _im2col(x_nchw)
    _, K, N = cols.shape
    w2d, shift = _fold_bn(weight, gamma, beta)

    out = pl.pallas_call(
        _cbr_kernel,
        out_shape=jax.ShapeDtypeStruct((B, cout, N), jnp.bfloat16),
        grid_spec=pltpu.PrefetchScalarGridSpec(
            num_scalar_prefetch=0,
            grid=(B,),
            in_specs=[
                pl.BlockSpec((1, K, N), lambda b: (b, 0, 0)),
                pl.BlockSpec((cout, K), lambda b: (0, 0)),
                pl.BlockSpec((cout, 1), lambda b: (0, 0)),
            ],
            out_specs=pl.BlockSpec((1, cout, N), lambda b: (b, 0, 0)),
        ),
        compiler_params=pltpu.CompilerParams(
            dimension_semantics=("parallel",)),
    )(cols, w2d, shift)
    # Metadata-only reshape: output is already channel-major (NCHW).
    return out.reshape(B, cout, Ho, Wo)


def cbr2d_linear(x_nchw, weight, gamma, beta, lin_w, lin_b):
    """enc4 (conv + BN + ReLU) fused with Linear(D, 1). Returns (B, 1) f32."""
    B = x_nchw.shape[0]
    cout = weight.shape[0]
    cols, Ho, Wo = _im2col(x_nchw)
    _, K, N = cols.shape
    w2d, shift = _fold_bn(weight, gamma, beta)
    # torch Linear weight (1, Cout*Ho*Wo) -> (Cout, Ho*Wo): NCHW flatten order.
    lw2d = lin_w.reshape(cout, N).astype(jnp.float32)

    out = pl.pallas_call(
        _cbr_linear_kernel,
        out_shape=jax.ShapeDtypeStruct((B, 1, 128), jnp.float32),
        grid_spec=pltpu.PrefetchScalarGridSpec(
            num_scalar_prefetch=0,
            grid=(B,),
            in_specs=[
                pl.BlockSpec((1, K, N), lambda b: (b, 0, 0)),
                pl.BlockSpec((cout, K), lambda b: (0, 0)),
                pl.BlockSpec((cout, 1), lambda b: (0, 0)),
                pl.BlockSpec((cout, N), lambda b: (0, 0)),
            ],
            out_specs=pl.BlockSpec((1, 1, 128), lambda b: (b, 0, 0)),
        ),
        compiler_params=pltpu.CompilerParams(
            dimension_semantics=("parallel",)),
    )(cols, w2d, shift, lw2d)
    return out[:, 0, :1] + lin_b.reshape(1, 1).astype(jnp.float32)   # (B, 1)


# ----------------------------- parameter init ------------------------------
def init_params(key, in_channels, nker, gain=0.02):
    ks = jax.random.split(key, 8)
    chans = [in_channels, nker, 2 * nker, 4 * nker, 8 * nker]
    params = {}
    for li in range(1, 5):
        cout, cin = chans[li], chans[li - 1]
        params[f"enc{li}_w"] = gain * jax.random.normal(
            ks[li - 1], (cout, cin, K_SIZE, K_SIZE), jnp.float32)
        if li >= 2:  # enc1 has norm=None
            params[f"enc{li}_gamma"] = 1.0 + gain * jax.random.normal(
                ks[li + 3], (cout,), jnp.float32)
            params[f"enc{li}_beta"] = jnp.zeros((cout,), jnp.float32)
    lin_in = 8 * nker * 16 * 16
    params["lin_w"] = gain * jax.random.normal(ks[7], (1, lin_in), jnp.float32)
    params["lin_b"] = jnp.zeros((1,), jnp.float32)   # init_weights -> constant 0
    return params


def whole_dis_forward(params, x):
    x = cbr2d(x, params["enc1_w"])                                            # norm=None
    x = cbr2d(x, params["enc2_w"], params["enc2_gamma"], params["enc2_beta"])
    x = cbr2d(x, params["enc3_w"], params["enc3_gamma"], params["enc3_beta"])
    return cbr2d_linear(x, params["enc4_w"], params["enc4_gamma"],
                        params["enc4_beta"], params["lin_w"], params["lin_b"])


# ---------------------------------- main ------------------------------------
if __name__ == "__main__":
    # Spatial must be 256 so enc4's output is 16x16 (the Linear layer expects
    # 8*nker*16*16 input features). Keep channels small: in_channels=1, nker=4.
    key = jax.random.PRNGKey(0)
    k_x, k_p = jax.random.split(key)
    B, in_channels, nker = 2, 1, 4
    x = jax.random.normal(k_x, (B, in_channels, 256, 256), jnp.float32)

    params = init_params(k_p, in_channels, nker)
    fwd = jax.jit(whole_dis_forward)
    out = jax.block_until_ready(fwd(params, x))
    assert out.shape == (B, 1), out.shape
    assert out.dtype == jnp.float32, out.dtype
    print("KERNEL_OK")
</pallas_src>

<mosaic_0001>
module attributes {stable_mosaic.version = 11 : i64} {
  func.func @_cbr_kernel(%arg0: i32, %arg1: memref<1x16x16384xbf16, #tpu.memory_space<vmem>>, %arg2: memref<4x16xbf16, #tpu.memory_space<vmem>>, %arg3: memref<4x1xf32, #tpu.memory_space<vmem>>, %arg4: memref<1x4x16384xbf16, #tpu.memory_space<vmem>>) attributes {dimension_semantics = [#tpu.dimension_semantics<parallel>], iteration_bounds = array<i64: 2>, scalar_prefetch = 0 : i64, scratch_operands = 0 : i64, tpu.core_type = #tpu.core_type<tc>, window_params = [{transform_indices = @transform_0, window_bounds = array<i64: 1, 16, 16384>}, {pipeline_mode = #tpu.pipeline_mode<synchronous>, transform_indices = @transform_1, window_bounds = array<i64: 4, 16>}, {pipeline_mode = #tpu.pipeline_mode<synchronous>, transform_indices = @transform_2, window_bounds = array<i64: 4, 1>}, {transform_indices = @transform_3, window_bounds = array<i64: 1, 4, 16384>}]} {
    %c0 = arith.constant 0 : index
    %c0_0 = arith.constant 0 : index
    %0 = vector.load %arg2[%c0, %c0_0] : memref<4x16xbf16, #tpu.memory_space<vmem>>, vector<4x16xbf16>
    %c0_1 = arith.constant 0 : index
    %c0_2 = arith.constant 0 : index
    %c0_3 = arith.constant 0 : index
    %1 = vector.load %arg1[%c0_1, %c0_2, %c0_3] : memref<1x16x16384xbf16, #tpu.memory_space<vmem>>, vector<1x16x16384xbf16>
    %2 = vector.shape_cast %1 : vector<1x16x16384xbf16> to vector<16x16384xbf16>
    %cst = arith.constant dense<0.000000e+00> : vector<4x16384xf32>
    %3 = tpu.matmul %0, %2, %cst {dimension_numbers = #tpu.dot_dimension_numbers<[1], [0], [0], [1], [0, 0, 1, 1], [], []>} : vector<4x16xbf16>, vector<16x16384xbf16>, vector<4x16384xf32> -> vector<4x16384xf32>
    %c0_4 = arith.constant 0 : index
    %c0_5 = arith.constant 0 : index
    %4 = vector.load %arg3[%c0_4, %c0_5] : memref<4x1xf32, #tpu.memory_space<vmem>>, vector<4x1xf32>
    %5 = vector.broadcast %4 : vector<4x1xf32> to vector<4x16384xf32>
    %6 = arith.addf %3, %5 : vector<4x16384xf32>
    %cst_6 = arith.constant 0.000000e+00 : f32
    %7 = vector.broadcast %cst_6 : f32 to vector<4x16384xf32>
    %8 = arith.maximumf %6, %7 : vector<4x16384xf32>
    %9 = arith.truncf %8 : vector<4x16384xf32> to vector<4x16384xbf16>
    %c0_7 = arith.constant 0 : index
    %c0_8 = arith.constant 0 : index
    %c0_9 = arith.constant 0 : index
    %10 = vector.load %arg4[%c0_7, %c0_8, %c0_9] : memref<1x4x16384xbf16, #tpu.memory_space<vmem>>, vector<1x4x16384xbf16>
    %11 = vector.shape_cast %10 : vector<1x4x16384xbf16> to vector<4x16384xbf16>
    %12 = vector.shape_cast %9 : vector<4x16384xbf16> to vector<1x4x16384xbf16>
    tpu.vector_store %arg4[%c0_7, %c0_8, %c0_9], %12 {strides = array<i32>} : memref<1x4x16384xbf16, #tpu.memory_space<vmem>>, vector<1x4x16384xbf16>,
    return
  }
  func.func @transform_0(%arg0: i32) -> (i32, i32, i32) {
    %c0_i32 = arith.constant 0 : i32
    %c0_i32_0 = arith.constant 0 : i32
    %c0_i32_1 = arith.constant 0 : i32
    return %arg0, %c0_i32, %c0_i32_0 : i32, i32, i32
  }
  func.func @transform_1(%arg0: i32) -> (i32, i32) {
    %c0_i32 = arith.constant 0 : i32
    %c0_i32_0 = arith.constant 0 : i32
    %c0_i32_1 = arith.constant 0 : i32
    return %c0_i32, %c0_i32_0 : i32, i32
  }
  func.func @transform_2(%arg0: i32) -> (i32, i32) {
    %c0_i32 = arith.constant 0 : i32
    %c0_i32_0 = arith.constant 0 : i32
    %c0_i32_1 = arith.constant 0 : i32
    return %c0_i32, %c0_i32_0 : i32, i32
  }
  func.func @transform_3(%arg0: i32) -> (i32, i32, i32) {
    %c0_i32 = arith.constant 0 : i32
    %c0_i32_0 = arith.constant 0 : i32
    %c0_i32_1 = arith.constant 0 : i32
    return %arg0, %c0_i32, %c0_i32_0 : i32, i32, i32
  }
}

module attributes {stable_mosaic.version = 11 : i64} {
  func.func @_cbr_kernel(%arg0: i32, %arg1: memref<1x64x4096xbf16, #tpu.memory_space<vmem>>, %arg2: memref<8x64xbf16, #tpu.memory_space<vmem>>, %arg3: memref<8x1xf32, #tpu.memory_space<vmem>>, %arg4: memref<1x8x4096xbf16, #tpu.memory_space<vmem>>) attributes {dimension_semantics = [#tpu.dimension_semantics<parallel>], iteration_bounds = array<i64: 2>, scalar_prefetch = 0 : i64, scratch_operands = 0 : i64, tpu.core_type = #tpu.core_type<tc>, window_params = [{transform_indices = @transform_0, window_bounds = array<i64: 1, 64, 4096>}, {pipeline_mode = #tpu.pipeline_mode<synchronous>, transform_indices = @transform_1, window_bounds = array<i64: 8, 64>}, {pipeline_mode = #tpu.pipeline_mode<synchronous>, transform_indices = @transform_2, window_bounds = array<i64: 8, 1>}, {transform_indices = @transform_3, window_bounds = array<i64: 1, 8, 4096>}]} {
    %c0 = arith.constant 0 : index
    %c0_0 = arith.constant 0 : index
    %0 = vector.load %arg2[%c0, %c0_0] : memref<8x64xbf16, #tpu.memory_space<vmem>>, vector<8x64xbf16>
    %c0_1 = arith.constant 0 : index
    %c0_2 = arith.constant 0 : index
    %c0_3 = arith.constant 0 : index
    %1 = vector.load %arg1[%c0_1, %c0_2, %c0_3] : memref<1x64x4096xbf16, #tpu.memory_space<vmem>>, vector<1x64x4096xbf16>
    %2 = vector.shape_cast %1 : vector<1x64x4096xbf16> to vector<64x4096xbf16>
    %cst = arith.constant dense<0.000000e+00> : vector<8x4096xf32>
    %3 = tpu.matmul %0, %2, %cst {dimension_numbers = #tpu.dot_dimension_numbers<[1], [0], [0], [1], [0, 0, 1, 1], [], []>} : vector<8x64xbf16>, vector<64x4096xbf16>, vector<8x4096xf32> -> vector<8x4096xf32>
    %c0_4 = arith.constant 0 : index
    %c0_5 = arith.constant 0 : index
    %4 = vector.load %arg3[%c0_4, %c0_5] : memref<8x1xf32, #tpu.memory_space<vmem>>, vector<8x1xf32>
    %5 = vector.broadcast %4 : vector<8x1xf32> to vector<8x4096xf32>
    %6 = arith.addf %3, %5 : vector<8x4096xf32>
    %cst_6 = arith.constant 0.000000e+00 : f32
    %7 = vector.broadcast %cst_6 : f32 to vector<8x4096xf32>
    %8 = arith.maximumf %6, %7 : vector<8x4096xf32>
    %9 = arith.truncf %8 : vector<8x4096xf32> to vector<8x4096xbf16>
    %c0_7 = arith.constant 0 : index
    %c0_8 = arith.constant 0 : index
    %c0_9 = arith.constant 0 : index
    %10 = vector.load %arg4[%c0_7, %c0_8, %c0_9] : memref<1x8x4096xbf16, #tpu.memory_space<vmem>>, vector<1x8x4096xbf16>
    %11 = vector.shape_cast %10 : vector<1x8x4096xbf16> to vector<8x4096xbf16>
    %12 = vector.shape_cast %9 : vector<8x4096xbf16> to vector<1x8x4096xbf16>
    tpu.vector_store %arg4[%c0_7, %c0_8, %c0_9], %12 {strides = array<i32>} : memref<1x8x4096xbf16, #tpu.memory_space<vmem>>, vector<1x8x4096xbf16>,
    return
  }
  func.func @transform_0(%arg0: i32) -> (i32, i32, i32) {
    %c0_i32 = arith.constant 0 : i32
    %c0_i32_0 = arith.constant 0 : i32
    %c0_i32_1 = arith.constant 0 : i32
    return %arg0, %c0_i32, %c0_i32_0 : i32, i32, i32
  }
  func.func @transform_1(%arg0: i32) -> (i32, i32) {
    %c0_i32 = arith.constant 0 : i32
    %c0_i32_0 = arith.constant 0 : i32
    %c0_i32_1 = arith.constant 0 : i32
    return %c0_i32, %c0_i32_0 : i32, i32
  }
  func.func @transform_2(%arg0: i32) -> (i32, i32) {
    %c0_i32 = arith.constant 0 : i32
    %c0_i32_0 = arith.constant 0 : i32
    %c0_i32_1 = arith.constant 0 : i32
    return %c0_i32, %c0_i32_0 : i32, i32
  }
  func.func @transform_3(%arg0: i32) -> (i32, i32, i32) {
    %c0_i32 = arith.constant 0 : i32
    %c0_i32_0 = arith.constant 0 : i32
    %c0_i32_1 = arith.constant 0 : i32
    return %arg0, %c0_i32, %c0_i32_0 : i32, i32, i32
  }
}

module attributes {stable_mosaic.version = 11 : i64} {
  func.func @_cbr_kernel(%arg0: i32, %arg1: memref<1x128x1024xbf16, #tpu.memory_space<vmem>>, %arg2: memref<16x128xbf16, #tpu.memory_space<vmem>>, %arg3: memref<16x1xf32, #tpu.memory_space<vmem>>, %arg4: memref<1x16x1024xbf16, #tpu.memory_space<vmem>>) attributes {dimension_semantics = [#tpu.dimension_semantics<parallel>], iteration_bounds = array<i64: 2>, scalar_prefetch = 0 : i64, scratch_operands = 0 : i64, tpu.core_type = #tpu.core_type<tc>, window_params = [{transform_indices = @transform_0, window_bounds = array<i64: 1, 128, 1024>}, {pipeline_mode = #tpu.pipeline_mode<synchronous>, transform_indices = @transform_1, window_bounds = array<i64: 16, 128>}, {pipeline_mode = #tpu.pipeline_mode<synchronous>, transform_indices = @transform_2, window_bounds = array<i64: 16, 1>}, {transform_indices = @transform_3, window_bounds = array<i64: 1, 16, 1024>}]} {
    %c0 = arith.constant 0 : index
    %c0_0 = arith.constant 0 : index
    %0 = vector.load %arg2[%c0, %c0_0] : memref<16x128xbf16, #tpu.memory_space<vmem>>, vector<16x128xbf16>
    %c0_1 = arith.constant 0 : index
    %c0_2 = arith.constant 0 : index
    %c0_3 = arith.constant 0 : index
    %1 = vector.load %arg1[%c0_1, %c0_2, %c0_3] : memref<1x128x1024xbf16, #tpu.memory_space<vmem>>, vector<1x128x1024xbf16>
    %2 = vector.shape_cast %1 : vector<1x128x1024xbf16> to vector<128x1024xbf16>
    %cst = arith.constant dense<0.000000e+00> : vector<16x1024xf32>
    %3 = tpu.matmul %0, %2, %cst {dimension_numbers = #tpu.dot_dimension_numbers<[1], [0], [0], [1], [0, 0, 1, 1], [], []>} : vector<16x128xbf16>, vector<128x1024xbf16>, vector<16x1024xf32> -> vector<16x1024xf32>
    %c0_4 = arith.constant 0 : index
    %c0_5 = arith.constant 0 : index
    %4 = vector.load %arg3[%c0_4, %c0_5] : memref<16x1xf32, #tpu.memory_space<vmem>>, vector<16x1xf32>
    %5 = vector.broadcast %4 : vector<16x1xf32> to vector<16x1024xf32>
    %6 = arith.addf %3, %5 : vector<16x1024xf32>
    %cst_6 = arith.constant 0.000000e+00 : f32
    %7 = vector.broadcast %cst_6 : f32 to vector<16x1024xf32>
    %8 = arith.maximumf %6, %7 : vector<16x1024xf32>
    %9 = arith.truncf %8 : vector<16x1024xf32> to vector<16x1024xbf16>
    %c0_7 = arith.constant 0 : index
    %c0_8 = arith.constant 0 : index
    %c0_9 = arith.constant 0 : index
    %10 = vector.load %arg4[%c0_7, %c0_8, %c0_9] : memref<1x16x1024xbf16, #tpu.memory_space<vmem>>, vector<1x16x1024xbf16>
    %11 = vector.shape_cast %10 : vector<1x16x1024xbf16> to vector<16x1024xbf16>
    %12 = vector.shape_cast %9 : vector<16x1024xbf16> to vector<1x16x1024xbf16>
    tpu.vector_store %arg4[%c0_7, %c0_8, %c0_9], %12 {strides = array<i32>} : memref<1x16x1024xbf16, #tpu.memory_space<vmem>>, vector<1x16x1024xbf16>,
    return
  }
  func.func @transform_0(%arg0: i32) -> (i32, i32, i32) {
    %c0_i32 = arith.constant 0 : i32
    %c0_i32_0 = arith.constant 0 : i32
    %c0_i32_1 = arith.constant 0 : i32
    return %arg0, %c0_i32, %c0_i32_0 : i32, i32, i32
  }
  func.func @transform_1(%arg0: i32) -> (i32, i32) {
    %c0_i32 = arith.constant 0 : i32
    %c0_i32_0 = arith.constant 0 : i32
    %c0_i32_1 = arith.constant 0 : i32
    return %c0_i32, %c0_i32_0 : i32, i32
  }
  func.func @transform_2(%arg0: i32) -> (i32, i32) {
    %c0_i32 = arith.constant 0 : i32
    %c0_i32_0 = arith.constant 0 : i32
    %c0_i32_1 = arith.constant 0 : i32
    return %c0_i32, %c0_i32_0 : i32, i32
  }
  func.func @transform_3(%arg0: i32) -> (i32, i32, i32) {
    %c0_i32 = arith.constant 0 : i32
    %c0_i32_0 = arith.constant 0 : i32
    %c0_i32_1 = arith.constant 0 : i32
    return %arg0, %c0_i32, %c0_i32_0 : i32, i32, i32
  }
}

module attributes {stable_mosaic.version = 11 : i64} {
  func.func @_cbr_linear_kernel(%arg0: i32, %arg1: memref<1x256x256xbf16, #tpu.memory_space<vmem>>, %arg2: memref<32x256xbf16, #tpu.memory_space<vmem>>, %arg3: memref<32x1xf32, #tpu.memory_space<vmem>>, %arg4: memref<32x256xf32, #tpu.memory_space<vmem>>, %arg5: memref<1x1x128xf32, #tpu.memory_space<vmem>>) attributes {dimension_semantics = [#tpu.dimension_semantics<parallel>], iteration_bounds = array<i64: 2>, scalar_prefetch = 0 : i64, scratch_operands = 0 : i64, tpu.core_type = #tpu.core_type<tc>, window_params = [{transform_indices = @transform_0, window_bounds = array<i64: 1, 256, 256>}, {pipeline_mode = #tpu.pipeline_mode<synchronous>, transform_indices = @transform_1, window_bounds = array<i64: 32, 256>}, {pipeline_mode = #tpu.pipeline_mode<synchronous>, transform_indices = @transform_2, window_bounds = array<i64: 32, 1>}, {pipeline_mode = #tpu.pipeline_mode<synchronous>, transform_indices = @transform_3, window_bounds = array<i64: 32, 256>}, {transform_indices = @transform_4, window_bounds = array<i64: 1, 1, 128>}]} {
    %c0 = arith.constant 0 : index
    %c0_0 = arith.constant 0 : index
    %0 = vector.load %arg2[%c0, %c0_0] : memref<32x256xbf16, #tpu.memory_space<vmem>>, vector<32x256xbf16>
    %c0_1 = arith.constant 0 : index
    %c0_2 = arith.constant 0 : index
    %c0_3 = arith.constant 0 : index
    %1 = vector.load %arg1[%c0_1, %c0_2, %c0_3] : memref<1x256x256xbf16, #tpu.memory_space<vmem>>, vector<1x256x256xbf16>
    %2 = vector.shape_cast %1 : vector<1x256x256xbf16> to vector<256x256xbf16>
    %cst = arith.constant dense<0.000000e+00> : vector<32x256xf32>
    %3 = tpu.matmul %0, %2, %cst {dimension_numbers = #tpu.dot_dimension_numbers<[1], [0], [0], [1], [0, 0, 1, 1], [], []>} : vector<32x256xbf16>, vector<256x256xbf16>, vector<32x256xf32> -> vector<32x256xf32>
    %c0_4 = arith.constant 0 : index
    %c0_5 = arith.constant 0 : index
    %4 = vector.load %arg3[%c0_4, %c0_5] : memref<32x1xf32, #tpu.memory_space<vmem>>, vector<32x1xf32>
    %5 = vector.broadcast %4 : vector<32x1xf32> to vector<32x256xf32>
    %6 = arith.addf %3, %5 : vector<32x256xf32>
    %cst_6 = arith.constant 0.000000e+00 : f32
    %7 = vector.broadcast %cst_6 : f32 to vector<32x256xf32>
    %8 = arith.maximumf %6, %7 : vector<32x256xf32>
    %c0_7 = arith.constant 0 : index
    %c0_8 = arith.constant 0 : index
    %9 = vector.load %arg4[%c0_7, %c0_8] : memref<32x256xf32, #tpu.memory_space<vmem>>, vector<32x256xf32>
    %10 = arith.mulf %8, %9 : vector<32x256xf32>
    %11 = vector.shape_cast %10 : vector<32x256xf32> to vector<1x32x256xf32>
    %cst_9 = arith.constant dense<0.000000e+00> : vector<1xf32>
    %12 = vector.multi_reduction <add>, %11, %cst_9 [1, 2] : vector<1x32x256xf32> to vector<1xf32>
    %13 = vector.shape_cast %12 : vector<1xf32> to vector<1x1x1xf32>
    %14 = vector.extract %13[0, 0, 0] : f32 from vector<1x1x1xf32>
    %15 = vector.broadcast %14 : f32 to vector<1x1x128xf32>
    %c0_10 = arith.constant 0 : index
    %c0_11 = arith.constant 0 : index
    %c0_12 = arith.constant 0 : index
    %16 = vector.load %arg5[%c0_10, %c0_11, %c0_12] : memref<1x1x128xf32, #tpu.memory_space<vmem>>, vector<1x1x128xf32>
    tpu.vector_store %arg5[%c0_10, %c0_11, %c0_12], %15 {strides = array<i32>} : memref<1x1x128xf32, #tpu.memory_space<vmem>>, vector<1x1x128xf32>,
    return
  }
  func.func @transform_0(%arg0: i32) -> (i32, i32, i32) {
    %c0_i32 = arith.constant 0 : i32
    %c0_i32_0 = arith.constant 0 : i32
    %c0_i32_1 = arith.constant 0 : i32
    return %arg0, %c0_i32, %c0_i32_0 : i32, i32, i32
  }
  func.func @transform_1(%arg0: i32) -> (i32, i32) {
    %c0_i32 = arith.constant 0 : i32
    %c0_i32_0 = arith.constant 0 : i32
    %c0_i32_1 = arith.constant 0 : i32
    return %c0_i32, %c0_i32_0 : i32, i32
  }
  func.func @transform_2(%arg0: i32) -> (i32, i32) {
    %c0_i32 = arith.constant 0 : i32
    %c0_i32_0 = arith.constant 0 : i32
    %c0_i32_1 = arith.constant 0 : i32
    return %c0_i32, %c0_i32_0 : i32, i32
  }
  func.func @transform_3(%arg0: i32) -> (i32, i32) {
    %c0_i32 = arith.constant 0 : i32
    %c0_i32_0 = arith.constant 0 : i32
    %c0_i32_1 = arith.constant 0 : i32
    return %c0_i32, %c0_i32_0 : i32, i32
  }
  func.func @transform_4(%arg0: i32) -> (i32, i32, i32) {
    %c0_i32 = arith.constant 0 : i32
    %c0_i32_0 = arith.constant 0 : i32
    %c0_i32_1 = arith.constant 0 : i32
    return %arg0, %c0_i32, %c0_i32_0 : i32, i32, i32
  }
}

</mosaic_0001>

<bundles_post_ra>
// kernel: whole_dis_forward.4
= control target key start
LH: loop header
LB: loop body
LE: loop exit
PB: predicated region body
PF: predicated region fallthrough
CT: control target
= control target key end

     0   :  { %s4135_s12 = smov 0   ;;  %s4948_s0 = inlined_call_operand.vmem [shape: bf16[2,16,16384], index: 0, kind: input, shape index: {}]   ;;  %s4949_s1 = inlined_call_operand.vmem [shape: bf16[4,16], index: 1, kind: input, shape index: {}]   ;;  %s4950_s2 = inlined_call_operand.vmem [shape: f32[4,1], index: 2, kind: input, shape index: {}]   ;;  %s4951_s3 = inlined_call_operand.vmem [shape: bf16[2,4,16384], index: 3, kind: output, shape index: {}]  }
   0x1 LB: > { %s3313_s13 = sadd.s32 4294967295, %s4112_s12   ;;  %p3317_p0 = scmp.ge.s32.totalorder %s4112_s12, 1  ;;  %s4112_s12 = sphi %s4135_s12, %s13_s12  }
   0x2   : > { %p137_p1 = scmp.lt.s32.totalorder %s4112_s12, 3 }
   0x4   : > { %p138_p2 = pnand %p3317_p0, %p137_p1 }
   0x5   : > { %p161_p3 = scmp.lt.s32.totalorder (!%p138_p2), %s3313_s13, 1 }
   0x6   : > { %141 = sbr.rel (%p138_p2) target bundleno = 662 (0x296), region = 32 }
   0xb   : > { %v4114_v0 = vmov 0   ;;  %v301_v1 = vld [vmem:[%s4950_s2] sm:$0xf]  ;;  %s4953_s13 = smov (!%p161_p3, %s3313_s13), 1  ;;  %vm947_vm0 = vcmask 130048   ;;  %vm2967_vm1 = vcmask 1041408  }
   0xc   : > { %4103 = vset.pattern.permute.xlu0 %v4114_v0  ;;  %s3964_s16 = sshll.u32 %s4953_s13, 10  ;;  %v4163_v9 = vld [vmem:[%s4949_s1] sm:$0x3]  ;;  %s3965_s22 = sshll.u32 %s4953_s13, 8  ;;  %vm2971_vm2 = vcmask 1045508   ;;  %vm2975_vm3 = vcmask 1043456  }
   0xd   : > { %304 = vperm.xlu0 %4103, %v301_v1   ;;  %s4152_s19 = scalar_lea.vmem %s4948_s0, %s3964_s16  ;;  %s4335_s25 = scalar_lea.vmem %s4951_s3, %s3965_s22 }
   0xe   : > { %v3324_v2 = vld [vmem:[%s4152_s19] sm:$0xf]  ;;  %v3966_v4 = vld [vmem:[%s4152_s19 + $0x4] sm:$0xf]  ;;  %v3332_v7 = vld [vmem:[%s4152_s19 + $0x8] sm:$0xf] }
   0xf   : > { %v4030_v3 = vld [vmem:[%s4152_s19 + $0x1fc] sm:$0xf0]  ;;  %v3326_v6 = vld [vmem:[%s4152_s19 + $0x200] sm:$0xf0]  ;;  %v4031_v8 = vld [vmem:[%s4152_s19 + $0x204] sm:$0xf0] }
  0x10   : > { %v3325_v5 = vor.u32 %v4030_v3, %v3324_v2  ;;  %v3329_v10 = vor.u32 %v3966_v4, %v3326_v6  ;;  %v3333_v11 = vor.u32 %v4031_v8, %v3332_v7  ;;  %v3967_v12 = vld [vmem:[%s4152_s19 + $0xc] sm:$0xf]  ;;  %v3348_v14 = vld [vmem:[%s4152_s19 + $0x18] sm:$0xf]  ;;  %v3969_v17 = vld [vmem:[%s4152_s19 + $0x1c] sm:$0xf] }
  0x11   : > { %v3334_v13 = vld [vmem:[%s4152_s19 + $0x208] sm:$0xf0]  ;;  %v4033_v16 = vld [vmem:[%s4152_s19 + $0x214] sm:$0xf0]  ;;  %v3350_v18 = vld [vmem:[%s4152_s19 + $0x218] sm:$0xf0] }
  0x12   : > { %958 = vmatpush.bf16.msra.mxu0 %v3325_v5  ;;  %v3337_v15 = vor.u32 %v3967_v12, %v3334_v13  ;;  %971 = vmatpush.bf16.msra.mxu1 %v3329_v10  ;;  %v3349_v19 = vor.u32 %v4033_v16, %v3348_v14  ;;  %v3340_v20 = vld [vmem:[%s4152_s19 + $0x10] sm:$0xf]  ;;  %v3968_v22 = vld [vmem:[%s4152_s19 + $0x14] sm:$0xf]  ;;  %v3353_v23 = vor.u32 %v3969_v17, %v3350_v18  ;;  %v3364_v26 = vld [vmem:[%s4152_s19 + $0x28] sm:$0xf] }
  0x13   : > { %984 = vmatpush.bf16.msra.mxu2 %v3333_v11  ;;  %v4032_v21 = vld [vmem:[%s4152_s19 + $0x20c] sm:$0xf0]  ;;  %v3342_v25 = vld [vmem:[%s4152_s19 + $0x210] sm:$0xf0]  ;;  %v4035_v27 = vld [vmem:[%s4152_s19 + $0x224] sm:$0xf0] }
  0x14   : > { %997 = vmatpush.bf16.msra.mxu3 %v3337_v15  ;;  %v3341_v24 = vor.u32 %v4032_v21, %v3340_v20  ;;  %v3345_v28 = vor.u32 %v3968_v22, %v3342_v25  ;;  %v3365_v29 = vor.u32 %v4035_v27, %v3364_v26  ;;  %v3971_v30 = vld [vmem:[%s4152_s19 + $0x2c] sm:$0xf]  ;;  %v3356_v32 = vld [vmem:[%s4152_s19 + $0x20] sm:$0xf]  ;;  %v3970_v35 = vld [vmem:[%s4152_s19 + $0x24] sm:$0xf] }
  0x15   : > { %3834 = vmatmul.msk.bf16.vlgmr.msra.gmra.mxu0 %vm947_vm0, %v4163_v9  ;;  %v3366_v31 = vld [vmem:[%s4152_s19 + $0x228] sm:$0xf0]  ;;  %3835 = vmatmul.msk.bf16.vlgmr.msra.gmra.mxu1 %vm947_vm0, %v4163_v9  ;;  %v4034_v34 = vld [vmem:[%s4152_s19 + $0x21c] sm:$0xf0]  ;;  %v3358_v36 = vld [vmem:[%s4152_s19 + $0x220] sm:$0xf0] }
  0x16   : > { %3836 = vmatmul.msk.bf16.vlgmr.msra.gmra.mxu2 %vm947_vm0, %v4163_v9  ;;  %v3369_v33 = vor.u32 %v3971_v30, %v3366_v31  ;;  %1010 = vmatpush.bf16.msrb.mxu0 %v3341_v24  ;;  %v3357_v37 = vor.u32 %v4034_v34, %v3356_v32  ;;  %v3361_v38 = vor.u32 %v3970_v35, %v3358_v36  ;;  %v3380_v39 = vld [vmem:[%s4152_s19 + $0x38] sm:$0xf]  ;;  %v3973_v41 = vld [vmem:[%s4152_s19 + $0x3c] sm:$0xf]  ;;  %v3372_v43 = vld [vmem:[%s4152_s19 + $0x30] sm:$0xf] }
  0x17   : > { %1036 = vmatpush.bf16.msrb.mxu2 %v3349_v19  ;;  %3837 = vmatmul.msk.bf16.vlgmr.msra.gmra.mxu3 %vm947_vm0, %v4163_v9  ;;  %v4037_v40 = vld [vmem:[%s4152_s19 + $0x234] sm:$0xf0]  ;;  %v3382_v42 = vld [vmem:[%s4152_s19 + $0x238] sm:$0xf0]  ;;  %v4036_v44 = vld [vmem:[%s4152_s19 + $0x22c] sm:$0xf0] }
  0x18   : > { %1049 = vmatpush.bf16.msrb.mxu3 %v3353_v23  ;;  %1023 = vmatpush.bf16.msrb.mxu1 %v3345_v28  ;;  %v3972_v45 = vld [vmem:[%s4152_s19 + $0x34] sm:$0xf]  ;;  %v3381_v47 = vor.u32 %v4037_v40, %v3380_v39  ;;  %v3385_v48 = vor.u32 %v3973_v41, %v3382_v42  ;;  %v3373_v49 = vor.u32 %v4036_v44, %v3372_v43  ;;  %v3396_v51 = vld [vmem:[%s4152_s19 + $0x48] sm:$0xf]  ;;  %v3975_v53 = vld [vmem:[%s4152_s19 + $0x4c] sm:$0xf] }
  0x19   : > { %v3374_v46 = vld [vmem:[%s4152_s19 + $0x230] sm:$0xf0]  ;;  %v4039_v52 = vld [vmem:[%s4152_s19 + $0x244] sm:$0xf0]  ;;  %v3398_v54 = vld [vmem:[%s4152_s19 + $0x248] sm:$0xf0] }
  0x1a   : > { %1062 = vmatpush.bf16.msra.mxu0 %v3357_v37  ;;  %v3377_v50 = vor.u32 %v3972_v45, %v3374_v46  ;;  %v3388_v55 = vld [vmem:[%s4152_s19 + $0x40] sm:$0xf]  ;;  %v3974_v57 = vld [vmem:[%s4152_s19 + $0x44] sm:$0xf]  ;;  %v3397_v59 = vor.u32 %v4039_v52, %v3396_v51  ;;  %v3401_v60 = vor.u32 %v3975_v53, %v3398_v54  ;;  %v3412_v63 = vld [vmem:[%s4152_s19 + $0x58] sm:$0xf] }
  0x1b   : > { %1088 = vmatpush.bf16.msra.mxu2 %v3365_v29  ;;  %v4038_v56 = vld [vmem:[%s4152_s19 + $0x23c] sm:$0xf0]  ;;  %v3390_v58 = vld [vmem:[%s4152_s19 + $0x240] sm:$0xf0]  ;;  %v4041_v0 = vld [vmem:[%s4152_s19 + $0x254] sm:$0xf0] }
  0x1c   : > { %1101 = vmatpush.bf16.msra.mxu3 %v3369_v33  ;;  %1075 = vmatpush.bf16.msra.mxu1 %v3361_v38  ;;  %v3389_v61 = vor.u32 %v4038_v56, %v3388_v55  ;;  %v3393_v62 = vor.u32 %v3974_v57, %v3390_v58  ;;  %v3977_v1 = vld [vmem:[%s4152_s19 + $0x5c] sm:$0xf]  ;;  %v3404_v3 = vld [vmem:[%s4152_s19 + $0x50] sm:$0xf]  ;;  %v3976_v5 = vld [vmem:[%s4152_s19 + $0x54] sm:$0xf]  ;;  %v3413_v7 = vor.u32 %v4041_v0, %v3412_v63 }
  0x1d   : > { %v3414_v2 = vld [vmem:[%s4152_s19 + $0x258] sm:$0xf0]  ;;  %v4040_v4 = vld [vmem:[%s4152_s19 + $0x24c] sm:$0xf0]  ;;  %v3406_v6 = vld [vmem:[%s4152_s19 + $0x250] sm:$0xf0] }
  0x1e   : > { %v3417_v8 = vor.u32 %v3977_v1, %v3414_v2  ;;  %v3405_v10 = vor.u32 %v4040_v4, %v3404_v3  ;;  %v3409_v11 = vor.u32 %v3976_v5, %v3406_v6  ;;  %v3428_v12 = vld [vmem:[%s4152_s19 + $0x68] sm:$0xf]  ;;  %v3979_v14 = vld [vmem:[%s4152_s19 + $0x6c] sm:$0xf]  ;;  %v3420_v16 = vld [vmem:[%s4152_s19 + $0x60] sm:$0xf] }
  0x1f   : > { %v4043_v13 = vld [vmem:[%s4152_s19 + $0x264] sm:$0xf0]  ;;  %v3430_v15 = vld [vmem:[%s4152_s19 + $0x268] sm:$0xf0]  ;;  %v4042_v17 = vld [vmem:[%s4152_s19 + $0x25c] sm:$0xf0] }
  0x20   : > { %v3978_v18 = vld [vmem:[%s4152_s19 + $0x64] sm:$0xf]  ;;  %v3429_v20 = vor.u32 %v4043_v13, %v3428_v12  ;;  %v3433_v21 = vor.u32 %v3979_v14, %v3430_v15  ;;  %v3421_v22 = vor.u32 %v4042_v17, %v3420_v16  ;;  %v3444_v24 = vld [vmem:[%s4152_s19 + $0x78] sm:$0xf]  ;;  %v3981_v26 = vld [vmem:[%s4152_s19 + $0x7c] sm:$0xf] }
  0x21   : > { %v3422_v19 = vld [vmem:[%s4152_s19 + $0x260] sm:$0xf0]  ;;  %v4045_v25 = vld [vmem:[%s4152_s19 + $0x274] sm:$0xf0]  ;;  %v3446_v27 = vld [vmem:[%s4152_s19 + $0x278] sm:$0xf0] }
  0x22   : > { %v3425_v23 = vor.u32 %v3978_v18, %v3422_v19  ;;  %v3436_v28 = vld [vmem:[%s4152_s19 + $0x70] sm:$0xf]  ;;  %v3980_v30 = vld [vmem:[%s4152_s19 + $0x74] sm:$0xf]  ;;  %v3445_v32 = vor.u32 %v4045_v25, %v3444_v24  ;;  %v3449_v33 = vor.u32 %v3981_v26, %v3446_v27  ;;  %v3460_v36 = vld [vmem:[%s4152_s19 + $0x88] sm:$0xf] }
  0x23   : > { %v4044_v29 = vld [vmem:[%s4152_s19 + $0x26c] sm:$0xf0]  ;;  %v3438_v31 = vld [vmem:[%s4152_s19 + $0x270] sm:$0xf0]  ;;  %v4047_v37 = vld [vmem:[%s4152_s19 + $0x284] sm:$0xf0] }
  0x24   : > { %v3437_v34 = vor.u32 %v4044_v29, %v3436_v28  ;;  %v3441_v35 = vor.u32 %v3980_v30, %v3438_v31  ;;  %v3983_v38 = vld [vmem:[%s4152_s19 + $0x8c] sm:$0xf]  ;;  %v3452_v40 = vld [vmem:[%s4152_s19 + $0x80] sm:$0xf]  ;;  %v3982_v42 = vld [vmem:[%s4152_s19 + $0x84] sm:$0xf]  ;;  %v3461_v44 = vor.u32 %v4047_v37, %v3460_v36 }
  0x25   : > { %3838 = vmatmul.msk.bf16.vlgmr.msrb.gmra.mxu0 %vm947_vm0, %v4163_v9  ;;  %3839 = vmatmul.msk.bf16.vlgmr.msrb.gmra.mxu1 %vm947_vm0, %v4163_v9  ;;  %v3462_v39 = vld [vmem:[%s4152_s19 + $0x288] sm:$0xf0]  ;;  %v4046_v41 = vld [vmem:[%s4152_s19 + $0x27c] sm:$0xf0]  ;;  %v3454_v43 = vld [vmem:[%s4152_s19 + $0x280] sm:$0xf0] }
  0x26   : > { %3840 = vmatmul.msk.bf16.vlgmr.msrb.gmra.mxu2 %vm947_vm0, %v4163_v9  ;;  %1114 = vmatpush.bf16.msrb.mxu0 %v3373_v49  ;;  %v3465_v45 = vor.u32 %v3983_v38, %v3462_v39  ;;  %v3453_v46 = vor.u32 %v4046_v41, %v3452_v40  ;;  %v4049_v49 = vld [vmem:[%s4152_s19 + $0x294] sm:$0xf0]  ;;  %v3478_v51 = vld [vmem:[%s4152_s19 + $0x298] sm:$0xf0]  ;;  %v3468_v52 = vld [vmem:[%s4152_s19 + $0x90] sm:$0xf] }
  0x27   : > { %3841 = vmatmul.msk.bf16.vlgmr.msrb.gmra.mxu3 %vm947_vm0, %v4163_v9  ;;  %1140 = vmatpush.bf16.msrb.mxu2 %v3381_v47  ;;  %v3457_v47 = vor.u32 %v3982_v42, %v3454_v43  ;;  %v4048_v53 = vld [vmem:[%s4152_s19 + $0x28c] sm:$0xf0]  ;;  %v3984_v54 = vld [vmem:[%s4152_s19 + $0x94] sm:$0xf]  ;;  %v3987_v63 = vld [vmem:[%s4152_s19 + $0xac] sm:$0xf] }
  0x28   : > { %1153 = vmatpush.bf16.msrb.mxu3 %v3385_v48  ;;  %1127 = vmatpush.bf16.msrb.mxu1 %v3377_v50  ;;  %v3476_v48 = vld [vmem:[%s4152_s19 + $0x98] sm:$0xf]  ;;  %v3985_v50 = vld [vmem:[%s4152_s19 + $0x9c] sm:$0xf]  ;;  %v3470_v55 = vld [vmem:[%s4152_s19 + $0x290] sm:$0xf0]  ;;  %v3469_v58 = vor.u32 %v4048_v53, %v3468_v52 }
  0x29   : > { %v3477_v56 = vor.u32 %v4049_v49, %v3476_v48  ;;  %v3481_v57 = vor.u32 %v3985_v50, %v3478_v51  ;;  %v3494_v0 = vld [vmem:[%s4152_s19 + $0x2a8] sm:$0xf0]  ;;  %v3484_v1 = vld [vmem:[%s4152_s19 + $0xa0] sm:$0xf]  ;;  %v3986_v4 = vld [vmem:[%s4152_s19 + $0xa4] sm:$0xf] }
  0x2a   : > { %v4050_v2 = vld [vmem:[%s4152_s19 + $0x29c] sm:$0xf0]  ;;  %v3486_v5 = vld [vmem:[%s4152_s19 + $0x2a0] sm:$0xf0]  ;;  %v3508_v27 = vld [vmem:[%s4152_s19 + $0xb8] sm:$0xf] }
  0x2b   : > { %v3485_v12 = vor.u32 %v4050_v2, %v3484_v1  ;;  %v3489_v13 = vor.u32 %v3986_v4, %v3486_v5  ;;  %v4053_v28 = vld [vmem:[%s4152_s19 + $0x2b4] sm:$0xf0]  ;;  %v3989_v29 = vld [vmem:[%s4152_s19 + $0xbc] sm:$0xf]  ;;  %v3988_v38 = vld [vmem:[%s4152_s19 + $0xb4] sm:$0xf] }
  0x2c   : > { %v3510_v30 = vld [vmem:[%s4152_s19 + $0x2b8] sm:$0xf0]  ;;  %v3502_v39 = vld [vmem:[%s4152_s19 + $0x2b0] sm:$0xf0]  ;;  %v4055_v1 = vld [vmem:[%s4152_s19 + $0x2c4] sm:$0xf0] }
  0x2d   : > { %v3505_v49 = vor.u32 %v3988_v38, %v3502_v39  ;;  %v3991_v2 = vld [vmem:[%s4152_s19 + $0xcc] sm:$0xf]  ;;  %v4057_v38 = vld [vmem:[%s4152_s19 + $0x2d4] sm:$0xf0]  ;;  %v3993_v39 = vld [vmem:[%s4152_s19 + $0xdc] sm:$0xf] }
  0x35   : > { %3842 = vmatmul.msk.bf16.vlgmr.msra.gmra.mxu0 %vm947_vm0, %v4163_v9  ;;  %3843 = vmatmul.msk.bf16.vlgmr.msra.gmra.mxu1 %vm947_vm0, %v4163_v9 }
  0x36   : > { %3844 = vmatmul.msk.bf16.vlgmr.msra.gmra.mxu2 %vm947_vm0, %v4163_v9  ;;  %1166 = vmatpush.bf16.msra.mxu0 %v3389_v61  ;;  %v3492_v61 = vld [vmem:[%s4152_s19 + $0xa8] sm:$0xf] }
  0x37   : > { %3845 = vmatmul.msk.bf16.vlgmr.msra.gmra.mxu3 %vm947_vm0, %v4163_v9  ;;  %1192 = vmatpush.bf16.msra.mxu2 %v3397_v59  ;;  %v3473_v59 = vor.u32 %v3984_v54, %v3470_v55 }
  0x38   : > { %1205 = vmatpush.bf16.msra.mxu3 %v3401_v60  ;;  %1179 = vmatpush.bf16.msra.mxu1 %v3393_v62  ;;  %v4051_v62 = vld [vmem:[%s4152_s19 + $0x2a4] sm:$0xf0] }
  0x45   : > { %3846 = vmatmul.msk.bf16.vlgmr.msrb.gmra.mxu0 %vm947_vm0, %v4163_v9  ;;  %3847 = vmatmul.msk.bf16.vlgmr.msrb.gmra.mxu1 %vm947_vm0, %v4163_v9 }
  0x46   : > { %3848 = vmatmul.msk.bf16.vlgmr.msrb.gmra.mxu2 %vm947_vm0, %v4163_v9  ;;  %1218 = vmatpush.bf16.msrb.mxu0 %v3405_v10 }
  0x47   : > { %3849 = vmatmul.msk.bf16.vlgmr.msrb.gmra.mxu3 %vm947_vm0, %v4163_v9  ;;  %1244 = vmatpush.bf16.msrb.mxu2 %v3413_v7 }
  0x48   : > { %1257 = vmatpush.bf16.msrb.mxu3 %v3417_v8  ;;  %1231 = vmatpush.bf16.msrb.mxu1 %v3409_v11  ;;  %v3493_v8 = vor.u32 %v4051_v62, %v3492_v61  ;;  %v3497_v11 = vor.u32 %v3987_v63, %v3494_v0  ;;  %v3524_v0 = vld [vmem:[%s4152_s19 + $0xc8] sm:$0xf] }
  0x55   : > { %3850 = vmatmul.msk.bf16.vlgmr.msra.gmra.mxu0 %vm947_vm0, %v4163_v9  ;;  %3851 = vmatmul.msk.bf16.vlgmr.msra.gmra.mxu1 %vm947_vm0, %v4163_v9 }
  0x56   : > { %3852 = vmatmul.msk.bf16.vlgmr.msra.gmra.mxu2 %vm947_vm0, %v4163_v9  ;;  %1270 = vmatpush.bf16.msra.mxu0 %v3421_v22 }
  0x57   : > { %3853 = vmatmul.msk.bf16.vlgmr.msra.gmra.mxu3 %vm947_vm0, %v4163_v9  ;;  %1296 = vmatpush.bf16.msra.mxu2 %v3429_v20 }
  0x58   : > { %1309 = vmatpush.bf16.msra.mxu3 %v3433_v21  ;;  %1283 = vmatpush.bf16.msra.mxu1 %v3425_v23 }
  0x65   : > { %3854 = vmatmul.msk.bf16.vlgmr.msrb.gmra.mxu0 %vm947_vm0, %v4163_v9  ;;  %3855 = vmatmul.msk.bf16.vlgmr.msrb.gmra.mxu1 %vm947_vm0, %v4163_v9 }
  0x66   : > { %3856 = vmatmul.msk.bf16.vlgmr.msrb.gmra.mxu2 %vm947_vm0, %v4163_v9  ;;  %1322 = vmatpush.bf16.msrb.mxu0 %v3437_v34  ;;  %v3500_v34 = vld [vmem:[%s4152_s19 + $0xb0] sm:$0xf] }
  0x67   : > { %3857 = vmatmul.msk.bf16.vlgmr.msrb.gmra.mxu3 %vm947_vm0, %v4163_v9  ;;  %1348 = vmatpush.bf16.msrb.mxu2 %v3445_v32 }
  0x68   : > { %1361 = vmatpush.bf16.msrb.mxu3 %v3449_v33  ;;  %1335 = vmatpush.bf16.msrb.mxu1 %v3441_v35  ;;  %v4052_v35 = vld [vmem:[%s4152_s19 + $0x2ac] sm:$0xf0] }
  0x69   : > { %v3501_v48 = vor.u32 %v4052_v35, %v3500_v34 }
  0x75   : > { %3858 = vmatmul.msk.bf16.vlgmr.msra.gmra.mxu0 %vm947_vm0, %v4163_v9  ;;  %3859 = vmatmul.msk.bf16.vlgmr.msra.gmra.mxu1 %vm947_vm0, %v4163_v9 }
  0x76   : > { %3860 = vmatmul.msk.bf16.vlgmr.msra.gmra.mxu2 %vm947_vm0, %v4163_v9  ;;  %1374 = vmatpush.bf16.msra.mxu0 %v3453_v46 }
  0x77   : > { %3861 = vmatmul.msk.bf16.vlgmr.msra.gmra.mxu3 %vm947_vm0, %v4163_v9  ;;  %1400 = vmatpush.bf16.msra.mxu2 %v3461_v44  ;;  %v3509_v44 = vor.u32 %v4053_v28, %v3508_v27 }
  0x78   : > { %1413 = vmatpush.bf16.msra.mxu3 %v3465_v45  ;;  %1387 = vmatpush.bf16.msra.mxu1 %v3457_v47  ;;  %v3513_v47 = vor.u32 %v3989_v29, %v3510_v30 }
  0x7f   : > { %v4303_v60 = vpop.permute.xlu0 %304 }
  0x85   : > { %3862 = vmatmul.msk.bf16.vlgmr.msrb.gmra.mxu0 %vm947_vm0, %v4163_v9  ;;  %3863 = vmatmul.msk.bf16.vlgmr.msrb.gmra.mxu1 %vm947_vm0, %v4163_v9 }
  0x86   : > { %3864 = vmatmul.msk.bf16.vlgmr.msrb.gmra.mxu2 %vm947_vm0, %v4163_v9  ;;  %1426 = vmatpush.bf16.msrb.mxu0 %v3469_v58 }
  0x87   : > { %3865 = vmatmul.msk.bf16.vlgmr.msrb.gmra.mxu3 %vm947_vm0, %v4163_v9  ;;  %1452 = vmatpush.bf16.msrb.mxu2 %v3477_v56 }
  0x88   : > { %1465 = vmatpush.bf16.msrb.mxu3 %v3481_v57  ;;  %1439 = vmatpush.bf16.msrb.mxu1 %v3473_v59 }
  0x92   : > { %v960_v3 = vpop.f32.mrf.mxu0  ;;  %v973_v6 = vpop.f32.mrf.mxu1 }
  0x93   : > { %v961_v7 = vadd.f32 %v960_v3, %v4303_v60  ;;  %v974_v10 = vadd.f32 %v973_v6, %v4303_v60  ;;  %v3526_v3 = vld [vmem:[%s4152_s19 + $0x2c8] sm:$0xf0] }
  0x95   : > { %3866 = vmatmul.msk.bf16.vlgmr.msra.gmra.mxu0 %vm947_vm0, %v4163_v9  ;;  %3867 = vmatmul.msk.bf16.vlgmr.msra.gmra.mxu1 %vm947_vm0, %v4163_v9  ;;  %v2615_v14 = vmax.f32 %v961_v7, 0.0  ;;  %v2616_v15 = vmax.f32 %v974_v10, 0.0  ;;  %v3516_v7 = vld [vmem:[%s4152_s19 + $0xc0] sm:$0xf] }
  0x96   : > { %3868 = vmatmul.msk.bf16.vlgmr.msra.gmra.mxu2 %vm947_vm0, %v4163_v9  ;;  %1478 = vmatpush.bf16.msra.mxu0 %v3485_v12  ;;  %v3990_v12 = vld [vmem:[%s4152_s19 + $0xc4] sm:$0xf] }
  0x97   : > { %3869 = vmatmul.msk.bf16.vlgmr.msra.gmra.mxu3 %vm947_vm0, %v4163_v9  ;;  %1504 = vmatpush.bf16.msra.mxu2 %v3493_v8  ;;  %v2743_v21 = vpack.c.bf16 %v2616_v15, %v2615_v14  ;;  %v4054_v8 = vld [vmem:[%s4152_s19 + $0x2bc] sm:$0xf0] }
  0x98   : > { %1517 = vmatpush.bf16.msra.mxu3 %v3497_v11  ;;  %1491 = vmatpush.bf16.msra.mxu1 %v3489_v13  ;;  %v3518_v13 = vld [vmem:[%s4152_s19 + $0x2c0] sm:$0xf0] }
  0x99   : > { %v986_v16 = vpop.f32.mrf.mxu2  ;;  %v2871_v26 = vrot.slane %v2743_v21, 2 }
  0x9a   : > { %v987_v17 = vadd.f32 %v986_v16, %v4303_v60  ;;  %v999_v18 = vpop.f32.mrf.mxu3  ;;  %v962_v19 = vpop.f32.mrf.mxu0 }
  0x9b   : > { %v1000_v20 = vadd.f32 %v999_v18, %v4303_v60  ;;  %v975_v22 = vpop.f32.mrf.mxu1  ;;  %v2970_v40 = vsel %vm2967_vm1, %v2743_v21, %v2871_v26  ;;  %v3525_v18 = vor.u32 %v4055_v1, %v3524_v0  ;;  %v3529_v21 = vor.u32 %v3991_v2, %v3526_v3 }
  0x9c   : > { %v2617_v23 = vmax.f32 %v987_v17, 0.0  ;;  %v3517_v22 = vor.u32 %v4054_v8, %v3516_v7 }
  0x9d   : > { %v2618_v24 = vmax.f32 %v1000_v20, 0.0 }
  0x9f   : > { %v2744_v25 = vpack.c.bf16 %v2618_v24, %v2617_v23  ;;  %v3521_v23 = vor.u32 %v3990_v12, %v3518_v13  ;;  %v4059_v12 = vld [vmem:[%s4152_s19 + $0x2e4] sm:$0xf0]  ;;  %v3995_v13 = vld [vmem:[%s4152_s19 + $0xec] sm:$0xf] }
  0xa1   : > { %v2872_v31 = vrot.slane %v2744_v25, 4  ;;  %v2873_v32 = vrot.slane %v2744_v25, 6  ;;  %v988_v33 = vpop.f32.mrf.mxu2 }
  0xa2   : > { %v1001_v36 = vpop.f32.mrf.mxu3  ;;  %v1012_v37 = vpop.f32.mrf.mxu0 }
  0xa3   : > { %v2974_v41 = vsel %vm2971_vm2, %v2872_v31, %v2873_v32  ;;  %v1013_v42 = vadd.f32 %v1012_v37, %v4303_v60  ;;  %v1025_v43 = vpop.f32.mrf.mxu1  ;;  %v3540_v37 = vld [vmem:[%s4152_s19 + $0xd8] sm:$0xf] }
  0xa4   : > { %v2976_v45 = vsel %vm2975_vm3, %v2970_v40, %v2974_v41  ;;  %v1026_v46 = vadd.f32 %v1025_v43, %v4303_v60  ;;  %v3542_v40 = vld [vmem:[%s4152_s19 + $0x2d8] sm:$0xf0] }
  0xa5   : > { %3226 = vst [vmem:[%s4335_s25] sm:$0xff] %v2976_v45  ;;  %3870 = vmatmul.msk.bf16.vlgmr.msrb.gmra.mxu0 %vm947_vm0, %v4163_v9  ;;  %3871 = vmatmul.msk.bf16.vlgmr.msrb.gmra.mxu1 %vm947_vm0, %v4163_v9  ;;  %v2619_v50 = vmax.f32 %v1013_v42, 0.0  ;;  %v4056_v45 = vld [vmem:[%s4152_s19 + $0x2cc] sm:$0xf0] }
  0xa6   : > { %3872 = vmatmul.msk.bf16.vlgmr.msrb.gmra.mxu2 %vm947_vm0, %v4163_v9  ;;  %v2620_v51 = vmax.f32 %v1026_v46, 0.0  ;;  %1530 = vmatpush.bf16.msrb.mxu0 %v3501_v48  ;;  %v3992_v48 = vld [vmem:[%s4152_s19 + $0xd4] sm:$0xf] }
  0xa7   : > { %3873 = vmatmul.msk.bf16.vlgmr.msrb.gmra.mxu3 %vm947_vm0, %v4163_v9  ;;  %1556 = vmatpush.bf16.msrb.mxu2 %v3509_v44  ;;  %v3532_v44 = vld [vmem:[%s4152_s19 + $0xd0] sm:$0xf] }
  0xa8   : > { %1569 = vmatpush.bf16.msrb.mxu3 %v3513_v47  ;;  %1543 = vmatpush.bf16.msrb.mxu1 %v3505_v49  ;;  %v2745_v56 = vpack.c.bf16 %v2620_v51, %v2619_v50  ;;  %v3534_v49 = vld [vmem:[%s4152_s19 + $0x2d0] sm:$0xf0] }
  0xa9   : > { %v1038_v52 = vpop.f32.mrf.mxu2 }
  0xaa   : > { %v1039_v53 = vadd.f32 %v1038_v52, %v4303_v60  ;;  %v1051_v54 = vpop.f32.mrf.mxu3  ;;  %v1014_v55 = vpop.f32.mrf.mxu0  ;;  %v2874_v62 = vrot.slane %v2745_v56, 2 }
  0xab   : > { %v1052_v57 = vadd.f32 %v1051_v54, %v4303_v60  ;;  %v1027_v58 = vpop.f32.mrf.mxu1  ;;  %v3541_v54 = vor.u32 %v4057_v38, %v3540_v37 }
  0xac   : > { %v2621_v59 = vmax.f32 %v1039_v53, 0.0  ;;  %v2979_v14 = vsel %vm2967_vm1, %v2745_v56, %v2874_v62  ;;  %v3533_v58 = vor.u32 %v4056_v45, %v3532_v44 }
  0xad   : > { %v2622_v61 = vmax.f32 %v1052_v57, 0.0  ;;  %v3545_v57 = vor.u32 %v3993_v39, %v3542_v40 }
  0xaf   : > { %v2746_v63 = vpack.c.bf16 %v2622_v61, %v2621_v59  ;;  %v3537_v59 = vor.u32 %v3992_v48, %v3534_v49  ;;  %v4061_v48 = vld [vmem:[%s4152_s19 + $0x2f4] sm:$0xf0]  ;;  %v3997_v49 = vld [vmem:[%s4152_s19 + $0xfc] sm:$0xf] }
  0xb1   : > { %v2875_v4 = vrot.slane %v2746_v63, 4  ;;  %v2876_v5 = vrot.slane %v2746_v63, 6  ;;  %v1040_v6 = vpop.f32.mrf.mxu2 }
  0xb2   : > { %v1053_v10 = vpop.f32.mrf.mxu3  ;;  %v1064_v11 = vpop.f32.mrf.mxu0 }
  0xb3   : > { %v2982_v15 = vsel %vm2971_vm2, %v2875_v4, %v2876_v5  ;;  %v1065_v16 = vadd.f32 %v1064_v11, %v4303_v60  ;;  %v1077_v17 = vpop.f32.mrf.mxu1  ;;  %v3556_v11 = vld [vmem:[%s4152_s19 + $0xe8] sm:$0xf] }
  0xb4   : > { %v2983_v19 = vsel %vm2975_vm3, %v2979_v14, %v2982_v15  ;;  %v1078_v20 = vadd.f32 %v1077_v17, %v4303_v60  ;;  %v3558_v14 = vld [vmem:[%s4152_s19 + $0x2e8] sm:$0xf0] }
  0xb5   : > { %3227 = vst [vmem:[%s4335_s25 + $0x8] sm:$0xff] %v2983_v19  ;;  %3874 = vmatmul.msk.bf16.vlgmr.msra.gmra.mxu0 %vm947_vm0, %v4163_v9  ;;  %3875 = vmatmul.msk.bf16.vlgmr.msra.gmra.mxu1 %vm947_vm0, %v4163_v9  ;;  %v2623_v24 = vmax.f32 %v1065_v16, 0.0  ;;  %v4058_v19 = vld [vmem:[%s4152_s19 + $0x2dc] sm:$0xf0] }
  0xb6   : > { %3876 = vmatmul.msk.bf16.vlgmr.msra.gmra.mxu2 %vm947_vm0, %v4163_v9  ;;  %v2624_v25 = vmax.f32 %v1078_v20, 0.0  ;;  %1582 = vmatpush.bf16.msra.mxu0 %v3517_v22  ;;  %v3994_v22 = vld [vmem:[%s4152_s19 + $0xe4] sm:$0xf] }
  0xb7   : > { %3877 = vmatmul.msk.bf16.vlgmr.msra.gmra.mxu3 %vm947_vm0, %v4163_v9  ;;  %1608 = vmatpush.bf16.msra.mxu2 %v3525_v18  ;;  %v3548_v18 = vld [vmem:[%s4152_s19 + $0xe0] sm:$0xf] }
  0xb8   : > { %1621 = vmatpush.bf16.msra.mxu3 %v3529_v21  ;;  %1595 = vmatpush.bf16.msra.mxu1 %v3521_v23  ;;  %v2747_v30 = vpack.c.bf16 %v2624_v25, %v2623_v24  ;;  %v3550_v23 = vld [vmem:[%s4152_s19 + $0x2e0] sm:$0xf0] }
  0xb9   : > { %v1090_v26 = vpop.f32.mrf.mxu2 }
  0xba   : > { %v1091_v27 = vadd.f32 %v1090_v26, %v4303_v60  ;;  %v1103_v28 = vpop.f32.mrf.mxu3  ;;  %v1066_v29 = vpop.f32.mrf.mxu0  ;;  %v2877_v35 = vrot.slane %v2747_v30, 2 }
  0xbb   : > { %v1104_v31 = vadd.f32 %v1103_v28, %v4303_v60  ;;  %v1079_v32 = vpop.f32.mrf.mxu1  ;;  %v3557_v28 = vor.u32 %v4059_v12, %v3556_v11 }
  0xbc   : > { %v2625_v33 = vmax.f32 %v1091_v27, 0.0  ;;  %v2986_v50 = vsel %vm2967_vm1, %v2747_v30, %v2877_v35  ;;  %v3549_v32 = vor.u32 %v4058_v19, %v3548_v18 }
  0xbd   : > { %v2626_v34 = vmax.f32 %v1104_v31, 0.0  ;;  %v3561_v31 = vor.u32 %v3995_v13, %v3558_v14 }
  0xbf   : > { %v2748_v36 = vpack.c.bf16 %v2626_v34, %v2625_v33  ;;  %v3553_v33 = vor.u32 %v3994_v22, %v3550_v23  ;;  %v4063_v22 = vld [vmem:[%s4152_s19 + $0x304] sm:$0xf0]  ;;  %v3999_v23 = vld [vmem:[%s4152_s19 + $0x10c] sm:$0xf] }
  0xc1   : > { %v2878_v41 = vrot.slane %v2748_v36, 4  ;;  %v2879_v42 = vrot.slane %v2748_v36, 6  ;;  %v1092_v43 = vpop.f32.mrf.mxu2 }
  0xc2   : > { %v1105_v46 = vpop.f32.mrf.mxu3  ;;  %v1116_v47 = vpop.f32.mrf.mxu0 }
  0xc3   : > { %v2989_v51 = vsel %vm2971_vm2, %v2878_v41, %v2879_v42  ;;  %v1117_v52 = vadd.f32 %v1116_v47, %v4303_v60  ;;  %v1129_v53 = vpop.f32.mrf.mxu1  ;;  %v3572_v47 = vld [vmem:[%s4152_s19 + $0xf8] sm:$0xf] }
  0xc4   : > { %v2990_v55 = vsel %vm2975_vm3, %v2986_v50, %v2989_v51  ;;  %v1130_v56 = vadd.f32 %v1129_v53, %v4303_v60  ;;  %v3574_v50 = vld [vmem:[%s4152_s19 + $0x2f8] sm:$0xf0] }
  0xc5   : > { %3228 = vst [vmem:[%s4335_s25 + $0x10] sm:$0xff] %v2990_v55  ;;  %3878 = vmatmul.msk.bf16.vlgmr.msrb.gmra.mxu0 %vm947_vm0, %v4163_v9  ;;  %3879 = vmatmul.msk.bf16.vlgmr.msrb.gmra.mxu1 %vm947_vm0, %v4163_v9  ;;  %v2627_v61 = vmax.f32 %v1117_v52, 0.0  ;;  %v4060_v55 = vld [vmem:[%s4152_s19 + $0x2ec] sm:$0xf0] }
  0xc6   : > { %3880 = vmatmul.msk.bf16.vlgmr.msrb.gmra.mxu2 %vm947_vm0, %v4163_v9  ;;  %v2628_v62 = vmax.f32 %v1130_v56, 0.0  ;;  %1634 = vmatpush.bf16.msrb.mxu0 %v3533_v58  ;;  %v3996_v58 = vld [vmem:[%s4152_s19 + $0xf4] sm:$0xf] }
  0xc7   : > { %3881 = vmatmul.msk.bf16.vlgmr.msrb.gmra.mxu3 %vm947_vm0, %v4163_v9  ;;  %1660 = vmatpush.bf16.msrb.mxu2 %v3541_v54  ;;  %v3564_v54 = vld [vmem:[%s4152_s19 + $0xf0] sm:$0xf] }
  0xc8   : > { %1673 = vmatpush.bf16.msrb.mxu3 %v3545_v57  ;;  %1647 = vmatpush.bf16.msrb.mxu1 %v3537_v59  ;;  %v2749_v3 = vpack.c.bf16 %v2628_v62, %v2627_v61  ;;  %v3566_v59 = vld [vmem:[%s4152_s19 + $0x2f0] sm:$0xf0] }
  0xc9   : > { %v1142_v63 = vpop.f32.mrf.mxu2 }
  0xca   : > { %v1143_v0 = vadd.f32 %v1142_v63, %v4303_v60  ;;  %v1155_v1 = vpop.f32.mrf.mxu3  ;;  %v1118_v2 = vpop.f32.mrf.mxu0  ;;  %v2880_v8 = vrot.slane %v2749_v3, 2 }
  0xcb   : > { %v1156_v4 = vadd.f32 %v1155_v1, %v4303_v60  ;;  %v1131_v5 = vpop.f32.mrf.mxu1  ;;  %v3573_v1 = vor.u32 %v4061_v48, %v3572_v47 }
  0xcc   : > { %v2629_v6 = vmax.f32 %v1143_v0, 0.0  ;;  %v2993_v24 = vsel %vm2967_vm1, %v2749_v3, %v2880_v8  ;;  %v3565_v5 = vor.u32 %v4060_v55, %v3564_v54 }
  0xcd   : > { %v2630_v7 = vmax.f32 %v1156_v4, 0.0  ;;  %v3577_v4 = vor.u32 %v3997_v49, %v3574_v50 }
  0xcf   : > { %v2750_v10 = vpack.c.bf16 %v2630_v7, %v2629_v6  ;;  %v3569_v6 = vor.u32 %v3996_v58, %v3566_v59  ;;  %v4001_v58 = vld [vmem:[%s4152_s19 + $0x11c] sm:$0xf] }
  0xd0   : > { %v3606_v59 = vld [vmem:[%s4152_s19 + $0x318] sm:$0xf0] }
  0xd1   : > { %v2881_v15 = vrot.slane %v2750_v10, 4  ;;  %v2882_v16 = vrot.slane %v2750_v10, 6  ;;  %v1144_v17 = vpop.f32.mrf.mxu2 }
  0xd2   : > { %v1157_v20 = vpop.f32.mrf.mxu3  ;;  %v1168_v21 = vpop.f32.mrf.mxu0 }
  0xd3   : > { %v2996_v25 = vsel %vm2971_vm2, %v2881_v15, %v2882_v16  ;;  %v1169_v26 = vadd.f32 %v1168_v21, %v4303_v60  ;;  %v1181_v27 = vpop.f32.mrf.mxu1  ;;  %v3588_v21 = vld [vmem:[%s4152_s19 + $0x108] sm:$0xf] }
  0xd4   : > { %v2997_v29 = vsel %vm2975_vm3, %v2993_v24, %v2996_v25  ;;  %v1182_v30 = vadd.f32 %v1181_v27, %v4303_v60  ;;  %v3590_v24 = vld [vmem:[%s4152_s19 + $0x308] sm:$0xf0] }
  0xd5   : > { %3229 = vst [vmem:[%s4335_s25 + $0x18] sm:$0xff] %v2997_v29  ;;  %3882 = vmatmul.msk.bf16.vlgmr.msra.gmra.mxu0 %vm947_vm0, %v4163_v9  ;;  %3883 = vmatmul.msk.bf16.vlgmr.msra.gmra.mxu1 %vm947_vm0, %v4163_v9  ;;  %v2631_v34 = vmax.f32 %v1169_v26, 0.0  ;;  %v4062_v29 = vld [vmem:[%s4152_s19 + $0x2fc] sm:$0xf0] }
  0xd6   : > { %3884 = vmatmul.msk.bf16.vlgmr.msra.gmra.mxu2 %vm947_vm0, %v4163_v9  ;;  %v2632_v35 = vmax.f32 %v1182_v30, 0.0  ;;  %1686 = vmatpush.bf16.msra.mxu0 %v3549_v32  ;;  %v3998_v32 = vld [vmem:[%s4152_s19 + $0x104] sm:$0xf] }
  0xd7   : > { %3885 = vmatmul.msk.bf16.vlgmr.msra.gmra.mxu3 %vm947_vm0, %v4163_v9  ;;  %1712 = vmatpush.bf16.msra.mxu2 %v3557_v28  ;;  %v3580_v28 = vld [vmem:[%s4152_s19 + $0x100] sm:$0xf] }
  0xd8   : > { %1725 = vmatpush.bf16.msra.mxu3 %v3561_v31  ;;  %1699 = vmatpush.bf16.msra.mxu1 %v3553_v33  ;;  %v2751_v40 = vpack.c.bf16 %v2632_v35, %v2631_v34  ;;  %v3582_v33 = vld [vmem:[%s4152_s19 + $0x300] sm:$0xf0] }
  0xd9   : > { %v1194_v36 = vpop.f32.mrf.mxu2 }
  0xda   : > { %v1195_v37 = vadd.f32 %v1194_v36, %v4303_v60  ;;  %v1207_v38 = vpop.f32.mrf.mxu3  ;;  %v1170_v39 = vpop.f32.mrf.mxu0  ;;  %v2883_v45 = vrot.slane %v2751_v40, 2 }
  0xdb   : > { %v1208_v41 = vadd.f32 %v1207_v38, %v4303_v60  ;;  %v1183_v42 = vpop.f32.mrf.mxu1  ;;  %v3589_v38 = vor.u32 %v4063_v22, %v3588_v21 }
  0xdc   : > { %v2633_v43 = vmax.f32 %v1195_v37, 0.0  ;;  %v3000_v61 = vsel %vm2967_vm1, %v2751_v40, %v2883_v45  ;;  %v3581_v42 = vor.u32 %v4062_v29, %v3580_v28 }
  0xdd   : > { %v2634_v44 = vmax.f32 %v1208_v41, 0.0  ;;  %v3593_v41 = vor.u32 %v3999_v23, %v3590_v24 }
  0xdf   : > { %v2752_v46 = vpack.c.bf16 %v2634_v44, %v2633_v43  ;;  %v3585_v43 = vor.u32 %v3998_v32, %v3582_v33  ;;  %v4067_v32 = vld [vmem:[%s4152_s19 + $0x324] sm:$0xf0]  ;;  %v4003_v33 = vld [vmem:[%s4152_s19 + $0x12c] sm:$0xf] }
  0xe1   : > { %v2884_v51 = vrot.slane %v2752_v46, 4  ;;  %v2885_v52 = vrot.slane %v2752_v46, 6  ;;  %v1196_v53 = vpop.f32.mrf.mxu2 }
  0xe2   : > { %v1209_v56 = vpop.f32.mrf.mxu3  ;;  %v1220_v57 = vpop.f32.mrf.mxu0 }
  0xe3   : > { %v3003_v62 = vsel %vm2971_vm2, %v2884_v51, %v2885_v52  ;;  %v1221_v63 = vadd.f32 %v1220_v57, %v4303_v60  ;;  %v1233_v0 = vpop.f32.mrf.mxu1  ;;  %v3604_v56 = vld [vmem:[%s4152_s19 + $0x118] sm:$0xf] }
  0xe4   : > { %v3004_v2 = vsel %vm2975_vm3, %v3000_v61, %v3003_v62  ;;  %v1234_v3 = vadd.f32 %v1233_v0, %v4303_v60  ;;  %v4065_v57 = vld [vmem:[%s4152_s19 + $0x314] sm:$0xf0]  ;;  %v3596_v0 = vld [vmem:[%s4152_s19 + $0x110] sm:$0xf] }
  0xe5   : > { %3230 = vst [vmem:[%s4335_s25 + $0x20] sm:$0xff] %v3004_v2  ;;  %3886 = vmatmul.msk.bf16.vlgmr.msrb.gmra.mxu0 %vm947_vm0, %v4163_v9  ;;  %3887 = vmatmul.msk.bf16.vlgmr.msrb.gmra.mxu1 %vm947_vm0, %v4163_v9  ;;  %v2635_v7 = vmax.f32 %v1221_v63, 0.0 }
  0xe6   : > { %3888 = vmatmul.msk.bf16.vlgmr.msrb.gmra.mxu2 %vm947_vm0, %v4163_v9  ;;  %v2636_v8 = vmax.f32 %v1234_v3, 0.0  ;;  %1738 = vmatpush.bf16.msrb.mxu0 %v3565_v5  ;;  %v3598_v5 = vld [vmem:[%s4152_s19 + $0x310] sm:$0xf0] }
  0xe7   : > { %3889 = vmatmul.msk.bf16.vlgmr.msrb.gmra.mxu3 %vm947_vm0, %v4163_v9  ;;  %1764 = vmatpush.bf16.msrb.mxu2 %v3573_v1  ;;  %v4064_v1 = vld [vmem:[%s4152_s19 + $0x30c] sm:$0xf0] }
  0xe8   : > { %1777 = vmatpush.bf16.msrb.mxu3 %v3577_v4  ;;  %1751 = vmatpush.bf16.msrb.mxu1 %v3569_v6  ;;  %v2753_v14 = vpack.c.bf16 %v2636_v8, %v2635_v7  ;;  %v4000_v4 = vld [vmem:[%s4152_s19 + $0x114] sm:$0xf] }
  0xe9   : > { %v1246_v10 = vpop.f32.mrf.mxu2 }
  0xea   : > { %v1247_v11 = vadd.f32 %v1246_v10, %v4303_v60  ;;  %v1259_v12 = vpop.f32.mrf.mxu3  ;;  %v1222_v13 = vpop.f32.mrf.mxu0  ;;  %v2886_v19 = vrot.slane %v2753_v14, 2 }
  0xeb   : > { %v1260_v15 = vadd.f32 %v1259_v12, %v4303_v60  ;;  %v1235_v16 = vpop.f32.mrf.mxu1 }
  0xec   : > { %v2637_v17 = vmax.f32 %v1247_v11, 0.0  ;;  %v3007_v34 = vsel %vm2967_vm1, %v2753_v14, %v2886_v19  ;;  %v3605_v11 = vor.u32 %v4065_v57, %v3604_v56  ;;  %v3609_v14 = vor.u32 %v4001_v58, %v3606_v59  ;;  %v4492_v16 = vld [vmem:[%s4949_s1] sm:$0x3] }
  0xed   : > { %v2638_v18 = vmax.f32 %v1260_v15, 0.0  ;;  %v3597_v15 = vor.u32 %v4064_v1, %v3596_v0 }
  0xef   : > { %v2754_v20 = vpack.c.bf16 %v2638_v18, %v2637_v17  ;;  %v3601_v17 = vor.u32 %v4000_v4, %v3598_v5  ;;  %v4069_v4 = vld [vmem:[%s4152_s19 + $0x334] sm:$0xf0]  ;;  %v4005_v5 = vld [vmem:[%s4152_s19 + $0x13c] sm:$0xf] }
  0xf1   : > { %v2887_v25 = vrot.slane %v2754_v20, 4  ;;  %v2888_v26 = vrot.slane %v2754_v20, 6  ;;  %v1248_v27 = vpop.f32.mrf.mxu2 }
  0xf2   : > { %v1261_v30 = vpop.f32.mrf.mxu3  ;;  %v1272_v31 = vpop.f32.mrf.mxu0 }
  0xf3   : > { %v3010_v35 = vsel %vm2971_vm2, %v2887_v25, %v2888_v26  ;;  %v1273_v36 = vadd.f32 %v1272_v31, %v4303_v60  ;;  %v1285_v37 = vpop.f32.mrf.mxu1  ;;  %v3620_v31 = vld [vmem:[%s4152_s19 + $0x128] sm:$0xf] }
  0xf4   : > { %v3011_v39 = vsel %vm2975_vm3, %v3007_v34, %v3010_v35  ;;  %v1286_v40 = vadd.f32 %v1285_v37, %v4303_v60  ;;  %v3622_v34 = vld [vmem:[%s4152_s19 + $0x328] sm:$0xf0] }
  0xf5   : > { %3231 = vst [vmem:[%s4335_s25 + $0x28] sm:$0xff] %v3011_v39  ;;  %3890 = vmatmul.msk.bf16.vlgmr.msra.gmra.mxu0 %vm947_vm0, %v4163_v9  ;;  %3891 = vmatmul.msk.bf16.vlgmr.msra.gmra.mxu1 %vm947_vm0, %v4163_v9  ;;  %v2639_v44 = vmax.f32 %v1273_v36, 0.0  ;;  %v4066_v39 = vld [vmem:[%s4152_s19 + $0x31c] sm:$0xf0] }
  0xf6   : > { %3892 = vmatmul.msk.bf16.vlgmr.msra.gmra.mxu2 %vm947_vm0, %v4163_v9  ;;  %v2640_v45 = vmax.f32 %v1286_v40, 0.0  ;;  %1790 = vmatpush.bf16.msra.mxu0 %v3581_v42  ;;  %v4002_v42 = vld [vmem:[%s4152_s19 + $0x124] sm:$0xf] }
  0xf7   : > { %3893 = vmatmul.msk.bf16.vlgmr.msra.gmra.mxu3 %vm947_vm0, %v4163_v9  ;;  %1816 = vmatpush.bf16.msra.mxu2 %v3589_v38  ;;  %v3612_v38 = vld [vmem:[%s4152_s19 + $0x120] sm:$0xf] }
  0xf8   : > { %1829 = vmatpush.bf16.msra.mxu3 %v3593_v41  ;;  %1803 = vmatpush.bf16.msra.mxu1 %v3585_v43  ;;  %v2755_v50 = vpack.c.bf16 %v2640_v45, %v2639_v44  ;;  %v3614_v43 = vld [vmem:[%s4152_s19 + $0x320] sm:$0xf0] }
  0xf9   : > { %v1298_v46 = vpop.f32.mrf.mxu2 }
  0xfa   : > { %v1299_v47 = vadd.f32 %v1298_v46, %v4303_v60  ;;  %v1311_v48 = vpop.f32.mrf.mxu3  ;;  %v1274_v49 = vpop.f32.mrf.mxu0  ;;  %v2889_v54 = vrot.slane %v2755_v50, 2 }
  0xfb   : > { %v1312_v51 = vadd.f32 %v1311_v48, %v4303_v60  ;;  %v1287_v52 = vpop.f32.mrf.mxu1  ;;  %v3621_v48 = vor.u32 %v4067_v32, %v3620_v31 }
  0xfc   : > { %v2641_v9 = vmax.f32 %v1299_v47, 0.0  ;;  %v3014_v6 = vsel %vm2967_vm1, %v2755_v50, %v2889_v54  ;;  %v3613_v52 = vor.u32 %v4066_v39, %v3612_v38 }
  0xfd   : > { %v2642_v53 = vmax.f32 %v1312_v51, 0.0  ;;  %v3625_v51 = vor.u32 %v4003_v33, %v3622_v34 }
  0xff   : > { %v2756_v55 = vpack.c.bf16 %v2642_v53, %v2641_v9  ;;  %v3617_v9 = vor.u32 %v4002_v42, %v3614_v43  ;;  %v4071_v42 = vld [vmem:[%s4152_s19 + $0x344] sm:$0xf0]  ;;  %v4007_v43 = vld [vmem:[%s4152_s19 + $0x14c] sm:$0xf] }
 0x101   : > { %v2890_v61 = vrot.slane %v2756_v55, 4  ;;  %v2891_v62 = vrot.slane %v2756_v55, 6  ;;  %v1300_v63 = vpop.f32.mrf.mxu2 }
 0x102   : > { %v1313_v2 = vpop.f32.mrf.mxu3  ;;  %v1324_v3 = vpop.f32.mrf.mxu0 }
 0x103   : > { %v3017_v7 = vsel %vm2971_vm2, %v2890_v61, %v2891_v62  ;;  %v1325_v8 = vadd.f32 %v1324_v3, %v4303_v60  ;;  %v1337_v10 = vpop.f32.mrf.mxu1  ;;  %v3636_v3 = vld [vmem:[%s4152_s19 + $0x138] sm:$0xf] }
 0x104   : > { %v3018_v12 = vsel %vm2975_vm3, %v3014_v6, %v3017_v7  ;;  %v1338_v13 = vadd.f32 %v1337_v10, %v4303_v60  ;;  %v3638_v6 = vld [vmem:[%s4152_s19 + $0x338] sm:$0xf0] }
 0x105   : > { %3232 = vst [vmem:[%s4335_s25 + $0x30] sm:$0xff] %v3018_v12  ;;  %3894 = vmatmul.msk.bf16.vlgmr.msrb.gmra.mxu0 %vm947_vm0, %v4492_v16  ;;  %3895 = vmatmul.msk.bf16.vlgmr.msrb.gmra.mxu1 %vm947_vm0, %v4492_v16  ;;  %v2643_v18 = vmax.f32 %v1325_v8, 0.0  ;;  %v4068_v12 = vld [vmem:[%s4152_s19 + $0x32c] sm:$0xf0] }
 0x106   : > { %3896 = vmatmul.msk.bf16.vlgmr.msrb.gmra.mxu2 %vm947_vm0, %v4492_v16  ;;  %v2644_v19 = vmax.f32 %v1338_v13, 0.0  ;;  %1842 = vmatpush.bf16.msrb.mxu0 %v3597_v15  ;;  %v4004_v15 = vld [vmem:[%s4152_s19 + $0x134] sm:$0xf] }
 0x107   : > { %3897 = vmatmul.msk.bf16.vlgmr.msrb.gmra.mxu3 %vm947_vm0, %v4492_v16  ;;  %1868 = vmatpush.bf16.msrb.mxu2 %v3605_v11  ;;  %v3628_v11 = vld [vmem:[%s4152_s19 + $0x130] sm:$0xf] }
 0x108   : > { %1881 = vmatpush.bf16.msrb.mxu3 %v3609_v14  ;;  %1855 = vmatpush.bf16.msrb.mxu1 %v3601_v17  ;;  %v2757_v24 = vpack.c.bf16 %v2644_v19, %v2643_v18  ;;  %v3630_v17 = vld [vmem:[%s4152_s19 + $0x330] sm:$0xf0] }
 0x109   : > { %v1350_v20 = vpop.f32.mrf.mxu2 }
 0x10a   : > { %v1351_v21 = vadd.f32 %v1350_v20, %v4303_v60  ;;  %v1363_v22 = vpop.f32.mrf.mxu3  ;;  %v1326_v23 = vpop.f32.mrf.mxu0  ;;  %v2892_v29 = vrot.slane %v2757_v24, 2 }
 0x10b   : > { %v1364_v25 = vadd.f32 %v1363_v22, %v4303_v60  ;;  %v1339_v26 = vpop.f32.mrf.mxu1  ;;  %v3637_v22 = vor.u32 %v4069_v4, %v3636_v3 }
 0x10c   : > { %v2645_v27 = vmax.f32 %v1351_v21, 0.0  ;;  %v3021_v44 = vsel %vm2967_vm1, %v2757_v24, %v2892_v29  ;;  %v3629_v26 = vor.u32 %v4068_v12, %v3628_v11 }
 0x10d   : > { %v2646_v28 = vmax.f32 %v1364_v25, 0.0  ;;  %v3641_v25 = vor.u32 %v4005_v5, %v3638_v6 }
 0x10f   : > { %v2758_v30 = vpack.c.bf16 %v2646_v28, %v2645_v27  ;;  %v3633_v27 = vor.u32 %v4004_v15, %v3630_v17  ;;  %v4073_v15 = vld [vmem:[%s4152_s19 + $0x354] sm:$0xf0]  ;;  %v4009_v17 = vld [vmem:[%s4152_s19 + $0x15c] sm:$0xf] }
 0x111   : > { %v2893_v35 = vrot.slane %v2758_v30, 4  ;;  %v2894_v36 = vrot.slane %v2758_v30, 6  ;;  %v1352_v37 = vpop.f32.mrf.mxu2 }
 0x112   : > { %v1365_v40 = vpop.f32.mrf.mxu3  ;;  %v1376_v41 = vpop.f32.mrf.mxu0 }
 0x113   : > { %v3024_v45 = vsel %vm2971_vm2, %v2893_v35, %v2894_v36  ;;  %v1377_v46 = vadd.f32 %v1376_v41, %v4303_v60  ;;  %v1389_v47 = vpop.f32.mrf.mxu1  ;;  %v3652_v41 = vld [vmem:[%s4152_s19 + $0x148] sm:$0xf] }
 0x114   : > { %v3025_v49 = vsel %vm2975_vm3, %v3021_v44, %v3024_v45  ;;  %v1390_v50 = vadd.f32 %v1389_v47, %v4303_v60  ;;  %v3654_v44 = vld [vmem:[%s4152_s19 + $0x348] sm:$0xf0] }
 0x115   : > { %3233 = vst [vmem:[%s4335_s25 + $0x38] sm:$0xff] %v3025_v49  ;;  %3898 = vmatmul.msk.bf16.vlgmr.msra.gmra.mxu0 %vm947_vm0, %v4492_v16  ;;  %3899 = vmatmul.msk.bf16.vlgmr.msra.gmra.mxu1 %vm947_vm0, %v4492_v16  ;;  %v2647_v53 = vmax.f32 %v1377_v46, 0.0  ;;  %v4070_v49 = vld [vmem:[%s4152_s19 + $0x33c] sm:$0xf0] }
 0x116   : > { %3900 = vmatmul.msk.bf16.vlgmr.msra.gmra.mxu2 %vm947_vm0, %v4492_v16  ;;  %v2648_v54 = vmax.f32 %v1390_v50, 0.0  ;;  %1894 = vmatpush.bf16.msra.mxu0 %v3613_v52  ;;  %v4006_v52 = vld [vmem:[%s4152_s19 + $0x144] sm:$0xf] }
 0x117   : > { %3901 = vmatmul.msk.bf16.vlgmr.msra.gmra.mxu3 %vm947_vm0, %v4492_v16  ;;  %1920 = vmatpush.bf16.msra.mxu2 %v3621_v48  ;;  %v3644_v48 = vld [vmem:[%s4152_s19 + $0x140] sm:$0xf] }
 0x118   : > { %1933 = vmatpush.bf16.msra.mxu3 %v3625_v51  ;;  %1907 = vmatpush.bf16.msra.mxu1 %v3617_v9  ;;  %v2759_v59 = vpack.c.bf16 %v2648_v54, %v2647_v53  ;;  %v3646_v9 = vld [vmem:[%s4152_s19 + $0x340] sm:$0xf0] }
 0x119   : > { %v1402_v55 = vpop.f32.mrf.mxu2 }
 0x11a   : > { %v1403_v56 = vadd.f32 %v1402_v55, %v4303_v60  ;;  %v1415_v57 = vpop.f32.mrf.mxu3  ;;  %v1378_v58 = vpop.f32.mrf.mxu0  ;;  %v2895_v1 = vrot.slane %v2759_v59, 2 }
 0x11b   : > { %v1416_v61 = vadd.f32 %v1415_v57, %v4303_v60  ;;  %v1391_v62 = vpop.f32.mrf.mxu1  ;;  %v3653_v57 = vor.u32 %v4071_v42, %v3652_v41 }
 0x11c   : > { %v2649_v63 = vmax.f32 %v1403_v56, 0.0  ;;  %v3028_v18 = vsel %vm2967_vm1, %v2759_v59, %v2895_v1  ;;  %v3645_v62 = vor.u32 %v4070_v49, %v3644_v48 }
 0x11d   : > { %v2650_v0 = vmax.f32 %v1416_v61, 0.0  ;;  %v3657_v61 = vor.u32 %v4007_v43, %v3654_v44 }
 0x11f   : > { %v2760_v2 = vpack.c.bf16 %v2650_v0, %v2649_v63  ;;  %v3649_v63 = vor.u32 %v4006_v52, %v3646_v9  ;;  %v4075_v52 = vld [vmem:[%s4152_s19 + $0x364] sm:$0xf0]  ;;  %v4011_v9 = vld [vmem:[%s4152_s19 + $0x16c] sm:$0xf] }
 0x121   : > { %v2896_v7 = vrot.slane %v2760_v2, 4  ;;  %v2897_v8 = vrot.slane %v2760_v2, 6  ;;  %v1404_v10 = vpop.f32.mrf.mxu2 }
 0x122   : > { %v1417_v13 = vpop.f32.mrf.mxu3  ;;  %v1428_v14 = vpop.f32.mrf.mxu0 }
 0x123   : > { %v3031_v19 = vsel %vm2971_vm2, %v2896_v7, %v2897_v8  ;;  %v1429_v20 = vadd.f32 %v1428_v14, %v4303_v60  ;;  %v1441_v21 = vpop.f32.mrf.mxu1  ;;  %v3668_v14 = vld [vmem:[%s4152_s19 + $0x158] sm:$0xf] }
 0x124   : > { %v3032_v23 = vsel %vm2975_vm3, %v3028_v18, %v3031_v19  ;;  %v1442_v24 = vadd.f32 %v1441_v21, %v4303_v60  ;;  %v3670_v18 = vld [vmem:[%s4152_s19 + $0x358] sm:$0xf0] }
 0x125   : > { %3234 = vst [vmem:[%s4335_s25 + $0x40] sm:$0xff] %v3032_v23  ;;  %3902 = vmatmul.msk.bf16.vlgmr.msrb.gmra.mxu0 %vm947_vm0, %v4492_v16  ;;  %3903 = vmatmul.msk.bf16.vlgmr.msrb.gmra.mxu1 %vm947_vm0, %v4492_v16  ;;  %v2651_v28 = vmax.f32 %v1429_v20, 0.0  ;;  %v4072_v23 = vld [vmem:[%s4152_s19 + $0x34c] sm:$0xf0] }
 0x126   : > { %3904 = vmatmul.msk.bf16.vlgmr.msrb.gmra.mxu2 %vm947_vm0, %v4492_v16  ;;  %v2652_v29 = vmax.f32 %v1442_v24, 0.0  ;;  %1946 = vmatpush.bf16.msrb.mxu0 %v3629_v26  ;;  %v4008_v26 = vld [vmem:[%s4152_s19 + $0x154] sm:$0xf] }
 0x127   : > { %3905 = vmatmul.msk.bf16.vlgmr.msrb.gmra.mxu3 %vm947_vm0, %v4492_v16  ;;  %1972 = vmatpush.bf16.msrb.mxu2 %v3637_v22  ;;  %v3660_v22 = vld [vmem:[%s4152_s19 + $0x150] sm:$0xf] }
 0x128   : > { %1985 = vmatpush.bf16.msrb.mxu3 %v3641_v25  ;;  %1959 = vmatpush.bf16.msrb.mxu1 %v3633_v27  ;;  %v2761_v34 = vpack.c.bf16 %v2652_v29, %v2651_v28  ;;  %v3662_v27 = vld [vmem:[%s4152_s19 + $0x350] sm:$0xf0] }
 0x129   : > { %v1454_v30 = vpop.f32.mrf.mxu2 }
 0x12a   : > { %v1455_v31 = vadd.f32 %v1454_v30, %v4303_v60  ;;  %v1467_v32 = vpop.f32.mrf.mxu3  ;;  %v1430_v33 = vpop.f32.mrf.mxu0  ;;  %v2898_v39 = vrot.slane %v2761_v34, 2 }
 0x12b   : > { %v1468_v35 = vadd.f32 %v1467_v32, %v4303_v60  ;;  %v1443_v36 = vpop.f32.mrf.mxu1  ;;  %v3669_v32 = vor.u32 %v4073_v15, %v3668_v14 }
 0x12c   : > { %v2653_v37 = vmax.f32 %v1455_v31, 0.0  ;;  %v3035_v53 = vsel %vm2967_vm1, %v2761_v34, %v2898_v39  ;;  %v3661_v36 = vor.u32 %v4072_v23, %v3660_v22 }
 0x12d   : > { %v2654_v38 = vmax.f32 %v1468_v35, 0.0  ;;  %v3673_v35 = vor.u32 %v4009_v17, %v3670_v18 }
 0x12f   : > { %v2762_v40 = vpack.c.bf16 %v2654_v38, %v2653_v37  ;;  %v3665_v37 = vor.u32 %v4008_v26, %v3662_v27  ;;  %v4077_v26 = vld [vmem:[%s4152_s19 + $0x374] sm:$0xf0]  ;;  %v4013_v27 = vld [vmem:[%s4152_s19 + $0x17c] sm:$0xf] }
 0x131   : > { %v2899_v45 = vrot.slane %v2762_v40, 4  ;;  %v2900_v46 = vrot.slane %v2762_v40, 6  ;;  %v1456_v47 = vpop.f32.mrf.mxu2 }
 0x132   : > { %v1469_v50 = vpop.f32.mrf.mxu3  ;;  %v1480_v51 = vpop.f32.mrf.mxu0 }
 0x133   : > { %v3038_v54 = vsel %vm2971_vm2, %v2899_v45, %v2900_v46  ;;  %v1481_v55 = vadd.f32 %v1480_v51, %v4303_v60  ;;  %v1493_v56 = vpop.f32.mrf.mxu1  ;;  %v3684_v51 = vld [vmem:[%s4152_s19 + $0x168] sm:$0xf] }
 0x134   : > { %v3039_v58 = vsel %vm2975_vm3, %v3035_v53, %v3038_v54  ;;  %v1494_v59 = vadd.f32 %v1493_v56, %v4303_v60  ;;  %v3686_v53 = vld [vmem:[%s4152_s19 + $0x368] sm:$0xf0] }
 0x135   : > { %3235 = vst [vmem:[%s4335_s25 + $0x48] sm:$0xff] %v3039_v58  ;;  %3906 = vmatmul.msk.bf16.vlgmr.msra.gmra.mxu0 %vm947_vm0, %v4492_v16  ;;  %3907 = vmatmul.msk.bf16.vlgmr.msra.gmra.mxu1 %vm947_vm0, %v4492_v16  ;;  %v2655_v0 = vmax.f32 %v1481_v55, 0.0  ;;  %v4074_v58 = vld [vmem:[%s4152_s19 + $0x35c] sm:$0xf0] }
 0x136   : > { %3908 = vmatmul.msk.bf16.vlgmr.msra.gmra.mxu2 %vm947_vm0, %v4492_v16  ;;  %v2656_v1 = vmax.f32 %v1494_v59, 0.0  ;;  %1998 = vmatpush.bf16.msra.mxu0 %v3645_v62  ;;  %v4010_v62 = vld [vmem:[%s4152_s19 + $0x164] sm:$0xf] }
 0x137   : > { %3909 = vmatmul.msk.bf16.vlgmr.msra.gmra.mxu3 %vm947_vm0, %v4492_v16  ;;  %2024 = vmatpush.bf16.msra.mxu2 %v3653_v57  ;;  %v3676_v57 = vld [vmem:[%s4152_s19 + $0x160] sm:$0xf] }
 0x138   : > { %2037 = vmatpush.bf16.msra.mxu3 %v3657_v61  ;;  %2011 = vmatpush.bf16.msra.mxu1 %v3649_v63  ;;  %v2763_v6 = vpack.c.bf16 %v2656_v1, %v2655_v0  ;;  %v3678_v63 = vld [vmem:[%s4152_s19 + $0x360] sm:$0xf0] }
 0x139   : > { %v1506_v2 = vpop.f32.mrf.mxu2 }
 0x13a   : > { %v1507_v3 = vadd.f32 %v1506_v2, %v4303_v60  ;;  %v1519_v4 = vpop.f32.mrf.mxu3  ;;  %v1482_v5 = vpop.f32.mrf.mxu0  ;;  %v2901_v12 = vrot.slane %v2763_v6, 2 }
 0x13b   : > { %v1520_v7 = vadd.f32 %v1519_v4, %v4303_v60  ;;  %v1495_v8 = vpop.f32.mrf.mxu1  ;;  %v3685_v4 = vor.u32 %v4075_v52, %v3684_v51 }
 0x13c   : > { %v2657_v10 = vmax.f32 %v1507_v3, 0.0  ;;  %v3042_v28 = vsel %vm2967_vm1, %v2763_v6, %v2901_v12  ;;  %v3677_v8 = vor.u32 %v4074_v58, %v3676_v57 }
 0x13d   : > { %v2658_v11 = vmax.f32 %v1520_v7, 0.0  ;;  %v3689_v7 = vor.u32 %v4011_v9, %v3686_v53 }
 0x13f   : > { %v2764_v13 = vpack.c.bf16 %v2658_v11, %v2657_v10  ;;  %v3681_v10 = vor.u32 %v4010_v62, %v3678_v63  ;;  %v4079_v62 = vld [vmem:[%s4152_s19 + $0x384] sm:$0xf0]  ;;  %v4015_v63 = vld [vmem:[%s4152_s19 + $0x18c] sm:$0xf] }
 0x141   : > { %v2902_v19 = vrot.slane %v2764_v13, 4  ;;  %v2903_v20 = vrot.slane %v2764_v13, 6  ;;  %v1508_v21 = vpop.f32.mrf.mxu2 }
 0x142   : > { %v1521_v24 = vpop.f32.mrf.mxu3  ;;  %v1532_v25 = vpop.f32.mrf.mxu0 }
 0x143   : > { %v3045_v29 = vsel %vm2971_vm2, %v2902_v19, %v2903_v20  ;;  %v1533_v30 = vadd.f32 %v1532_v25, %v4303_v60  ;;  %v1545_v31 = vpop.f32.mrf.mxu1  ;;  %v3700_v25 = vld [vmem:[%s4152_s19 + $0x178] sm:$0xf] }
 0x144   : > { %v3046_v33 = vsel %vm2975_vm3, %v3042_v28, %v3045_v29  ;;  %v1546_v34 = vadd.f32 %v1545_v31, %v4303_v60  ;;  %v3702_v28 = vld [vmem:[%s4152_s19 + $0x378] sm:$0xf0] }
 0x145   : > { %3236 = vst [vmem:[%s4335_s25 + $0x50] sm:$0xff] %v3046_v33  ;;  %3910 = vmatmul.msk.bf16.vlgmr.msrb.gmra.mxu0 %vm947_vm0, %v4492_v16  ;;  %3911 = vmatmul.msk.bf16.vlgmr.msrb.gmra.mxu1 %vm947_vm0, %v4492_v16  ;;  %v2659_v38 = vmax.f32 %v1533_v30, 0.0  ;;  %v4076_v33 = vld [vmem:[%s4152_s19 + $0x36c] sm:$0xf0] }
 0x146   : > { %3912 = vmatmul.msk.bf16.vlgmr.msrb.gmra.mxu2 %vm947_vm0, %v4492_v16  ;;  %v2660_v39 = vmax.f32 %v1546_v34, 0.0  ;;  %2050 = vmatpush.bf16.msrb.mxu0 %v3661_v36  ;;  %v4012_v36 = vld [vmem:[%s4152_s19 + $0x174] sm:$0xf] }
 0x147   : > { %3913 = vmatmul.msk.bf16.vlgmr.msrb.gmra.mxu3 %vm947_vm0, %v4492_v16  ;;  %2076 = vmatpush.bf16.msrb.mxu2 %v3669_v32  ;;  %v3692_v32 = vld [vmem:[%s4152_s19 + $0x170] sm:$0xf] }
 0x148   : > { %2089 = vmatpush.bf16.msrb.mxu3 %v3673_v35  ;;  %2063 = vmatpush.bf16.msrb.mxu1 %v3665_v37  ;;  %v2765_v44 = vpack.c.bf16 %v2660_v39, %v2659_v38  ;;  %v3694_v37 = vld [vmem:[%s4152_s19 + $0x370] sm:$0xf0] }
 0x149   : > { %v1558_v40 = vpop.f32.mrf.mxu2 }
 0x14a   : > { %v1559_v41 = vadd.f32 %v1558_v40, %v4303_v60  ;;  %v1571_v42 = vpop.f32.mrf.mxu3  ;;  %v1534_v43 = vpop.f32.mrf.mxu0  ;;  %v2904_v49 = vrot.slane %v2765_v44, 2 }
 0x14b   : > { %v1572_v45 = vadd.f32 %v1571_v42, %v4303_v60  ;;  %v1547_v46 = vpop.f32.mrf.mxu1  ;;  %v3701_v42 = vor.u32 %v4077_v26, %v3700_v25 }
 0x14c   : > { %v2661_v47 = vmax.f32 %v1559_v41, 0.0  ;;  %v3049_v0 = vsel %vm2967_vm1, %v2765_v44, %v2904_v49  ;;  %v3693_v46 = vor.u32 %v4076_v33, %v3692_v32 }
 0x14d   : > { %v2662_v48 = vmax.f32 %v1572_v45, 0.0  ;;  %v3705_v45 = vor.u32 %v4013_v27, %v3702_v28 }
 0x14f   : > { %v2766_v50 = vpack.c.bf16 %v2662_v48, %v2661_v47  ;;  %v3697_v47 = vor.u32 %v4012_v36, %v3694_v37  ;;  %v4081_v36 = vld [vmem:[%s4152_s19 + $0x394] sm:$0xf0]  ;;  %v4017_v37 = vld [vmem:[%s4152_s19 + $0x19c] sm:$0xf] }
 0x151   : > { %v2905_v54 = vrot.slane %v2766_v50, 4  ;;  %v2906_v55 = vrot.slane %v2766_v50, 6  ;;  %v1560_v56 = vpop.f32.mrf.mxu2 }
 0x152   : > { %v1573_v59 = vpop.f32.mrf.mxu3  ;;  %v1584_v61 = vpop.f32.mrf.mxu0 }
 0x153   : > { %v3052_v1 = vsel %vm2971_vm2, %v2905_v54, %v2906_v55  ;;  %v1585_v2 = vadd.f32 %v1584_v61, %v4303_v60  ;;  %v1597_v3 = vpop.f32.mrf.mxu1  ;;  %v3716_v61 = vld [vmem:[%s4152_s19 + $0x188] sm:$0xf] }
 0x154   : > { %v3053_v5 = vsel %vm2975_vm3, %v3049_v0, %v3052_v1  ;;  %v1598_v6 = vadd.f32 %v1597_v3, %v4303_v60  ;;  %v3718_v0 = vld [vmem:[%s4152_s19 + $0x388] sm:$0xf0] }
 0x155   : > { %3237 = vst [vmem:[%s4335_s25 + $0x58] sm:$0xff] %v3053_v5  ;;  %3914 = vmatmul.msk.bf16.vlgmr.msra.gmra.mxu0 %vm947_vm0, %v4492_v16  ;;  %3915 = vmatmul.msk.bf16.vlgmr.msra.gmra.mxu1 %vm947_vm0, %v4492_v16  ;;  %v2663_v11 = vmax.f32 %v1585_v2, 0.0  ;;  %v4078_v5 = vld [vmem:[%s4152_s19 + $0x37c] sm:$0xf0] }
 0x156   : > { %3916 = vmatmul.msk.bf16.vlgmr.msra.gmra.mxu2 %vm947_vm0, %v4492_v16  ;;  %v2664_v12 = vmax.f32 %v1598_v6, 0.0  ;;  %2102 = vmatpush.bf16.msra.mxu0 %v3677_v8  ;;  %v4014_v8 = vld [vmem:[%s4152_s19 + $0x184] sm:$0xf] }
 0x157   : > { %3917 = vmatmul.msk.bf16.vlgmr.msra.gmra.mxu3 %vm947_vm0, %v4492_v16  ;;  %2128 = vmatpush.bf16.msra.mxu2 %v3685_v4  ;;  %v3708_v4 = vld [vmem:[%s4152_s19 + $0x180] sm:$0xf] }
 0x158   : > { %2141 = vmatpush.bf16.msra.mxu3 %v3689_v7  ;;  %2115 = vmatpush.bf16.msra.mxu1 %v3681_v10  ;;  %v2767_v18 = vpack.c.bf16 %v2664_v12, %v2663_v11  ;;  %v3710_v10 = vld [vmem:[%s4152_s19 + $0x380] sm:$0xf0] }
 0x159   : > { %v1610_v13 = vpop.f32.mrf.mxu2 }
 0x15a   : > { %v1611_v14 = vadd.f32 %v1610_v13, %v4303_v60  ;;  %v1623_v15 = vpop.f32.mrf.mxu3  ;;  %v1586_v17 = vpop.f32.mrf.mxu0  ;;  %v2907_v23 = vrot.slane %v2767_v18, 2 }
 0x15b   : > { %v1624_v19 = vadd.f32 %v1623_v15, %v4303_v60  ;;  %v1599_v20 = vpop.f32.mrf.mxu1  ;;  %v3717_v15 = vor.u32 %v4079_v62, %v3716_v61 }
 0x15c   : > { %v2665_v21 = vmax.f32 %v1611_v14, 0.0  ;;  %v3056_v38 = vsel %vm2967_vm1, %v2767_v18, %v2907_v23  ;;  %v3709_v20 = vor.u32 %v4078_v5, %v3708_v4 }
 0x15d   : > { %v2666_v22 = vmax.f32 %v1624_v19, 0.0  ;;  %v3721_v19 = vor.u32 %v4015_v63, %v3718_v0 }
 0x15f   : > { %v2768_v24 = vpack.c.bf16 %v2666_v22, %v2665_v21  ;;  %v3713_v21 = vor.u32 %v4014_v8, %v3710_v10  ;;  %v4083_v8 = vld [vmem:[%s4152_s19 + $0x3a4] sm:$0xf0]  ;;  %v4019_v10 = vld [vmem:[%s4152_s19 + $0x1ac] sm:$0xf] }
 0x161   : > { %v2908_v29 = vrot.slane %v2768_v24, 4  ;;  %v2909_v30 = vrot.slane %v2768_v24, 6  ;;  %v1612_v31 = vpop.f32.mrf.mxu2 }
 0x162   : > { %v1625_v34 = vpop.f32.mrf.mxu3  ;;  %v1636_v35 = vpop.f32.mrf.mxu0 }
 0x163   : > { %v3059_v39 = vsel %vm2971_vm2, %v2908_v29, %v2909_v30  ;;  %v1637_v40 = vadd.f32 %v1636_v35, %v4303_v60  ;;  %v1649_v41 = vpop.f32.mrf.mxu1  ;;  %v3732_v35 = vld [vmem:[%s4152_s19 + $0x198] sm:$0xf] }
 0x164   : > { %v3060_v43 = vsel %vm2975_vm3, %v3056_v38, %v3059_v39  ;;  %v1650_v44 = vadd.f32 %v1649_v41, %v4303_v60  ;;  %v3734_v38 = vld [vmem:[%s4152_s19 + $0x398] sm:$0xf0] }
 0x165   : > { %3238 = vst [vmem:[%s4335_s25 + $0x60] sm:$0xff] %v3060_v43  ;;  %3918 = vmatmul.msk.bf16.vlgmr.msrb.gmra.mxu0 %vm947_vm0, %v4492_v16  ;;  %3919 = vmatmul.msk.bf16.vlgmr.msrb.gmra.mxu1 %vm947_vm0, %v4492_v16  ;;  %v2667_v48 = vmax.f32 %v1637_v40, 0.0  ;;  %v4080_v43 = vld [vmem:[%s4152_s19 + $0x38c] sm:$0xf0] }
 0x166   : > { %3920 = vmatmul.msk.bf16.vlgmr.msrb.gmra.mxu2 %vm947_vm0, %v4492_v16  ;;  %v2668_v49 = vmax.f32 %v1650_v44, 0.0  ;;  %2154 = vmatpush.bf16.msrb.mxu0 %v3693_v46  ;;  %v4016_v46 = vld [vmem:[%s4152_s19 + $0x194] sm:$0xf] }
 0x167   : > { %3921 = vmatmul.msk.bf16.vlgmr.msrb.gmra.mxu3 %vm947_vm0, %v4492_v16  ;;  %2180 = vmatpush.bf16.msrb.mxu2 %v3701_v42  ;;  %v3724_v42 = vld [vmem:[%s4152_s19 + $0x190] sm:$0xf] }
 0x168   : > { %2193 = vmatpush.bf16.msrb.mxu3 %v3705_v45  ;;  %2167 = vmatpush.bf16.msrb.mxu1 %v3697_v47  ;;  %v2769_v53 = vpack.c.bf16 %v2668_v49, %v2667_v48  ;;  %v3726_v47 = vld [vmem:[%s4152_s19 + $0x390] sm:$0xf0] }
 0x169   : > { %v1662_v50 = vpop.f32.mrf.mxu2 }
 0x16a   : > { %v1663_v51 = vadd.f32 %v1662_v50, %v4303_v60  ;;  %v1675_v52 = vpop.f32.mrf.mxu3  ;;  %v1638_v9 = vpop.f32.mrf.mxu0  ;;  %v2910_v58 = vrot.slane %v2769_v53, 2 }
 0x16b   : > { %v1676_v54 = vadd.f32 %v1675_v52, %v4303_v60  ;;  %v1651_v55 = vpop.f32.mrf.mxu1  ;;  %v3733_v52 = vor.u32 %v4081_v36, %v3732_v35 }
 0x16c   : > { %v2669_v56 = vmax.f32 %v1663_v51, 0.0  ;;  %v3063_v11 = vsel %vm2967_vm1, %v2769_v53, %v2910_v58  ;;  %v3725_v55 = vor.u32 %v4080_v43, %v3724_v42 }
 0x16d   : > { %v2670_v57 = vmax.f32 %v1676_v54, 0.0  ;;  %v3737_v54 = vor.u32 %v4017_v37, %v3734_v38 }
 0x16f   : > { %v2770_v59 = vpack.c.bf16 %v2670_v57, %v2669_v56  ;;  %v3729_v56 = vor.u32 %v4016_v46, %v3726_v47  ;;  %v4085_v46 = vld [vmem:[%s4152_s19 + $0x3b4] sm:$0xf0]  ;;  %v4021_v47 = vld [vmem:[%s4152_s19 + $0x1bc] sm:$0xf] }
 0x171   : > { %v2911_v1 = vrot.slane %v2770_v59, 4  ;;  %v2912_v2 = vrot.slane %v2770_v59, 6  ;;  %v1664_v3 = vpop.f32.mrf.mxu2 }
 0x172   : > { %v1677_v6 = vpop.f32.mrf.mxu3  ;;  %v1688_v7 = vpop.f32.mrf.mxu0 }
 0x173   : > { %v3066_v12 = vsel %vm2971_vm2, %v2911_v1, %v2912_v2  ;;  %v1689_v13 = vadd.f32 %v1688_v7, %v4303_v60  ;;  %v1701_v14 = vpop.f32.mrf.mxu1  ;;  %v3748_v7 = vld [vmem:[%s4152_s19 + $0x1a8] sm:$0xf] }
 0x174   : > { %v3067_v17 = vsel %vm2975_vm3, %v3063_v11, %v3066_v12  ;;  %v1702_v18 = vadd.f32 %v1701_v14, %v4303_v60  ;;  %v3750_v11 = vld [vmem:[%s4152_s19 + $0x3a8] sm:$0xf0] }
 0x175   : > { %3239 = vst [vmem:[%s4335_s25 + $0x68] sm:$0xff] %v3067_v17  ;;  %3922 = vmatmul.msk.bf16.vlgmr.msra.gmra.mxu0 %vm947_vm0, %v4492_v16  ;;  %3923 = vmatmul.msk.bf16.vlgmr.msra.gmra.mxu1 %vm947_vm0, %v4492_v16  ;;  %v2671_v22 = vmax.f32 %v1689_v13, 0.0  ;;  %v4082_v17 = vld [vmem:[%s4152_s19 + $0x39c] sm:$0xf0] }
 0x176   : > { %3924 = vmatmul.msk.bf16.vlgmr.msra.gmra.mxu2 %vm947_vm0, %v4492_v16  ;;  %v2672_v23 = vmax.f32 %v1702_v18, 0.0  ;;  %2206 = vmatpush.bf16.msra.mxu0 %v3709_v20  ;;  %v4018_v20 = vld [vmem:[%s4152_s19 + $0x1a4] sm:$0xf] }
 0x177   : > { %3925 = vmatmul.msk.bf16.vlgmr.msra.gmra.mxu3 %vm947_vm0, %v4492_v16  ;;  %2232 = vmatpush.bf16.msra.mxu2 %v3717_v15  ;;  %v3740_v15 = vld [vmem:[%s4152_s19 + $0x1a0] sm:$0xf] }
 0x178   : > { %2245 = vmatpush.bf16.msra.mxu3 %v3721_v19  ;;  %2219 = vmatpush.bf16.msra.mxu1 %v3713_v21  ;;  %v2771_v28 = vpack.c.bf16 %v2672_v23, %v2671_v22  ;;  %v3742_v21 = vld [vmem:[%s4152_s19 + $0x3a0] sm:$0xf0] }
 0x179   : > { %v1714_v24 = vpop.f32.mrf.mxu2 }
 0x17a   : > { %v1715_v25 = vadd.f32 %v1714_v24, %v4303_v60  ;;  %v1727_v26 = vpop.f32.mrf.mxu3  ;;  %v1690_v27 = vpop.f32.mrf.mxu0  ;;  %v2913_v33 = vrot.slane %v2771_v28, 2 }
 0x17b   : > { %v1728_v29 = vadd.f32 %v1727_v26, %v4303_v60  ;;  %v1703_v30 = vpop.f32.mrf.mxu1  ;;  %v3749_v26 = vor.u32 %v4083_v8, %v3748_v7 }
 0x17c   : > { %v2673_v31 = vmax.f32 %v1715_v25, 0.0  ;;  %v3070_v48 = vsel %vm2967_vm1, %v2771_v28, %v2913_v33  ;;  %v3741_v30 = vor.u32 %v4082_v17, %v3740_v15 }
 0x17d   : > { %v2674_v32 = vmax.f32 %v1728_v29, 0.0  ;;  %v3753_v29 = vor.u32 %v4019_v10, %v3750_v11 }
 0x17f   : > { %v2772_v34 = vpack.c.bf16 %v2674_v32, %v2673_v31  ;;  %v3745_v31 = vor.u32 %v4018_v20, %v3742_v21  ;;  %v4087_v20 = vld [vmem:[%s4152_s19 + $0x3c4] sm:$0xf0]  ;;  %v4023_v21 = vld [vmem:[%s4152_s19 + $0x1cc] sm:$0xf] }
 0x181   : > { %v2914_v39 = vrot.slane %v2772_v34, 4  ;;  %v2915_v40 = vrot.slane %v2772_v34, 6  ;;  %v1716_v41 = vpop.f32.mrf.mxu2 }
 0x182   : > { %v1729_v44 = vpop.f32.mrf.mxu3  ;;  %v1740_v45 = vpop.f32.mrf.mxu0 }
 0x183   : > { %v3073_v49 = vsel %vm2971_vm2, %v2914_v39, %v2915_v40  ;;  %v1741_v50 = vadd.f32 %v1740_v45, %v4303_v60  ;;  %v1753_v51 = vpop.f32.mrf.mxu1  ;;  %v3764_v45 = vld [vmem:[%s4152_s19 + $0x1b8] sm:$0xf] }
 0x184   : > { %v3074_v9 = vsel %vm2975_vm3, %v3070_v48, %v3073_v49  ;;  %v1754_v53 = vadd.f32 %v1753_v51, %v4303_v60  ;;  %v3766_v48 = vld [vmem:[%s4152_s19 + $0x3b8] sm:$0xf0] }
 0x185   : > { %3240 = vst [vmem:[%s4335_s25 + $0x70] sm:$0xff] %v3074_v9  ;;  %3926 = vmatmul.msk.bf16.vlgmr.msrb.gmra.mxu0 %vm947_vm0, %v4492_v16  ;;  %3927 = vmatmul.msk.bf16.vlgmr.msrb.gmra.mxu1 %vm947_vm0, %v4492_v16  ;;  %v2675_v57 = vmax.f32 %v1741_v50, 0.0  ;;  %v4084_v9 = vld [vmem:[%s4152_s19 + $0x3ac] sm:$0xf0] }
 0x186   : > { %3928 = vmatmul.msk.bf16.vlgmr.msrb.gmra.mxu2 %vm947_vm0, %v4492_v16  ;;  %v2676_v58 = vmax.f32 %v1754_v53, 0.0  ;;  %2258 = vmatpush.bf16.msrb.mxu0 %v3725_v55  ;;  %v4020_v55 = vld [vmem:[%s4152_s19 + $0x1b4] sm:$0xf] }
 0x187   : > { %3929 = vmatmul.msk.bf16.vlgmr.msrb.gmra.mxu3 %vm947_vm0, %v4492_v16  ;;  %2284 = vmatpush.bf16.msrb.mxu2 %v3733_v52  ;;  %v3756_v52 = vld [vmem:[%s4152_s19 + $0x1b0] sm:$0xf] }
 0x188   : > { %2297 = vmatpush.bf16.msrb.mxu3 %v3737_v54  ;;  %2271 = vmatpush.bf16.msrb.mxu1 %v3729_v56  ;;  %v2773_v0 = vpack.c.bf16 %v2676_v58, %v2675_v57  ;;  %v3758_v56 = vld [vmem:[%s4152_s19 + $0x3b0] sm:$0xf0] }
 0x189   : > { %v1766_v59 = vpop.f32.mrf.mxu2 }
 0x18a   : > { %v1767_v61 = vadd.f32 %v1766_v59, %v4303_v60  ;;  %v1779_v62 = vpop.f32.mrf.mxu3  ;;  %v1742_v63 = vpop.f32.mrf.mxu0  ;;  %v2916_v5 = vrot.slane %v2773_v0, 2 }
 0x18b   : > { %v1780_v1 = vadd.f32 %v1779_v62, %v4303_v60  ;;  %v1755_v2 = vpop.f32.mrf.mxu1  ;;  %v3765_v62 = vor.u32 %v4085_v46, %v3764_v45 }
 0x18c   : > { %v2677_v3 = vmax.f32 %v1767_v61, 0.0  ;;  %v3077_v22 = vsel %vm2967_vm1, %v2773_v0, %v2916_v5  ;;  %v3757_v2 = vor.u32 %v4084_v9, %v3756_v52 }
 0x18d   : > { %v2678_v4 = vmax.f32 %v1780_v1, 0.0  ;;  %v3769_v1 = vor.u32 %v4021_v47, %v3766_v48 }
 0x18f   : > { %v2774_v6 = vpack.c.bf16 %v2678_v4, %v2677_v3  ;;  %v3761_v3 = vor.u32 %v4020_v55, %v3758_v56  ;;  %v4025_v55 = vld [vmem:[%s4152_s19 + $0x1dc] sm:$0xf] }
 0x190   : > { %v3798_v56 = vld [vmem:[%s4152_s19 + $0x3d8] sm:$0xf0] }
 0x191   : > { %v2917_v12 = vrot.slane %v2774_v6, 4  ;;  %v2918_v13 = vrot.slane %v2774_v6, 6  ;;  %v1768_v14 = vpop.f32.mrf.mxu2 }
 0x192   : > { %v1781_v18 = vpop.f32.mrf.mxu3  ;;  %v1792_v19 = vpop.f32.mrf.mxu0 }
 0x193   : > { %v3080_v23 = vsel %vm2971_vm2, %v2917_v12, %v2918_v13  ;;  %v1793_v24 = vadd.f32 %v1792_v19, %v4303_v60  ;;  %v1805_v25 = vpop.f32.mrf.mxu1  ;;  %v3780_v19 = vld [vmem:[%s4152_s19 + $0x1c8] sm:$0xf] }
 0x194   : > { %v3081_v27 = vsel %vm2975_vm3, %v3077_v22, %v3080_v23  ;;  %v1806_v28 = vadd.f32 %v1805_v25, %v4303_v60  ;;  %v3782_v22 = vld [vmem:[%s4152_s19 + $0x3c8] sm:$0xf0] }
 0x195   : > { %3241 = vst [vmem:[%s4335_s25 + $0x78] sm:$0xff] %v3081_v27  ;;  %3930 = vmatmul.msk.bf16.vlgmr.msra.gmra.mxu0 %vm947_vm0, %v4492_v16  ;;  %3931 = vmatmul.msk.bf16.vlgmr.msra.gmra.mxu1 %vm947_vm0, %v4492_v16  ;;  %v2679_v32 = vmax.f32 %v1793_v24, 0.0  ;;  %v4086_v27 = vld [vmem:[%s4152_s19 + $0x3bc] sm:$0xf0] }
 0x196   : > { %3932 = vmatmul.msk.bf16.vlgmr.msra.gmra.mxu2 %vm947_vm0, %v4492_v16  ;;  %v2680_v33 = vmax.f32 %v1806_v28, 0.0  ;;  %2310 = vmatpush.bf16.msra.mxu0 %v3741_v30  ;;  %v4022_v30 = vld [vmem:[%s4152_s19 + $0x1c4] sm:$0xf] }
 0x197   : > { %3933 = vmatmul.msk.bf16.vlgmr.msra.gmra.mxu3 %vm947_vm0, %v4492_v16  ;;  %2336 = vmatpush.bf16.msra.mxu2 %v3749_v26  ;;  %v3772_v26 = vld [vmem:[%s4152_s19 + $0x1c0] sm:$0xf] }
 0x198   : > { %2349 = vmatpush.bf16.msra.mxu3 %v3753_v29  ;;  %2323 = vmatpush.bf16.msra.mxu1 %v3745_v31  ;;  %v2775_v38 = vpack.c.bf16 %v2680_v33, %v2679_v32  ;;  %v3774_v31 = vld [vmem:[%s4152_s19 + $0x3c0] sm:$0xf0] }
 0x199   : > { %v1818_v34 = vpop.f32.mrf.mxu2 }
 0x19a   : > { %v1819_v35 = vadd.f32 %v1818_v34, %v4303_v60  ;;  %v1831_v36 = vpop.f32.mrf.mxu3  ;;  %v1794_v37 = vpop.f32.mrf.mxu0  ;;  %v2919_v43 = vrot.slane %v2775_v38, 2 }
 0x19b   : > { %v1832_v39 = vadd.f32 %v1831_v36, %v4303_v60  ;;  %v1807_v40 = vpop.f32.mrf.mxu1  ;;  %v3781_v36 = vor.u32 %v4087_v20, %v3780_v19 }
 0x19c   : > { %v2681_v41 = vmax.f32 %v1819_v35, 0.0  ;;  %v3084_v57 = vsel %vm2967_vm1, %v2775_v38, %v2919_v43  ;;  %v3773_v40 = vor.u32 %v4086_v27, %v3772_v26 }
 0x19d   : > { %v2682_v42 = vmax.f32 %v1832_v39, 0.0  ;;  %v3785_v39 = vor.u32 %v4023_v21, %v3782_v22 }
 0x19f   : > { %v2776_v44 = vpack.c.bf16 %v2682_v42, %v2681_v41  ;;  %v3777_v41 = vor.u32 %v4022_v30, %v3774_v31  ;;  %v4091_v30 = vld [vmem:[%s4152_s19 + $0x3e4] sm:$0xf0]  ;;  %v4027_v31 = vld [vmem:[%s4152_s19 + $0x1ec] sm:$0xf] }
 0x1a1   : > { %v2920_v49 = vrot.slane %v2776_v44, 4  ;;  %v2921_v50 = vrot.slane %v2776_v44, 6  ;;  %v1820_v51 = vpop.f32.mrf.mxu2 }
 0x1a2   : > { %v1833_v53 = vpop.f32.mrf.mxu3  ;;  %v1844_v54 = vpop.f32.mrf.mxu0 }
 0x1a3   : > { %v3087_v58 = vsel %vm2971_vm2, %v2920_v49, %v2921_v50  ;;  %v1845_v59 = vadd.f32 %v1844_v54, %v4303_v60  ;;  %v1857_v61 = vpop.f32.mrf.mxu1  ;;  %v3796_v53 = vld [vmem:[%s4152_s19 + $0x1d8] sm:$0xf] }
 0x1a4   : > { %v3088_v63 = vsel %vm2975_vm3, %v3084_v57, %v3087_v58  ;;  %v1858_v0 = vadd.f32 %v1857_v61, %v4303_v60  ;;  %v4089_v54 = vld [vmem:[%s4152_s19 + $0x3d4] sm:$0xf0]  ;;  %v3788_v61 = vld [vmem:[%s4152_s19 + $0x1d0] sm:$0xf] }
 0x1a5   : > { %3242 = vst [vmem:[%s4335_s25 + $0x80] sm:$0xff] %v3088_v63  ;;  %3934 = vmatmul.msk.bf16.vlgmr.msrb.gmra.mxu0 %vm947_vm0, %v4492_v16  ;;  %3935 = vmatmul.msk.bf16.vlgmr.msrb.gmra.mxu1 %vm947_vm0, %v4492_v16  ;;  %v2683_v4 = vmax.f32 %v1845_v59, 0.0 }
 0x1a6   : > { %3936 = vmatmul.msk.bf16.vlgmr.msrb.gmra.mxu2 %vm947_vm0, %v4492_v16  ;;  %v2684_v5 = vmax.f32 %v1858_v0, 0.0  ;;  %2362 = vmatpush.bf16.msrb.mxu0 %v3757_v2  ;;  %v3790_v2 = vld [vmem:[%s4152_s19 + $0x3d0] sm:$0xf0] }
 0x1a7   : > { %3937 = vmatmul.msk.bf16.vlgmr.msrb.gmra.mxu3 %vm947_vm0, %v4492_v16  ;;  %2388 = vmatpush.bf16.msrb.mxu2 %v3765_v62  ;;  %v4088_v62 = vld [vmem:[%s4152_s19 + $0x3cc] sm:$0xf0] }
 0x1a8   : > { %2401 = vmatpush.bf16.msrb.mxu3 %v3769_v1  ;;  %2375 = vmatpush.bf16.msrb.mxu1 %v3761_v3  ;;  %v2777_v11 = vpack.c.bf16 %v2684_v5, %v2683_v4  ;;  %v4024_v1 = vld [vmem:[%s4152_s19 + $0x1d4] sm:$0xf] }
 0x1a9   : > { %v1870_v6 = vpop.f32.mrf.mxu2 }
 0x1aa   : > { %v1871_v7 = vadd.f32 %v1870_v6, %v4303_v60  ;;  %v1883_v8 = vpop.f32.mrf.mxu3  ;;  %v1846_v10 = vpop.f32.mrf.mxu0  ;;  %v2922_v17 = vrot.slane %v2777_v11, 2 }
 0x1ab   : > { %v1884_v12 = vadd.f32 %v1883_v8, %v4303_v60  ;;  %v1859_v13 = vpop.f32.mrf.mxu1 }
 0x1ac   : > { %v2685_v14 = vmax.f32 %v1871_v7, 0.0  ;;  %v3091_v32 = vsel %vm2967_vm1, %v2777_v11, %v2922_v17  ;;  %v3797_v7 = vor.u32 %v4089_v54, %v3796_v53  ;;  %v3801_v11 = vor.u32 %v4025_v55, %v3798_v56  ;;  %v4785_v13 = vld [vmem:[%s4949_s1] sm:$0x3] }
 0x1ad   : > { %v2686_v15 = vmax.f32 %v1884_v12, 0.0  ;;  %v3789_v12 = vor.u32 %v4088_v62, %v3788_v61 }
 0x1af   : > { %v2778_v18 = vpack.c.bf16 %v2686_v15, %v2685_v14  ;;  %v3793_v14 = vor.u32 %v4024_v1, %v3790_v2  ;;  %v4093_v1 = vld [vmem:[%s4152_s19 + $0x3f4] sm:$0xf0]  ;;  %v4029_v2 = vld [vmem:[%s4152_s19 + $0x1fc] sm:$0xf] }
 0x1b1   : > { %v2923_v23 = vrot.slane %v2778_v18, 4  ;;  %v2924_v24 = vrot.slane %v2778_v18, 6  ;;  %v1872_v25 = vpop.f32.mrf.mxu2 }
 0x1b2   : > { %v1885_v28 = vpop.f32.mrf.mxu3  ;;  %v1896_v29 = vpop.f32.mrf.mxu0 }
 0x1b3   : > { %v3094_v33 = vsel %vm2971_vm2, %v2923_v23, %v2924_v24  ;;  %v1897_v34 = vadd.f32 %v1896_v29, %v4303_v60  ;;  %v1909_v35 = vpop.f32.mrf.mxu1  ;;  %v3812_v29 = vld [vmem:[%s4152_s19 + $0x1e8] sm:$0xf] }
 0x1b4   : > { %v3095_v37 = vsel %vm2975_vm3, %v3091_v32, %v3094_v33  ;;  %v1910_v38 = vadd.f32 %v1909_v35, %v4303_v60  ;;  %v3814_v32 = vld [vmem:[%s4152_s19 + $0x3e8] sm:$0xf0] }
 0x1b5   : > { %3243 = vst [vmem:[%s4335_s25 + $0x88] sm:$0xff] %v3095_v37  ;;  %3938 = vmatmul.msk.bf16.vlgmr.msra.gmra.mxu0 %vm947_vm0, %v4492_v16  ;;  %3939 = vmatmul.msk.bf16.vlgmr.msra.gmra.mxu1 %vm947_vm0, %v4492_v16  ;;  %v2687_v42 = vmax.f32 %v1897_v34, 0.0  ;;  %v4090_v37 = vld [vmem:[%s4152_s19 + $0x3dc] sm:$0xf0] }
 0x1b6   : > { %3940 = vmatmul.msk.bf16.vlgmr.msra.gmra.mxu2 %vm947_vm0, %v4492_v16  ;;  %v2688_v43 = vmax.f32 %v1910_v38, 0.0  ;;  %2414 = vmatpush.bf16.msra.mxu0 %v3773_v40  ;;  %v4026_v40 = vld [vmem:[%s4152_s19 + $0x1e4] sm:$0xf] }
 0x1b7   : > { %3941 = vmatmul.msk.bf16.vlgmr.msra.gmra.mxu3 %vm947_vm0, %v4492_v16  ;;  %2440 = vmatpush.bf16.msra.mxu2 %v3781_v36  ;;  %v3804_v36 = vld [vmem:[%s4152_s19 + $0x1e0] sm:$0xf] }
 0x1b8   : > { %2453 = vmatpush.bf16.msra.mxu3 %v3785_v39  ;;  %2427 = vmatpush.bf16.msra.mxu1 %v3777_v41  ;;  %v2779_v48 = vpack.c.bf16 %v2688_v43, %v2687_v42  ;;  %v3806_v41 = vld [vmem:[%s4152_s19 + $0x3e0] sm:$0xf0] }
 0x1b9   : > { %v1922_v44 = vpop.f32.mrf.mxu2 }
 0x1ba   : > { %v1923_v45 = vadd.f32 %v1922_v44, %v4303_v60  ;;  %v1935_v46 = vpop.f32.mrf.mxu3  ;;  %v1898_v47 = vpop.f32.mrf.mxu0  ;;  %v2925_v52 = vrot.slane %v2779_v48, 2 }
 0x1bb   : > { %v1936_v49 = vadd.f32 %v1935_v46, %v4303_v60  ;;  %v1911_v50 = vpop.f32.mrf.mxu1  ;;  %v3813_v46 = vor.u32 %v4091_v30, %v3812_v29 }
 0x1bc   : > { %v2689_v16 = vmax.f32 %v1923_v45, 0.0  ;;  %v3098_v3 = vsel %vm2967_vm1, %v2779_v48, %v2925_v52  ;;  %v3805_v50 = vor.u32 %v4090_v37, %v3804_v36 }
 0x1bd   : > { %v2690_v51 = vmax.f32 %v1936_v49, 0.0  ;;  %v3817_v49 = vor.u32 %v4027_v31, %v3814_v32 }
 0x1bf   : > { %v2780_v9 = vpack.c.bf16 %v2690_v51, %v2689_v16  ;;  %v3809_v16 = vor.u32 %v4026_v40, %v3806_v41 }
 0x1c1   : > { %v2926_v57 = vrot.slane %v2780_v9, 4  ;;  %v2927_v58 = vrot.slane %v2780_v9, 6  ;;  %v1924_v59 = vpop.f32.mrf.mxu2 }
 0x1c2   : > { %v1937_v63 = vpop.f32.mrf.mxu3  ;;  %v1948_v0 = vpop.f32.mrf.mxu0 }
 0x1c3   : > { %v3101_v4 = vsel %vm2971_vm2, %v2926_v57, %v2927_v58  ;;  %v1949_v5 = vadd.f32 %v1948_v0, %v4303_v60  ;;  %v1961_v6 = vpop.f32.mrf.mxu1  ;;  %v3828_v0 = vld [vmem:[%s4152_s19 + $0x1f8] sm:$0xf] }
 0x1c4   : > { %v3102_v8 = vsel %vm2975_vm3, %v3098_v3, %v3101_v4  ;;  %v1962_v10 = vadd.f32 %v1961_v6, %v4303_v60  ;;  %v3830_v3 = vld [vmem:[%s4152_s19 + $0x3f8] sm:$0xf0] }
 0x1c5   : > { %3244 = vst [vmem:[%s4335_s25 + $0x90] sm:$0xff] %v3102_v8  ;;  %3942 = vmatmul.msk.bf16.vlgmr.msrb.gmra.mxu0 %vm947_vm0, %v4785_v13  ;;  %3943 = vmatmul.msk.bf16.vlgmr.msrb.gmra.mxu1 %vm947_vm0, %v4785_v13  ;;  %v2691_v15 = vmax.f32 %v1949_v5, 0.0  ;;  %v4092_v8 = vld [vmem:[%s4152_s19 + $0x3ec] sm:$0xf0] }
 0x1c6   : > { %3944 = vmatmul.msk.bf16.vlgmr.msrb.gmra.mxu2 %vm947_vm0, %v4785_v13  ;;  %v2692_v17 = vmax.f32 %v1962_v10, 0.0  ;;  %2466 = vmatpush.bf16.msrb.mxu0 %v3789_v12  ;;  %v4028_v12 = vld [vmem:[%s4152_s19 + $0x1f4] sm:$0xf] }
 0x1c7   : > { %3945 = vmatmul.msk.bf16.vlgmr.msrb.gmra.mxu3 %vm947_vm0, %v4785_v13  ;;  %2492 = vmatpush.bf16.msrb.mxu2 %v3797_v7  ;;  %v3820_v7 = vld [vmem:[%s4152_s19 + $0x1f0] sm:$0xf] }
 0x1c8   : > { %2505 = vmatpush.bf16.msrb.mxu3 %v3801_v11  ;;  %2479 = vmatpush.bf16.msrb.mxu1 %v3793_v14  ;;  %v2781_v22 = vpack.c.bf16 %v2692_v17, %v2691_v15  ;;  %v3822_v14 = vld [vmem:[%s4152_s19 + $0x3f0] sm:$0xf0] }
 0x1c9   : > { %v1974_v18 = vpop.f32.mrf.mxu2 }
 0x1ca   : > { %v1975_v19 = vadd.f32 %v1974_v18, %v4303_v60  ;;  %v1987_v20 = vpop.f32.mrf.mxu3  ;;  %v1950_v21 = vpop.f32.mrf.mxu0  ;;  %v2928_v27 = vrot.slane %v2781_v22, 2 }
 0x1cb   : > { %v1988_v23 = vadd.f32 %v1987_v20, %v4303_v60  ;;  %v1963_v24 = vpop.f32.mrf.mxu1  ;;  %v3829_v20 = vor.u32 %v4093_v1, %v3828_v0 }
 0x1cc   : > { %v2693_v25 = vmax.f32 %v1975_v19, 0.0  ;;  %v3105_v42 = vsel %vm2967_vm1, %v2781_v22, %v2928_v27  ;;  %v3821_v24 = vor.u32 %v4092_v8, %v3820_v7 }
 0x1cd   : > { %v2694_v26 = vmax.f32 %v1988_v23, 0.0  ;;  %v3833_v23 = vor.u32 %v4029_v2, %v3830_v3 }
 0x1cf   : > { %v2782_v28 = vpack.c.bf16 %v2694_v26, %v2693_v25  ;;  %v3825_v25 = vor.u32 %v4028_v12, %v3822_v14 }
 0x1d1   : > { %v2929_v33 = vrot.slane %v2782_v28, 4  ;;  %v2930_v34 = vrot.slane %v2782_v28, 6  ;;  %v1976_v35 = vpop.f32.mrf.mxu2 }
 0x1d2   : > { %v1989_v38 = vpop.f32.mrf.mxu3  ;;  %v2000_v39 = vpop.f32.mrf.mxu0 }
 0x1d3   : > { %v3108_v43 = vsel %vm2971_vm2, %v2929_v33, %v2930_v34  ;;  %v2001_v44 = vadd.f32 %v2000_v39, %v4303_v60  ;;  %v2013_v45 = vpop.f32.mrf.mxu1 }
 0x1d4   : > { %v3109_v47 = vsel %vm2975_vm3, %v3105_v42, %v3108_v43  ;;  %v2014_v48 = vadd.f32 %v2013_v45, %v4303_v60 }
 0x1d5   : > { %3245 = vst [vmem:[%s4335_s25 + $0x98] sm:$0xff] %v3109_v47  ;;  %3946 = vmatmul.msk.bf16.vlgmr.msra.gmra.mxu0 %vm947_vm0, %v4785_v13  ;;  %3947 = vmatmul.msk.bf16.vlgmr.msra.gmra.mxu1 %vm947_vm0, %v4785_v13  ;;  %v2695_v51 = vmax.f32 %v2001_v44, 0.0 }
 0x1d6   : > { %3948 = vmatmul.msk.bf16.vlgmr.msra.gmra.mxu2 %vm947_vm0, %v4785_v13  ;;  %v2696_v52 = vmax.f32 %v2014_v48, 0.0  ;;  %2518 = vmatpush.bf16.msra.mxu0 %v3805_v50 }
 0x1d7   : > { %3949 = vmatmul.msk.bf16.vlgmr.msra.gmra.mxu3 %vm947_vm0, %v4785_v13  ;;  %2544 = vmatpush.bf16.msra.mxu2 %v3813_v46 }
 0x1d8   : > { %2557 = vmatpush.bf16.msra.mxu3 %v3817_v49  ;;  %2531 = vmatpush.bf16.msra.mxu1 %v3809_v16  ;;  %v2783_v56 = vpack.c.bf16 %v2696_v52, %v2695_v51 }
 0x1d9   : > { %v2026_v9 = vpop.f32.mrf.mxu2 }
 0x1da   : > { %v2027_v53 = vadd.f32 %v2026_v9, %v4303_v60  ;;  %v2039_v54 = vpop.f32.mrf.mxu3  ;;  %v2002_v55 = vpop.f32.mrf.mxu0  ;;  %v2931_v62 = vrot.slane %v2783_v56, 2 }
 0x1db   : > { %v2040_v57 = vadd.f32 %v2039_v54, %v4303_v60  ;;  %v2015_v58 = vpop.f32.mrf.mxu1 }
 0x1dc   : > { %v2697_v59 = vmax.f32 %v2027_v53, 0.0  ;;  %v3112_v15 = vsel %vm2967_vm1, %v2783_v56, %v2931_v62 }
 0x1dd   : > { %v2698_v61 = vmax.f32 %v2040_v57, 0.0 }
 0x1df   : > { %v2784_v63 = vpack.c.bf16 %v2698_v61, %v2697_v59 }
 0x1e1   : > { %v2932_v4 = vrot.slane %v2784_v63, 4  ;;  %v2933_v5 = vrot.slane %v2784_v63, 6  ;;  %v2028_v6 = vpop.f32.mrf.mxu2 }
 0x1e2   : > { %v2041_v10 = vpop.f32.mrf.mxu3  ;;  %v2052_v11 = vpop.f32.mrf.mxu0 }
 0x1e3   : > { %v3115_v17 = vsel %vm2971_vm2, %v2932_v4, %v2933_v5  ;;  %v2053_v18 = vadd.f32 %v2052_v11, %v4303_v60  ;;  %v2065_v19 = vpop.f32.mrf.mxu1 }
 0x1e4   : > { %v3116_v21 = vsel %vm2975_vm3, %v3112_v15, %v3115_v17  ;;  %v2066_v22 = vadd.f32 %v2065_v19, %v4303_v60 }
 0x1e5   : > { %3246 = vst [vmem:[%s4335_s25 + $0xa0] sm:$0xff] %v3116_v21  ;;  %3950 = vmatmul.msk.bf16.vlgmr.msrb.gmra.mxu0 %vm947_vm0, %v4785_v13  ;;  %3951 = vmatmul.msk.bf16.vlgmr.msrb.gmra.mxu1 %vm947_vm0, %v4785_v13  ;;  %v2699_v26 = vmax.f32 %v2053_v18, 0.0 }
 0x1e6   : > { %3952 = vmatmul.msk.bf16.vlgmr.msrb.gmra.mxu2 %vm947_vm0, %v4785_v13  ;;  %v2700_v27 = vmax.f32 %v2066_v22, 0.0  ;;  %2570 = vmatpush.bf16.msrb.mxu0 %v3821_v24 }
 0x1e7   : > { %3953 = vmatmul.msk.bf16.vlgmr.msrb.gmra.mxu3 %vm947_vm0, %v4785_v13  ;;  %2596 = vmatpush.bf16.msrb.mxu2 %v3829_v20 }
 0x1e8   : > { %2609 = vmatpush.bf16.msrb.mxu3 %v3833_v23  ;;  %2583 = vmatpush.bf16.msrb.mxu1 %v3825_v25  ;;  %v2785_v32 = vpack.c.bf16 %v2700_v27, %v2699_v26 }
 0x1e9   : > { %v2078_v28 = vpop.f32.mrf.mxu2 }
 0x1ea   : > { %v2079_v29 = vadd.f32 %v2078_v28, %v4303_v60  ;;  %v2091_v30 = vpop.f32.mrf.mxu3  ;;  %v2054_v31 = vpop.f32.mrf.mxu0  ;;  %v2934_v37 = vrot.slane %v2785_v32, 2 }
 0x1eb   : > { %v2092_v33 = vadd.f32 %v2091_v30, %v4303_v60  ;;  %v2067_v34 = vpop.f32.mrf.mxu1 }
 0x1ec   : > { %v2701_v35 = vmax.f32 %v2079_v29, 0.0  ;;  %v3119_v44 = vsel %vm2967_vm1, %v2785_v32, %v2934_v37 }
 0x1ed   : > { %v2702_v36 = vmax.f32 %v2092_v33, 0.0 }
 0x1ef   : > { %v2786_v38 = vpack.c.bf16 %v2702_v36, %v2701_v35 }
 0x1f1   : > { %v2935_v39 = vrot.slane %v2786_v38, 4  ;;  %v2936_v40 = vrot.slane %v2786_v38, 6  ;;  %v2080_v41 = vpop.f32.mrf.mxu2 }
 0x1f2   : > { %v2093_v42 = vpop.f32.mrf.mxu3  ;;  %v2104_v43 = vpop.f32.mrf.mxu0 }
 0x1f3   : > { %v3122_v45 = vsel %vm2971_vm2, %v2935_v39, %v2936_v40  ;;  %v2105_v46 = vadd.f32 %v2104_v43, %v4303_v60  ;;  %v2117_v47 = vpop.f32.mrf.mxu1 }
 0x1f4   : > { %v3123_v48 = vsel %vm2975_vm3, %v3119_v44, %v3122_v45  ;;  %v2118_v49 = vadd.f32 %v2117_v47, %v4303_v60 }
 0x1f5   : > { %3247 = vst [vmem:[%s4335_s25 + $0xa8] sm:$0xff] %v3123_v48  ;;  %3954 = vmatmul.msk.bf16.vlgmr.msra.gmra.mxu0 %vm947_vm0, %v4785_v13  ;;  %3955 = vmatmul.msk.bf16.vlgmr.msra.gmra.mxu1 %vm947_vm0, %v4785_v13  ;;  %v2703_v50 = vmax.f32 %v2105_v46, 0.0 }
 0x1f6   : > { %3956 = vmatmul.msk.bf16.vlgmr.msra.gmra.mxu2 %vm947_vm0, %v4785_v13  ;;  %v2704_v16 = vmax.f32 %v2118_v49, 0.0 }
 0x1f7   : > { %3957 = vmatmul.msk.bf16.vlgmr.msra.gmra.mxu3 %vm947_vm0, %v4785_v13 }
 0x1f8   : > { %v2787_v54 = vpack.c.bf16 %v2704_v16, %v2703_v50 }
 0x1f9   : > { %v2130_v51 = vpop.f32.mrf.mxu2 }
 0x1fa   : > { %v2131_v52 = vadd.f32 %v2130_v51, %v4303_v60  ;;  %v2143_v9 = vpop.f32.mrf.mxu3  ;;  %v2106_v53 = vpop.f32.mrf.mxu0  ;;  %v2937_v59 = vrot.slane %v2787_v54, 2 }
 0x1fb   : > { %v2144_v55 = vadd.f32 %v2143_v9, %v4303_v60  ;;  %v2119_v56 = vpop.f32.mrf.mxu1 }
 0x1fc   : > { %v2705_v57 = vmax.f32 %v2131_v52, 0.0  ;;  %v3126_v3 = vsel %vm2967_vm1, %v2787_v54, %v2937_v59 }
 0x1fd   : > { %v2706_v58 = vmax.f32 %v2144_v55, 0.0 }
 0x1ff   : > { %v2788_v61 = vpack.c.bf16 %v2706_v58, %v2705_v57 }
 0x201   : > { %v2938_v62 = vrot.slane %v2788_v61, 4  ;;  %v2939_v63 = vrot.slane %v2788_v61, 6  ;;  %v2132_v0 = vpop.f32.mrf.mxu2 }
 0x202   : > { %v2145_v1 = vpop.f32.mrf.mxu3  ;;  %v2156_v2 = vpop.f32.mrf.mxu0 }
 0x203   : > { %v3129_v4 = vsel %vm2971_vm2, %v2938_v62, %v2939_v63  ;;  %v2157_v5 = vadd.f32 %v2156_v2, %v4303_v60  ;;  %v2169_v6 = vpop.f32.mrf.mxu1 }
 0x204   : > { %v3130_v7 = vsel %vm2975_vm3, %v3126_v3, %v3129_v4  ;;  %v2170_v8 = vadd.f32 %v2169_v6, %v4303_v60 }
 0x205   : > { %3248 = vst [vmem:[%s4335_s25 + $0xb0] sm:$0xff] %v3130_v7  ;;  %3958 = vmatmul.msk.bf16.vlgmr.msrb.gmra.mxu0 %vm947_vm0, %v4785_v13  ;;  %3959 = vmatmul.msk.bf16.vlgmr.msrb.gmra.mxu1 %vm947_vm0, %v4785_v13  ;;  %v2707_v10 = vmax.f32 %v2157_v5, 0.0 }
 0x206   : > { %3960 = vmatmul.msk.bf16.vlgmr.msrb.gmra.mxu2 %vm947_vm0, %v4785_v13  ;;  %v2708_v11 = vmax.f32 %v2170_v8, 0.0 }
 0x207   : > { %3961 = vmatmul.msk.bf16.vlgmr.msrb.gmra.mxu3 %vm947_vm0, %v4785_v13 }
 0x208   : > { %v2789_v18 = vpack.c.bf16 %v2708_v11, %v2707_v10 }
 0x209   : > { %v2182_v12 = vpop.f32.mrf.mxu2 }
 0x20a   : > { %v2183_v14 = vadd.f32 %v2182_v12, %v4303_v60  ;;  %v2195_v15 = vpop.f32.mrf.mxu3  ;;  %v2158_v17 = vpop.f32.mrf.mxu0  ;;  %v2940_v23 = vrot.slane %v2789_v18, 2 }
 0x20b   : > { %v2196_v19 = vadd.f32 %v2195_v15, %v4303_v60  ;;  %v2171_v20 = vpop.f32.mrf.mxu1 }
 0x20c   : > { %v2709_v21 = vmax.f32 %v2183_v14, 0.0  ;;  %v3133_v13 = vsel %vm2967_vm1, %v2789_v18, %v2940_v23 }
 0x20d   : > { %v2710_v22 = vmax.f32 %v2196_v19, 0.0 }
 0x20f   : > { %v2790_v24 = vpack.c.bf16 %v2710_v22, %v2709_v21 }
 0x211   : > { %v2941_v25 = vrot.slane %v2790_v24, 4  ;;  %v2942_v26 = vrot.slane %v2790_v24, 6  ;;  %v2184_v27 = vpop.f32.mrf.mxu2 }
 0x212   : > { %v2197_v28 = vpop.f32.mrf.mxu3  ;;  %v2208_v29 = vpop.f32.mrf.mxu0 }
 0x213   : > { %v3136_v30 = vsel %vm2971_vm2, %v2941_v25, %v2942_v26  ;;  %v2209_v31 = vadd.f32 %v2208_v29, %v4303_v60  ;;  %v2221_v32 = vpop.f32.mrf.mxu1 }
 0x214   : > { %v3137_v33 = vsel %vm2975_vm3, %v3133_v13, %v3136_v30  ;;  %v2222_v34 = vadd.f32 %v2221_v32, %v4303_v60 }
 0x215   : > { %3249 = vst [vmem:[%s4335_s25 + $0xb8] sm:$0xff] %v3137_v33  ;;  %v2711_v35 = vmax.f32 %v2209_v31, 0.0 }
 0x216   : > { %v2712_v36 = vmax.f32 %v2222_v34, 0.0 }
 0x218   : > { %v2791_v41 = vpack.c.bf16 %v2712_v36, %v2711_v35 }
 0x219   : > { %v2234_v37 = vpop.f32.mrf.mxu2 }
 0x21a   : > { %v2235_v38 = vadd.f32 %v2234_v37, %v4303_v60  ;;  %v2247_v39 = vpop.f32.mrf.mxu3  ;;  %v2210_v40 = vpop.f32.mrf.mxu0  ;;  %v2943_v46 = vrot.slane %v2791_v41, 2 }
 0x21b   : > { %v2248_v42 = vadd.f32 %v2247_v39, %v4303_v60  ;;  %v2223_v43 = vpop.f32.mrf.mxu1 }
 0x21c   : > { %v2713_v44 = vmax.f32 %v2235_v38, 0.0  ;;  %v3140_v52 = vsel %vm2967_vm1, %v2791_v41, %v2943_v46 }
 0x21d   : > { %v2714_v45 = vmax.f32 %v2248_v42, 0.0 }
 0x21f   : > { %v2792_v47 = vpack.c.bf16 %v2714_v45, %v2713_v44 }
 0x221   : > { %v2944_v48 = vrot.slane %v2792_v47, 4  ;;  %v2945_v49 = vrot.slane %v2792_v47, 6  ;;  %v2236_v50 = vpop.f32.mrf.mxu2 }
 0x222   : > { %v2249_v16 = vpop.f32.mrf.mxu3  ;;  %v2260_v51 = vpop.f32.mrf.mxu0 }
 0x223   : > { %v3143_v9 = vsel %vm2971_vm2, %v2944_v48, %v2945_v49  ;;  %v2261_v53 = vadd.f32 %v2260_v51, %v4303_v60  ;;  %v2273_v54 = vpop.f32.mrf.mxu1 }
 0x224   : > { %v3144_v55 = vsel %vm2975_vm3, %v3140_v52, %v3143_v9  ;;  %v2274_v56 = vadd.f32 %v2273_v54, %v4303_v60 }
 0x225   : > { %3250 = vst [vmem:[%s4335_s25 + $0xc0] sm:$0xff] %v3144_v55  ;;  %v2715_v57 = vmax.f32 %v2261_v53, 0.0 }
 0x226   : > { %v2716_v58 = vmax.f32 %v2274_v56, 0.0 }
 0x228   : > { %v2793_v0 = vpack.c.bf16 %v2716_v58, %v2715_v57 }
 0x229   : > { %v2286_v59 = vpop.f32.mrf.mxu2 }
 0x22a   : > { %v2287_v61 = vadd.f32 %v2286_v59, %v4303_v60  ;;  %v2299_v62 = vpop.f32.mrf.mxu3  ;;  %v2262_v63 = vpop.f32.mrf.mxu0  ;;  %v2946_v5 = vrot.slane %v2793_v0, 2 }
 0x22b   : > { %v2300_v1 = vadd.f32 %v2299_v62, %v4303_v60  ;;  %v2275_v2 = vpop.f32.mrf.mxu1 }
 0x22c   : > { %v2717_v3 = vmax.f32 %v2287_v61, 0.0  ;;  %v3147_v14 = vsel %vm2967_vm1, %v2793_v0, %v2946_v5 }
 0x22d   : > { %v2718_v4 = vmax.f32 %v2300_v1, 0.0 }
 0x22f   : > { %v2794_v6 = vpack.c.bf16 %v2718_v4, %v2717_v3 }
 0x231   : > { %v2947_v7 = vrot.slane %v2794_v6, 4  ;;  %v2948_v8 = vrot.slane %v2794_v6, 6  ;;  %v2288_v10 = vpop.f32.mrf.mxu2 }
 0x232   : > { %v2301_v11 = vpop.f32.mrf.mxu3  ;;  %v2312_v12 = vpop.f32.mrf.mxu0 }
 0x233   : > { %v3150_v15 = vsel %vm2971_vm2, %v2947_v7, %v2948_v8  ;;  %v2313_v17 = vadd.f32 %v2312_v12, %v4303_v60  ;;  %v2325_v18 = vpop.f32.mrf.mxu1 }
 0x234   : > { %v3151_v19 = vsel %vm2975_vm3, %v3147_v14, %v3150_v15  ;;  %v2326_v20 = vadd.f32 %v2325_v18, %v4303_v60 }
 0x235   : > { %3251 = vst [vmem:[%s4335_s25 + $0xc8] sm:$0xff] %v3151_v19  ;;  %v2719_v21 = vmax.f32 %v2313_v17, 0.0 }
 0x236   : > { %v2720_v22 = vmax.f32 %v2326_v20, 0.0 }
 0x238   : > { %v2795_v27 = vpack.c.bf16 %v2720_v22, %v2719_v21 }
 0x239   : > { %v2338_v23 = vpop.f32.mrf.mxu2 }
 0x23a   : > { %v2339_v24 = vadd.f32 %v2338_v23, %v4303_v60  ;;  %v2351_v25 = vpop.f32.mrf.mxu3  ;;  %v2314_v26 = vpop.f32.mrf.mxu0  ;;  %v2949_v31 = vrot.slane %v2795_v27, 2 }
 0x23b   : > { %v2352_v28 = vadd.f32 %v2351_v25, %v4303_v60  ;;  %v2327_v29 = vpop.f32.mrf.mxu1 }
 0x23c   : > { %v2721_v13 = vmax.f32 %v2339_v24, 0.0  ;;  %v3154_v38 = vsel %vm2967_vm1, %v2795_v27, %v2949_v31 }
 0x23d   : > { %v2722_v30 = vmax.f32 %v2352_v28, 0.0 }
 0x23f   : > { %v2796_v32 = vpack.c.bf16 %v2722_v30, %v2721_v13 }
 0x241   : > { %v2950_v33 = vrot.slane %v2796_v32, 4  ;;  %v2951_v34 = vrot.slane %v2796_v32, 6  ;;  %v2340_v35 = vpop.f32.mrf.mxu2 }
 0x242   : > { %v2353_v36 = vpop.f32.mrf.mxu3  ;;  %v2364_v37 = vpop.f32.mrf.mxu0 }
 0x243   : > { %v3157_v39 = vsel %vm2971_vm2, %v2950_v33, %v2951_v34  ;;  %v2365_v40 = vadd.f32 %v2364_v37, %v4303_v60  ;;  %v2377_v41 = vpop.f32.mrf.mxu1 }
 0x244   : > { %v3158_v42 = vsel %vm2975_vm3, %v3154_v38, %v3157_v39  ;;  %v2378_v43 = vadd.f32 %v2377_v41, %v4303_v60 }
 0x245   : > { %3252 = vst [vmem:[%s4335_s25 + $0xd0] sm:$0xff] %v3158_v42  ;;  %v2723_v44 = vmax.f32 %v2365_v40, 0.0 }
 0x246   : > { %v2724_v45 = vmax.f32 %v2378_v43, 0.0 }
 0x248   : > { %v2797_v50 = vpack.c.bf16 %v2724_v45, %v2723_v44 }
 0x249   : > { %v2390_v46 = vpop.f32.mrf.mxu2 }
 0x24a   : > { %v2391_v47 = vadd.f32 %v2390_v46, %v4303_v60  ;;  %v2403_v48 = vpop.f32.mrf.mxu3  ;;  %v2366_v49 = vpop.f32.mrf.mxu0  ;;  %v2952_v53 = vrot.slane %v2797_v50, 2 }
 0x24b   : > { %v2404_v16 = vadd.f32 %v2403_v48, %v4303_v60  ;;  %v2379_v51 = vpop.f32.mrf.mxu1 }
 0x24c   : > { %v2725_v52 = vmax.f32 %v2391_v47, 0.0  ;;  %v3161_v61 = vsel %vm2967_vm1, %v2797_v50, %v2952_v53 }
 0x24d   : > { %v2726_v9 = vmax.f32 %v2404_v16, 0.0 }
 0x24f   : > { %v2798_v54 = vpack.c.bf16 %v2726_v9, %v2725_v52 }
 0x251   : > { %v2953_v55 = vrot.slane %v2798_v54, 4  ;;  %v2954_v56 = vrot.slane %v2798_v54, 6  ;;  %v2392_v57 = vpop.f32.mrf.mxu2 }
 0x252   : > { %v2405_v58 = vpop.f32.mrf.mxu3  ;;  %v2416_v59 = vpop.f32.mrf.mxu0 }
 0x253   : > { %v3164_v62 = vsel %vm2971_vm2, %v2953_v55, %v2954_v56  ;;  %v2417_v63 = vadd.f32 %v2416_v59, %v4303_v60  ;;  %v2429_v0 = vpop.f32.mrf.mxu1 }
 0x254   : > { %v3165_v1 = vsel %vm2975_vm3, %v3161_v61, %v3164_v62  ;;  %v2430_v2 = vadd.f32 %v2429_v0, %v4303_v60 }
 0x255   : > { %3253 = vst [vmem:[%s4335_s25 + $0xd8] sm:$0xff] %v3165_v1  ;;  %v2727_v3 = vmax.f32 %v2417_v63, 0.0 }
 0x256   : > { %v2728_v4 = vmax.f32 %v2430_v2, 0.0 }
 0x258   : > { %v2799_v10 = vpack.c.bf16 %v2728_v4, %v2727_v3 }
 0x259   : > { %v2442_v5 = vpop.f32.mrf.mxu2 }
 0x25a   : > { %v2443_v6 = vadd.f32 %v2442_v5, %v4303_v60  ;;  %v2455_v7 = vpop.f32.mrf.mxu3  ;;  %v2418_v8 = vpop.f32.mrf.mxu0  ;;  %v2955_v17 = vrot.slane %v2799_v10, 2 }
 0x25b   : > { %v2456_v11 = vadd.f32 %v2455_v7, %v4303_v60  ;;  %v2431_v12 = vpop.f32.mrf.mxu1 }
 0x25c   : > { %v2729_v14 = vmax.f32 %v2443_v6, 0.0  ;;  %v3168_v24 = vsel %vm2967_vm1, %v2799_v10, %v2955_v17 }
 0x25d   : > { %v2730_v15 = vmax.f32 %v2456_v11, 0.0 }
 0x25f   : > { %v2800_v18 = vpack.c.bf16 %v2730_v15, %v2729_v14 }
 0x261   : > { %v2956_v19 = vrot.slane %v2800_v18, 4  ;;  %v2957_v20 = vrot.slane %v2800_v18, 6  ;;  %v2444_v21 = vpop.f32.mrf.mxu2 }
 0x262   : > { %v2457_v22 = vpop.f32.mrf.mxu3  ;;  %v2468_v23 = vpop.f32.mrf.mxu0 }
 0x263   : > { %v3171_v25 = vsel %vm2971_vm2, %v2956_v19, %v2957_v20  ;;  %v2469_v26 = vadd.f32 %v2468_v23, %v4303_v60  ;;  %v2481_v27 = vpop.f32.mrf.mxu1 }
 0x264   : > { %v3172_v28 = vsel %vm2975_vm3, %v3168_v24, %v3171_v25  ;;  %v2482_v29 = vadd.f32 %v2481_v27, %v4303_v60 }
 0x265   : > { %3254 = vst [vmem:[%s4335_s25 + $0xe0] sm:$0xff] %v3172_v28  ;;  %v2731_v13 = vmax.f32 %v2469_v26, 0.0 }
 0x266   : > { %v2732_v30 = vmax.f32 %v2482_v29, 0.0 }
 0x268   : > { %v2801_v35 = vpack.c.bf16 %v2732_v30, %v2731_v13 }
 0x269   : > { %v2494_v31 = vpop.f32.mrf.mxu2 }
 0x26a   : > { %v2495_v32 = vadd.f32 %v2494_v31, %v4303_v60  ;;  %v2507_v33 = vpop.f32.mrf.mxu3  ;;  %v2470_v34 = vpop.f32.mrf.mxu0  ;;  %v2958_v40 = vrot.slane %v2801_v35, 2 }
 0x26b   : > { %v2508_v36 = vadd.f32 %v2507_v33, %v4303_v60  ;;  %v2483_v37 = vpop.f32.mrf.mxu1 }
 0x26c   : > { %v2733_v38 = vmax.f32 %v2495_v32, 0.0  ;;  %v3175_v47 = vsel %vm2967_vm1, %v2801_v35, %v2958_v40 }
 0x26d   : > { %v2734_v39 = vmax.f32 %v2508_v36, 0.0 }
 0x26f   : > { %v2802_v41 = vpack.c.bf16 %v2734_v39, %v2733_v38 }
 0x271   : > { %v2959_v42 = vrot.slane %v2802_v41, 4  ;;  %v2960_v43 = vrot.slane %v2802_v41, 6  ;;  %v2496_v44 = vpop.f32.mrf.mxu2 }
 0x272   : > { %v2509_v45 = vpop.f32.mrf.mxu3  ;;  %v2520_v46 = vpop.f32.mrf.mxu0 }
 0x273   : > { %v3178_v48 = vsel %vm2971_vm2, %v2959_v42, %v2960_v43  ;;  %v2521_v49 = vadd.f32 %v2520_v46, %v4303_v60  ;;  %v2533_v50 = vpop.f32.mrf.mxu1 }
 0x274   : > { %v3179_v16 = vsel %vm2975_vm3, %v3175_v47, %v3178_v48  ;;  %v2534_v51 = vadd.f32 %v2533_v50, %v4303_v60 }
 0x275   : > { %3255 = vst [vmem:[%s4335_s25 + $0xe8] sm:$0xff] %v3179_v16  ;;  %v2735_v52 = vmax.f32 %v2521_v49, 0.0 }
 0x276   : > { %v2736_v9 = vmax.f32 %v2534_v51, 0.0 }
 0x278   : > { %v2803_v57 = vpack.c.bf16 %v2736_v9, %v2735_v52 }
 0x279   : > { %v2546_v53 = vpop.f32.mrf.mxu2 }
 0x27a   : > { %v2547_v54 = vadd.f32 %v2546_v53, %v4303_v60  ;;  %v2559_v55 = vpop.f32.mrf.mxu3  ;;  %v2522_v56 = vpop.f32.mrf.mxu0  ;;  %v2961_v63 = vrot.slane %v2803_v57, 2 }
 0x27b   : > { %v2560_v58 = vadd.f32 %v2559_v55, %v4303_v60  ;;  %v2535_v59 = vpop.f32.mrf.mxu1 }
 0x27c   : > { %v2737_v61 = vmax.f32 %v2547_v54, 0.0  ;;  %v3182_v6 = vsel %vm2967_vm1, %v2803_v57, %v2961_v63 }
 0x27d   : > { %v2738_v62 = vmax.f32 %v2560_v58, 0.0 }
 0x27f   : > { %v2804_v0 = vpack.c.bf16 %v2738_v62, %v2737_v61 }
 0x281   : > { %v2962_v1 = vrot.slane %v2804_v0, 4  ;;  %v2963_v2 = vrot.slane %v2804_v0, 6  ;;  %v2548_v3 = vpop.f32.mrf.mxu2 }
 0x282   : > { %v2561_v4 = vpop.f32.mrf.mxu3  ;;  %v2572_v5 = vpop.f32.mrf.mxu0 }
 0x283   : > { %v3185_v7 = vsel %vm2971_vm2, %v2962_v1, %v2963_v2  ;;  %v2573_v8 = vadd.f32 %v2572_v5, %v4303_v60  ;;  %v2585_v10 = vpop.f32.mrf.mxu1 }
 0x284   : > { %v3186_v11 = vsel %vm2975_vm3, %v3182_v6, %v3185_v7  ;;  %v2586_v12 = vadd.f32 %v2585_v10, %v4303_v60 }
 0x285   : > { %3256 = vst [vmem:[%s4335_s25 + $0xf0] sm:$0xff] %v3186_v11  ;;  %v2739_v14 = vmax.f32 %v2573_v8, 0.0 }
 0x286   : > { %v2740_v15 = vmax.f32 %v2586_v12, 0.0 }
 0x288   : > { %v2805_v21 = vpack.c.bf16 %v2740_v15, %v2739_v14 }
 0x289   : > { %v2598_v17 = vpop.f32.mrf.mxu2 }
 0x28a   : > { %v2599_v18 = vadd.f32 %v2598_v17, %v4303_v60  ;;  %v2611_v19 = vpop.f32.mrf.mxu3  ;;  %v2574_v20 = vpop.f32.mrf.mxu0  ;;  %v2964_v26 = vrot.slane %v2805_v21, 2 }
 0x28b   : > { %v2612_v22 = vadd.f32 %v2611_v19, %v4303_v60  ;;  %v2587_v23 = vpop.f32.mrf.mxu1 }
 0x28c   : > { %v2741_v24 = vmax.f32 %v2599_v18, 0.0  ;;  %v3189_v31 = vsel %vm2967_vm1, %v2805_v21, %v2964_v26 }
 0x28d   : > { %v2742_v25 = vmax.f32 %v2612_v22, 0.0 }
 0x28f   : > { %v2806_v27 = vpack.c.bf16 %v2742_v25, %v2741_v24 }
 0x291   : > { %v2965_v28 = vrot.slane %v2806_v27, 4  ;;  %v2966_v29 = vrot.slane %v2806_v27, 6  ;;  %v2600_v13 = vpop.f32.mrf.mxu2 }
 0x292   : > { %v2613_v30 = vpop.f32.mrf.mxu3 }
 0x293   : > { %v3192_v32 = vsel %vm2971_vm2, %v2965_v28, %v2966_v29 }
 0x294   : > { %v3193_v33 = vsel %vm2975_vm3, %v3189_v31, %v3192_v32 }
 0x295   : > { %3257 = vst [vmem:[%s4335_s25 + $0xf8] sm:$0xff] %v3193_v33 }
 0x296 PF: > { %s13_s12 = sadd.s32 1, %s4112_s12  }
 0x297   : > { %p10_p4 = scmp.ge.s32.totalorder %s13_s12, 4  }
 0x299   :  { %12 = sbr.rel (!%p10_p4) target bundleno = 1 (0x1), region = 62 }

// kernel: whole_dis_forward.5
= control target key start
LH: loop header
LB: loop body
LE: loop exit
PB: predicated region body
PF: predicated region fallthrough
CT: control target
= control target key end

     0   :  { %s2210_s12 = smov 0   ;;  %s2613_s0 = inlined_call_operand.vmem [shape: bf16[2,64,4096], index: 0, kind: input, shape index: {}]   ;;  %s2614_s1 = inlined_call_operand.vmem [shape: bf16[8,64], index: 1, kind: input, shape index: {}]   ;;  %s2615_s2 = inlined_call_operand.vmem [shape: f32[8,1], index: 2, kind: input, shape index: {}]   ;;  %s2616_s3 = inlined_call_operand.vmem [shape: bf16[2,8,4096], index: 3, kind: output, shape index: {}]  }
   0x1 LB: > { %s1486_s13 = sadd.s32 4294967295, %s2187_s12   ;;  %p1490_p0 = scmp.ge.s32.totalorder %s2187_s12, 1  ;;  %s2187_s12 = sphi %s2210_s12, %s13_s12  }
   0x2   : > { %p137_p1 = scmp.lt.s32.totalorder %s2187_s12, 3 }
   0x4   : > { %p138_p2 = pnand %p1490_p0, %p137_p1 }
   0x5   : > { %p161_p3 = scmp.lt.s32.totalorder (!%p138_p2), %s1486_s13, 1 }
   0x6   : > { %141 = sbr.rel (%p138_p2) target bundleno = 289 (0x121), region = 32 }
   0xb   : > { %s2618_s13 = smov (!%p161_p3, %s1486_s13), 1  ;;  %v2265_v52 = vld [vmem:[%s2614_s1] sm:$0xf]  ;;  %vm947_vm0 = vcmask 523264  }
   0xc   : > { %s2041_s14 = sshll.u32 %s2618_s13, 10  ;;  %s2042_s22 = sshll.u32 %s2618_s13, 7 }
   0xd   : > { %s2224_s17 = scalar_lea.vmem %s2613_s0, %s2041_s14  ;;  %s2562_s25 = scalar_lea.vmem %s2616_s3, %s2042_s22 }
   0xe   : > { %v1881_v0 = vld [vmem:[%s2224_s17 + $0x300] sm:$0xf]  ;;  %v2139_v2 = vld [vmem:[%s2224_s17 + $0x304] sm:$0xf]  ;;  %v1889_v5 = vld [vmem:[%s2224_s17 + $0x308] sm:$0xf] }
   0xf   : > { %v2155_v1 = vld [vmem:[%s2224_s17 + $0x37c] sm:$0xf0]  ;;  %v1883_v4 = vld [vmem:[%s2224_s17 + $0x380] sm:$0xf0]  ;;  %v2156_v6 = vld [vmem:[%s2224_s17 + $0x384] sm:$0xf0] }
  0x10   : > { %v1882_v3 = vor.u32 %v2155_v1, %v1881_v0  ;;  %v1886_v7 = vor.u32 %v2139_v2, %v1883_v4  ;;  %v1890_v8 = vor.u32 %v2156_v6, %v1889_v5  ;;  %v2140_v9 = vld [vmem:[%s2224_s17 + $0x30c] sm:$0xf]  ;;  %v1753_v11 = vld [vmem:[%s2224_s17 + $0x200] sm:$0xf]  ;;  %v2107_v14 = vld [vmem:[%s2224_s17 + $0x204] sm:$0xf] }
  0x11   : > { %v1891_v10 = vld [vmem:[%s2224_s17 + $0x388] sm:$0xf0]  ;;  %v2123_v13 = vld [vmem:[%s2224_s17 + $0x27c] sm:$0xf0]  ;;  %v1755_v15 = vld [vmem:[%s2224_s17 + $0x280] sm:$0xf0] }
  0x12   : > { %955 = vmatpush.bf16.msra.mxu0 %v1882_v3  ;;  %v1894_v12 = vor.u32 %v2140_v9, %v1891_v10  ;;  %968 = vmatpush.bf16.msra.mxu1 %v1886_v7  ;;  %v1754_v16 = vor.u32 %v2123_v13, %v1753_v11  ;;  %v1758_v17 = vor.u32 %v2107_v14, %v1755_v15  ;;  %v1761_v18 = vld [vmem:[%s2224_s17 + $0x208] sm:$0xf]  ;;  %v2108_v20 = vld [vmem:[%s2224_s17 + $0x20c] sm:$0xf]  ;;  %v1625_v23 = vld [vmem:[%s2224_s17 + $0x100] sm:$0xf] }
  0x13   : > { %981 = vmatpush.bf16.msra.mxu2 %v1890_v8  ;;  %v2124_v19 = vld [vmem:[%s2224_s17 + $0x284] sm:$0xf0]  ;;  %v1763_v22 = vld [vmem:[%s2224_s17 + $0x288] sm:$0xf0]  ;;  %v2091_v24 = vld [vmem:[%s2224_s17 + $0x17c] sm:$0xf0] }
  0x14   : > { %994 = vmatpush.bf16.msra.mxu3 %v1894_v12  ;;  %v1762_v21 = vor.u32 %v2124_v19, %v1761_v18  ;;  %v1766_v25 = vor.u32 %v2108_v20, %v1763_v22  ;;  %v2075_v26 = vld [vmem:[%s2224_s17 + $0x104] sm:$0xf]  ;;  %v1633_v28 = vld [vmem:[%s2224_s17 + $0x108] sm:$0xf]  ;;  %v1626_v29 = vor.u32 %v2091_v24, %v1625_v23  ;;  %v2076_v31 = vld [vmem:[%s2224_s17 + $0x10c] sm:$0xf] }
  0x15   : > { %v1627_v27 = vld [vmem:[%s2224_s17 + $0x180] sm:$0xf0]  ;;  %v2092_v30 = vld [vmem:[%s2224_s17 + $0x184] sm:$0xf0]  ;;  %v1635_v32 = vld [vmem:[%s2224_s17 + $0x188] sm:$0xf0] }
  0x16   : > { %956 = vmatpush.bf16.msra.mxu0 %v1754_v16  ;;  %969 = vmatpush.bf16.msra.mxu1 %v1758_v17  ;;  %v1630_v33 = vor.u32 %v2075_v26, %v1627_v27  ;;  %v1634_v34 = vor.u32 %v2092_v30, %v1633_v28  ;;  %v1497_v35 = vld [vmem:[%s2224_s17] sm:$0xf]  ;;  %v2043_v37 = vld [vmem:[%s2224_s17 + $0x4] sm:$0xf]  ;;  %v1638_v38 = vor.u32 %v2076_v31, %v1635_v32  ;;  %v1505_v40 = vld [vmem:[%s2224_s17 + $0x8] sm:$0xf] }
  0x17   : > { %982 = vmatpush.bf16.msra.mxu2 %v1762_v21  ;;  %v2059_v36 = vld [vmem:[%s2224_s17 + $0x7c] sm:$0xf0]  ;;  %v1499_v39 = vld [vmem:[%s2224_s17 + $0x80] sm:$0xf0]  ;;  %v2060_v41 = vld [vmem:[%s2224_s17 + $0x84] sm:$0xf0] }
  0x18   : > { %995 = vmatpush.bf16.msra.mxu3 %v1766_v25  ;;  %v2044_v42 = vld [vmem:[%s2224_s17 + $0xc] sm:$0xf]  ;;  %v1905_v44 = vld [vmem:[%s2224_s17 + $0x318] sm:$0xf]  ;;  %v1498_v45 = vor.u32 %v2059_v36, %v1497_v35  ;;  %v2142_v47 = vld [vmem:[%s2224_s17 + $0x31c] sm:$0xf]  ;;  %v1502_v49 = vor.u32 %v2043_v37, %v1499_v39  ;;  %v1506_v50 = vor.u32 %v2060_v41, %v1505_v40 }
  0x19   : > { %v1507_v43 = vld [vmem:[%s2224_s17 + $0x88] sm:$0xf0]  ;;  %v2158_v46 = vld [vmem:[%s2224_s17 + $0x394] sm:$0xf0]  ;;  %v1907_v48 = vld [vmem:[%s2224_s17 + $0x398] sm:$0xf0] }
  0x1a   : > { %957 = vmatpush.bf16.msra.mxu0 %v1626_v29  ;;  %970 = vmatpush.bf16.msra.mxu1 %v1630_v33  ;;  %v1510_v51 = vor.u32 %v2044_v42, %v1507_v43  ;;  %v1906_v53 = vor.u32 %v2158_v46, %v1905_v44  ;;  %v1897_v54 = vld [vmem:[%s2224_s17 + $0x310] sm:$0xf]  ;;  %v2141_v56 = vld [vmem:[%s2224_s17 + $0x314] sm:$0xf]  ;;  %v1910_v57 = vor.u32 %v2142_v47, %v1907_v48  ;;  %v1777_v59 = vld [vmem:[%s2224_s17 + $0x218] sm:$0xf] }
  0x1b   : > { %983 = vmatpush.bf16.msra.mxu2 %v1634_v34  ;;  %v2157_v55 = vld [vmem:[%s2224_s17 + $0x38c] sm:$0xf0]  ;;  %v1899_v58 = vld [vmem:[%s2224_s17 + $0x390] sm:$0xf0]  ;;  %v2126_v60 = vld [vmem:[%s2224_s17 + $0x294] sm:$0xf0] }
  0x1c   : > { %996 = vmatpush.bf16.msra.mxu3 %v1638_v38  ;;  %v2110_v61 = vld [vmem:[%s2224_s17 + $0x21c] sm:$0xf]  ;;  %v1898_v63 = vor.u32 %v2157_v55, %v1897_v54  ;;  %v1902_v0 = vor.u32 %v2141_v56, %v1899_v58  ;;  %v1778_v1 = vor.u32 %v2126_v60, %v1777_v59  ;;  %v1769_v2 = vld [vmem:[%s2224_s17 + $0x210] sm:$0xf]  ;;  %v2109_v4 = vld [vmem:[%s2224_s17 + $0x214] sm:$0xf] }
  0x1d   : > { %v1779_v62 = vld [vmem:[%s2224_s17 + $0x298] sm:$0xf0]  ;;  %v2125_v3 = vld [vmem:[%s2224_s17 + $0x28c] sm:$0xf0]  ;;  %v1771_v6 = vld [vmem:[%s2224_s17 + $0x290] sm:$0xf0] }
  0x1e   : > { %958 = vmatpush.bf16.msra.mxu0 %v1498_v45  ;;  %971 = vmatpush.bf16.msra.mxu1 %v1502_v49  ;;  %v1782_v5 = vor.u32 %v2110_v61, %v1779_v62  ;;  %v1649_v7 = vld [vmem:[%s2224_s17 + $0x118] sm:$0xf]  ;;  %v2078_v9 = vld [vmem:[%s2224_s17 + $0x11c] sm:$0xf]  ;;  %v1770_v11 = vor.u32 %v2125_v3, %v1769_v2  ;;  %v1641_v12 = vld [vmem:[%s2224_s17 + $0x110] sm:$0xf]  ;;  %v1774_v14 = vor.u32 %v2109_v4, %v1771_v6 }
  0x1f   : > { %984 = vmatpush.bf16.msra.mxu2 %v1506_v50  ;;  %v2094_v8 = vld [vmem:[%s2224_s17 + $0x194] sm:$0xf0]  ;;  %v1651_v10 = vld [vmem:[%s2224_s17 + $0x198] sm:$0xf0]  ;;  %v2093_v13 = vld [vmem:[%s2224_s17 + $0x18c] sm:$0xf0] }
  0x20   : > { %997 = vmatpush.bf16.msra.mxu3 %v1510_v51  ;;  %v1650_v15 = vor.u32 %v2094_v8, %v1649_v7  ;;  %v2077_v16 = vld [vmem:[%s2224_s17 + $0x114] sm:$0xf]  ;;  %v301_v18 = vld [vmem:[%s2615_s2] sm:$0xff]  ;;  %v1654_v19 = vor.u32 %v2078_v9, %v1651_v10  ;;  %v1521_v20 = vld [vmem:[%s2224_s17 + $0x18] sm:$0xf]  ;;  %v2189_v23 = vmov 0   ;;  %v1642_v27 = vor.u32 %v2093_v13, %v1641_v12 }
  0x21   : > { %2007 = vmatmul.msk.bf16.vlgmr.msra.gmra.mxu0 %vm947_vm0, %v2265_v52  ;;  %2008 = vmatmul.msk.bf16.vlgmr.msra.gmra.mxu1 %vm947_vm0, %v2265_v52  ;;  %v1643_v17 = vld [vmem:[%s2224_s17 + $0x190] sm:$0xf0]  ;;  %v2062_v21 = vld [vmem:[%s2224_s17 + $0x94] sm:$0xf0]  ;;  %v2046_v22 = vld [vmem:[%s2224_s17 + $0x1c] sm:$0xf] }
  0x22   : > { %2009 = vmatmul.msk.bf16.vlgmr.msra.gmra.mxu2 %vm947_vm0, %v2265_v52  ;;  %1007 = vmatpush.bf16.msrb.mxu0 %v1898_v63  ;;  %v1523_v24 = vld [vmem:[%s2224_s17 + $0x98] sm:$0xf0]  ;;  %v1921_v25 = vld [vmem:[%s2224_s17 + $0x328] sm:$0xf]  ;;  %v1513_v28 = vld [vmem:[%s2224_s17 + $0x10] sm:$0xf]  ;;  %v1646_v31 = vor.u32 %v2077_v16, %v1643_v17  ;;  %v1522_v32 = vor.u32 %v2062_v21, %v1521_v20 }
  0x23   : > { %1033 = vmatpush.bf16.msrb.mxu2 %v1906_v53  ;;  %2010 = vmatmul.msk.bf16.vlgmr.msra.gmra.mxu3 %vm947_vm0, %v2265_v52  ;;  %v2160_v26 = vld [vmem:[%s2224_s17 + $0x3a4] sm:$0xf0]  ;;  %v2144_v29 = vld [vmem:[%s2224_s17 + $0x32c] sm:$0xf]  ;;  %v2061_v33 = vld [vmem:[%s2224_s17 + $0x8c] sm:$0xf0]  ;;  %v1526_v36 = vor.u32 %v2046_v22, %v1523_v24 }
  0x24   : > { %1046 = vmatpush.bf16.msrb.mxu3 %v1910_v57  ;;  %1020 = vmatpush.bf16.msrb.mxu1 %v1902_v0  ;;  %v1923_v30 = vld [vmem:[%s2224_s17 + $0x3a8] sm:$0xf0]  ;;  %v2045_v34 = vld [vmem:[%s2224_s17 + $0x14] sm:$0xf]  ;;  %v1922_v37 = vor.u32 %v2160_v26, %v1921_v25  ;;  %v1913_v38 = vld [vmem:[%s2224_s17 + $0x320] sm:$0xf]  ;;  %v1514_v45 = vor.u32 %v2061_v33, %v1513_v28 }
  0x25   : > { %2180 = vset.pattern.permute.xlu0 %v2189_v23  ;;  %v1515_v35 = vld [vmem:[%s2224_s17 + $0x90] sm:$0xf0]  ;;  %v2159_v39 = vld [vmem:[%s2224_s17 + $0x39c] sm:$0xf0]  ;;  %v2143_v40 = vld [vmem:[%s2224_s17 + $0x324] sm:$0xf]  ;;  %v1926_v41 = vor.u32 %v2144_v29, %v1923_v30 }
  0x26   : > { %304 = vperm.xlu0 %2180, %v301_v18   ;;  %1008 = vmatpush.bf16.msrb.mxu0 %v1770_v11  ;;  %v1915_v42 = vld [vmem:[%s2224_s17 + $0x3a0] sm:$0xf0]  ;;  %v1793_v43 = vld [vmem:[%s2224_s17 + $0x228] sm:$0xf]  ;;  %v1518_v46 = vor.u32 %v2045_v34, %v1515_v35  ;;  %v1914_v47 = vor.u32 %v2159_v39, %v1913_v38  ;;  %v2112_v48 = vld [vmem:[%s2224_s17 + $0x22c] sm:$0xf] }
  0x27   : > { %1034 = vmatpush.bf16.msrb.mxu2 %v1778_v1  ;;  %v2128_v44 = vld [vmem:[%s2224_s17 + $0x2a4] sm:$0xf0]  ;;  %v1795_v49 = vld [vmem:[%s2224_s17 + $0x2a8] sm:$0xf0]  ;;  %v1918_v50 = vor.u32 %v2143_v40, %v1915_v42  ;;  %v1785_v53 = vld [vmem:[%s2224_s17 + $0x220] sm:$0xf] }
  0x28   : > { %1047 = vmatpush.bf16.msrb.mxu3 %v1782_v5  ;;  %1021 = vmatpush.bf16.msrb.mxu1 %v1774_v14  ;;  %v1794_v51 = vor.u32 %v2128_v44, %v1793_v43  ;;  %v2127_v54 = vld [vmem:[%s2224_s17 + $0x29c] sm:$0xf0]  ;;  %v2111_v55 = vld [vmem:[%s2224_s17 + $0x224] sm:$0xf]  ;;  %v1665_v57 = vld [vmem:[%s2224_s17 + $0x128] sm:$0xf]  ;;  %v1798_v59 = vor.u32 %v2112_v48, %v1795_v49 }
  0x29   : > { %v1787_v56 = vld [vmem:[%s2224_s17 + $0x2a0] sm:$0xf0]  ;;  %v2096_v58 = vld [vmem:[%s2224_s17 + $0x1a4] sm:$0xf0]  ;;  %v1786_v60 = vor.u32 %v2127_v54, %v1785_v53  ;;  %v2080_v61 = vld [vmem:[%s2224_s17 + $0x12c] sm:$0xf] }
  0x2a   : > { %1009 = vmatpush.bf16.msrb.mxu0 %v1642_v27  ;;  %v1667_v62 = vld [vmem:[%s2224_s17 + $0x1a8] sm:$0xf0]  ;;  %v1790_v63 = vor.u32 %v2111_v55, %v1787_v56  ;;  %v1666_v0 = vor.u32 %v2096_v58, %v1665_v57  ;;  %v1657_v1 = vld [vmem:[%s2224_s17 + $0x120] sm:$0xf]  ;;  %v2079_v3 = vld [vmem:[%s2224_s17 + $0x124] sm:$0xf] }
  0x2b   : > { %1035 = vmatpush.bf16.msrb.mxu2 %v1650_v15  ;;  %v2095_v2 = vld [vmem:[%s2224_s17 + $0x19c] sm:$0xf0]  ;;  %v1659_v4 = vld [vmem:[%s2224_s17 + $0x1a0] sm:$0xf0]  ;;  %v1537_v5 = vld [vmem:[%s2224_s17 + $0x28] sm:$0xf]  ;;  %v1670_v9 = vor.u32 %v2080_v61, %v1667_v62 }
  0x2c   : > { %1048 = vmatpush.bf16.msrb.mxu3 %v1654_v19  ;;  %1022 = vmatpush.bf16.msrb.mxu1 %v1646_v31  ;;  %v2064_v6 = vld [vmem:[%s2224_s17 + $0xa4] sm:$0xf0]  ;;  %v1937_v7 = vld [vmem:[%s2224_s17 + $0x338] sm:$0xf]  ;;  %v1658_v10 = vor.u32 %v2095_v2, %v1657_v1  ;;  %v2048_v11 = vld [vmem:[%s2224_s17 + $0x2c] sm:$0xf]  ;;  %v1662_v14 = vor.u32 %v2079_v3, %v1659_v4 }
  0x2d   : > { %v2162_v8 = vld [vmem:[%s2224_s17 + $0x3b4] sm:$0xf0]  ;;  %v1539_v12 = vld [vmem:[%s2224_s17 + $0xa8] sm:$0xf0]  ;;  %v1529_v13 = vld [vmem:[%s2224_s17 + $0x20] sm:$0xf]  ;;  %v1538_v15 = vor.u32 %v2064_v6, %v1537_v5 }
  0x2e   : > { %1010 = vmatpush.bf16.msrb.mxu0 %v1514_v45  ;;  %v2063_v16 = vld [vmem:[%s2224_s17 + $0x9c] sm:$0xf0]  ;;  %v2047_v17 = vld [vmem:[%s2224_s17 + $0x24] sm:$0xf]  ;;  %v1938_v19 = vor.u32 %v2162_v8, %v1937_v7  ;;  %v2146_v20 = vld [vmem:[%s2224_s17 + $0x33c] sm:$0xf]  ;;  %v1542_v26 = vor.u32 %v2048_v11, %v1539_v12 }
  0x2f   : > { %1036 = vmatpush.bf16.msrb.mxu2 %v1522_v32  ;;  %v1531_v18 = vld [vmem:[%s2224_s17 + $0xa0] sm:$0xf0]  ;;  %v1939_v21 = vld [vmem:[%s2224_s17 + $0x3b8] sm:$0xf0]  ;;  %v1929_v22 = vld [vmem:[%s2224_s17 + $0x330] sm:$0xf]  ;;  %v1530_v27 = vor.u32 %v2063_v16, %v1529_v13 }
  0x30   : > { %1049 = vmatpush.bf16.msrb.mxu3 %v1526_v36  ;;  %1023 = vmatpush.bf16.msrb.mxu1 %v1518_v46  ;;  %v2161_v23 = vld [vmem:[%s2224_s17 + $0x3ac] sm:$0xf0]  ;;  %v2145_v24 = vld [vmem:[%s2224_s17 + $0x334] sm:$0xf]  ;;  %v1809_v28 = vld [vmem:[%s2224_s17 + $0x238] sm:$0xf]  ;;  %v1534_v30 = vor.u32 %v2047_v17, %v1531_v18  ;;  %v1942_v31 = vor.u32 %v2146_v20, %v1939_v21 }
  0x31   : > { %2011 = vmatmul.msk.bf16.vlgmr.msrb.gmra.mxu0 %vm947_vm0, %v2265_v52  ;;  %v1931_v25 = vld [vmem:[%s2224_s17 + $0x3b0] sm:$0xf0]  ;;  %v2130_v29 = vld [vmem:[%s2224_s17 + $0x2b4] sm:$0xf0]  ;;  %v1930_v32 = vor.u32 %v2161_v23, %v1929_v22  ;;  %v2114_v34 = vld [vmem:[%s2224_s17 + $0x23c] sm:$0xf] }
  0x32   : > { %1059 = vmatpush.bf16.msra.mxu0 %v1914_v47  ;;  %2013 = vmatmul.msk.bf16.vlgmr.msrb.gmra.mxu2 %vm947_vm0, %v2265_v52  ;;  %v1934_v33 = vor.u32 %v2145_v24, %v1931_v25  ;;  %v1811_v35 = vld [vmem:[%s2224_s17 + $0x2b8] sm:$0xf0]  ;;  %v1810_v36 = vor.u32 %v2130_v29, %v1809_v28  ;;  %v2129_v38 = vld [vmem:[%s2224_s17 + $0x2ac] sm:$0xf0]  ;;  %v2113_v40 = vld [vmem:[%s2224_s17 + $0x234] sm:$0xf] }
  0x33   : > { %1085 = vmatpush.bf16.msra.mxu2 %v1922_v37  ;;  %2012 = vmatmul.msk.bf16.vlgmr.msrb.gmra.mxu1 %vm947_vm0, %v2265_v52  ;;  %v1801_v37 = vld [vmem:[%s2224_s17 + $0x230] sm:$0xf]  ;;  %v1814_v39 = vor.u32 %v2114_v34, %v1811_v35  ;;  %v1681_v42 = vld [vmem:[%s2224_s17 + $0x138] sm:$0xf]  ;;  %v2082_v44 = vld [vmem:[%s2224_s17 + $0x13c] sm:$0xf] }
  0x34   : > { %1098 = vmatpush.bf16.msra.mxu3 %v1926_v41  ;;  %1072 = vmatpush.bf16.msra.mxu1 %v1918_v50  ;;  %v1803_v41 = vld [vmem:[%s2224_s17 + $0x2b0] sm:$0xf0]  ;;  %v2098_v43 = vld [vmem:[%s2224_s17 + $0x1b4] sm:$0xf0]  ;;  %v1683_v45 = vld [vmem:[%s2224_s17 + $0x1b8] sm:$0xf0]  ;;  %v1802_v46 = vor.u32 %v2129_v38, %v1801_v37 }
  0x35   : > { %2014 = vmatmul.msk.bf16.vlgmr.msrb.gmra.mxu3 %vm947_vm0, %v2265_v52  ;;  %v1806_v47 = vor.u32 %v2113_v40, %v1803_v41  ;;  %v1673_v48 = vld [vmem:[%s2224_s17 + $0x130] sm:$0xf]  ;;  %v2081_v50 = vld [vmem:[%s2224_s17 + $0x134] sm:$0xf]  ;;  %v1686_v53 = vor.u32 %v2082_v44, %v1683_v45  ;;  %v1553_v55 = vld [vmem:[%s2224_s17 + $0x38] sm:$0xf] }
  0x36   : > { %1060 = vmatpush.bf16.msra.mxu0 %v1786_v60  ;;  %v2097_v49 = vld [vmem:[%s2224_s17 + $0x1ac] sm:$0xf0]  ;;  %v1675_v54 = vld [vmem:[%s2224_s17 + $0x1b0] sm:$0xf0]  ;;  %v2066_v56 = vld [vmem:[%s2224_s17 + $0xb4] sm:$0xf0] }
  0x37   : > { %1086 = vmatpush.bf16.msra.mxu2 %v1794_v51  ;;  %v1682_v51 = vor.u32 %v2098_v43, %v1681_v42  ;;  %v2050_v57 = vld [vmem:[%s2224_s17 + $0x3c] sm:$0xf]  ;;  %v2164_v60 = vld [vmem:[%s2224_s17 + $0x3c4] sm:$0xf0]  ;;  %v2148_v61 = vld [vmem:[%s2224_s17 + $0x34c] sm:$0xf]  ;;  %v1554_v4 = vor.u32 %v2066_v56, %v1553_v55 }
  0x38   : > { %1099 = vmatpush.bf16.msra.mxu3 %v1798_v59  ;;  %1073 = vmatpush.bf16.msra.mxu1 %v1790_v63  ;;  %v1555_v58 = vld [vmem:[%s2224_s17 + $0xb8] sm:$0xf0]  ;;  %v1953_v59 = vld [vmem:[%s2224_s17 + $0x348] sm:$0xf]  ;;  %v1955_v62 = vld [vmem:[%s2224_s17 + $0x3c8] sm:$0xf0]  ;;  %v1674_v63 = vor.u32 %v2097_v49, %v1673_v48 }
  0x39   : > { %v1545_v1 = vld [vmem:[%s2224_s17 + $0x30] sm:$0xf]  ;;  %v2049_v3 = vld [vmem:[%s2224_s17 + $0x34] sm:$0xf]  ;;  %v1558_v5 = vor.u32 %v2050_v57, %v1555_v58  ;;  %v1945_v7 = vld [vmem:[%s2224_s17 + $0x340] sm:$0xf] }
  0x3a   : > { %1061 = vmatpush.bf16.msra.mxu0 %v1658_v10  ;;  %v2065_v2 = vld [vmem:[%s2224_s17 + $0xac] sm:$0xf0]  ;;  %v1547_v6 = vld [vmem:[%s2224_s17 + $0xb0] sm:$0xf0]  ;;  %v2163_v8 = vld [vmem:[%s2224_s17 + $0x3bc] sm:$0xf0]  ;;  %v1958_v10 = vor.u32 %v2148_v61, %v1955_v62 }
  0x3b   : > { %1087 = vmatpush.bf16.msra.mxu2 %v1666_v0  ;;  %v1678_v0 = vor.u32 %v2081_v50, %v1675_v54  ;;  %v2147_v11 = vld [vmem:[%s2224_s17 + $0x344] sm:$0xf]  ;;  %v1825_v13 = vld [vmem:[%s2224_s17 + $0x248] sm:$0xf]  ;;  %v1827_v16 = vld [vmem:[%s2224_s17 + $0x2c8] sm:$0xf0]  ;;  %v1546_v17 = vor.u32 %v2065_v2, %v1545_v1  ;;  %v1550_v18 = vor.u32 %v2049_v3, %v1547_v6 }
  0x3c   : > { %1100 = vmatpush.bf16.msra.mxu3 %v1670_v9  ;;  %1074 = vmatpush.bf16.msra.mxu1 %v1662_v14  ;;  %v1954_v9 = vor.u32 %v2164_v60, %v1953_v59  ;;  %v1947_v12 = vld [vmem:[%s2224_s17 + $0x3c0] sm:$0xf0]  ;;  %v2132_v14 = vld [vmem:[%s2224_s17 + $0x2c4] sm:$0xf0]  ;;  %v1817_v21 = vld [vmem:[%s2224_s17 + $0x240] sm:$0xf] }
  0x3d   : > { %v1950_v20 = vor.u32 %v2147_v11, %v1947_v12  ;;  %v1826_v22 = vor.u32 %v2132_v14, %v1825_v13  ;;  %v2131_v24 = vld [vmem:[%s2224_s17 + $0x2bc] sm:$0xf0]  ;;  %v2115_v25 = vld [vmem:[%s2224_s17 + $0x244] sm:$0xf]  ;;  %v2100_v28 = vld [vmem:[%s2224_s17 + $0x1c4] sm:$0xf0] }
  0x3e   : > { %1062 = vmatpush.bf16.msra.mxu0 %v1530_v27  ;;  %v1697_v27 = vld [vmem:[%s2224_s17 + $0x148] sm:$0xf]  ;;  %v1818_v29 = vor.u32 %v2131_v24, %v1817_v21  ;;  %v2099_v34 = vld [vmem:[%s2224_s17 + $0x1bc] sm:$0xf0]  ;;  %v2083_v35 = vld [vmem:[%s2224_s17 + $0x144] sm:$0xf] }
  0x3f   : > { %1088 = vmatpush.bf16.msra.mxu2 %v1538_v15  ;;  %v2116_v15 = vld [vmem:[%s2224_s17 + $0x24c] sm:$0xf]  ;;  %v1569_v37 = vld [vmem:[%s2224_s17 + $0x48] sm:$0xf]  ;;  %v1698_v38 = vor.u32 %v2100_v28, %v1697_v27  ;;  %v1561_v45 = vld [vmem:[%s2224_s17 + $0x40] sm:$0xf] }
  0x40   : > { %1101 = vmatpush.bf16.msra.mxu3 %v1542_v26  ;;  %1075 = vmatpush.bf16.msra.mxu1 %v1534_v30  ;;  %v1830_v23 = vor.u32 %v2116_v15, %v1827_v16  ;;  %v1819_v26 = vld [vmem:[%s2224_s17 + $0x2c0] sm:$0xf0]  ;;  %v2068_v40 = vld [vmem:[%s2224_s17 + $0xc4] sm:$0xf0]  ;;  %v2052_v41 = vld [vmem:[%s2224_s17 + $0x4c] sm:$0xf] }
  0x41   : > { %2015 = vmatmul.msk.bf16.vlgmr.msra.gmra.mxu0 %vm947_vm0, %v2265_v52  ;;  %v1822_v30 = vor.u32 %v2115_v25, %v1819_v26  ;;  %v1571_v42 = vld [vmem:[%s2224_s17 + $0xc8] sm:$0xf0]  ;;  %v1563_v48 = vld [vmem:[%s2224_s17 + $0xc0] sm:$0xf0]  ;;  %v1969_v49 = vld [vmem:[%s2224_s17 + $0x358] sm:$0xf]  ;;  %v1570_v55 = vor.u32 %v2068_v40, %v1569_v37 }
  0x42   : > { %1111 = vmatpush.bf16.msrb.mxu0 %v1930_v32  ;;  %2017 = vmatmul.msk.bf16.vlgmr.msra.gmra.mxu2 %vm947_vm0, %v2265_v52  ;;  %v1699_v32 = vld [vmem:[%s2224_s17 + $0x1c8] sm:$0xf0]  ;;  %v2166_v50 = vld [vmem:[%s2224_s17 + $0x3d4] sm:$0xf0]  ;;  %v1961_v54 = vld [vmem:[%s2224_s17 + $0x350] sm:$0xf]  ;;  %v1574_v56 = vor.u32 %v2052_v41, %v1571_v42 }
  0x43   : > { %1137 = vmatpush.bf16.msrb.mxu2 %v1938_v19  ;;  %2016 = vmatmul.msk.bf16.vlgmr.msra.gmra.mxu1 %vm947_vm0, %v2265_v52  ;;  %v1946_v19 = vor.u32 %v2163_v8, %v1945_v7  ;;  %v2165_v57 = vld [vmem:[%s2224_s17 + $0x3cc] sm:$0xf0]  ;;  %v2149_v58 = vld [vmem:[%s2224_s17 + $0x354] sm:$0xf]  ;;  %v1970_v62 = vor.u32 %v2166_v50, %v1969_v49  ;;  %v2134_v1 = vld [vmem:[%s2224_s17 + $0x2d4] sm:$0xf0] }
  0x44   : > { %1150 = vmatpush.bf16.msrb.mxu3 %v1942_v31  ;;  %1124 = vmatpush.bf16.msrb.mxu1 %v1934_v33  ;;  %v2084_v31 = vld [vmem:[%s2224_s17 + $0x14c] sm:$0xf]  ;;  %v1689_v33 = vld [vmem:[%s2224_s17 + $0x140] sm:$0xf]  ;;  %v1963_v59 = vld [vmem:[%s2224_s17 + $0x3d0] sm:$0xf0]  ;;  %v1962_v2 = vor.u32 %v2165_v57, %v1961_v54 }
  0x45   : > { %2018 = vmatmul.msk.bf16.vlgmr.msra.gmra.mxu3 %vm947_vm0, %v2265_v52  ;;  %v1690_v43 = vor.u32 %v2099_v34, %v1689_v33  ;;  %v1966_v3 = vor.u32 %v2149_v58, %v1963_v59  ;;  %v1833_v6 = vld [vmem:[%s2224_s17 + $0x250] sm:$0xf]  ;;  %v2117_v8 = vld [vmem:[%s2224_s17 + $0x254] sm:$0xf]  ;;  %v1713_v14 = vld [vmem:[%s2224_s17 + $0x158] sm:$0xf] }
  0x46   : > { %1112 = vmatpush.bf16.msrb.mxu0 %v1802_v46  ;;  %v2067_v46 = vld [vmem:[%s2224_s17 + $0xbc] sm:$0xf0]  ;;  %v2133_v7 = vld [vmem:[%s2224_s17 + $0x2cc] sm:$0xf0]  ;;  %v2102_v15 = vld [vmem:[%s2224_s17 + $0x1d4] sm:$0xf0] }
  0x47   : > { %1138 = vmatpush.bf16.msrb.mxu2 %v1810_v36  ;;  %v1691_v36 = vld [vmem:[%s2224_s17 + $0x1c0] sm:$0xf0]  ;;  %v1562_v60 = vor.u32 %v2067_v46, %v1561_v45  ;;  %v1834_v12 = vor.u32 %v2133_v7, %v1833_v6  ;;  %v2086_v16 = vld [vmem:[%s2224_s17 + $0x15c] sm:$0xf]  ;;  %v1707_v21 = vld [vmem:[%s2224_s17 + $0x1d0] sm:$0xf0] }
  0x48   : > { %1151 = vmatpush.bf16.msrb.mxu3 %v1814_v39  ;;  %1125 = vmatpush.bf16.msrb.mxu1 %v1806_v47  ;;  %v1702_v39 = vor.u32 %v2084_v31, %v1699_v32  ;;  %v1694_v44 = vor.u32 %v2083_v35, %v1691_v36  ;;  %v2051_v47 = vld [vmem:[%s2224_s17 + $0x44] sm:$0xf]  ;;  %v2070_v25 = vld [vmem:[%s2224_s17 + $0xd4] sm:$0xf0]  ;;  %v2054_v26 = vld [vmem:[%s2224_s17 + $0x5c] sm:$0xf] }
  0x49   : > { %v1566_v61 = vor.u32 %v2051_v47, %v1563_v48  ;;  %v1587_v27 = vld [vmem:[%s2224_s17 + $0xd8] sm:$0xf0]  ;;  %v2069_v31 = vld [vmem:[%s2224_s17 + $0xcc] sm:$0xf0]  ;;  %v2053_v32 = vld [vmem:[%s2224_s17 + $0x54] sm:$0xf] }
  0x4a   : > { %1113 = vmatpush.bf16.msrb.mxu0 %v1674_v63  ;;  %v1579_v33 = vld [vmem:[%s2224_s17 + $0xd0] sm:$0xf0]  ;;  %v1985_v34 = vld [vmem:[%s2224_s17 + $0x368] sm:$0xf]  ;;  %v2152_v36 = vld [vmem:[%s2224_s17 + $0x36c] sm:$0xf]  ;;  %v1590_v40 = vor.u32 %v2054_v26, %v1587_v27 }
  0x4b   : > { %1139 = vmatpush.bf16.msrb.mxu2 %v1682_v51  ;;  %v2150_v51 = vld [vmem:[%s2224_s17 + $0x35c] sm:$0xf]  ;;  %v2168_v35 = vld [vmem:[%s2224_s17 + $0x3e4] sm:$0xf0]  ;;  %v1987_v37 = vld [vmem:[%s2224_s17 + $0x3e8] sm:$0xf0]  ;;  %v1582_v45 = vor.u32 %v2053_v32, %v1579_v33 }
  0x4c   : > { %1152 = vmatpush.bf16.msrb.mxu3 %v1686_v53  ;;  %1126 = vmatpush.bf16.msrb.mxu1 %v1678_v0  ;;  %v1971_v53 = vld [vmem:[%s2224_s17 + $0x3d8] sm:$0xf0]  ;;  %v1841_v0 = vld [vmem:[%s2224_s17 + $0x258] sm:$0xf]  ;;  %v2167_v41 = vld [vmem:[%s2224_s17 + $0x3dc] sm:$0xf0]  ;;  %v1986_v46 = vor.u32 %v2168_v35, %v1985_v34  ;;  %v1990_v47 = vor.u32 %v2152_v36, %v1987_v37 }
  0x4d   : > { %v1974_v63 = vor.u32 %v2150_v51, %v1971_v53  ;;  %v2151_v42 = vld [vmem:[%s2224_s17 + $0x364] sm:$0xf]  ;;  %v1857_v48 = vld [vmem:[%s2224_s17 + $0x268] sm:$0xf]  ;;  %v2120_v53 = vld [vmem:[%s2224_s17 + $0x26c] sm:$0xf] }
  0x4e   : > { %1114 = vmatpush.bf16.msrb.mxu0 %v1546_v17  ;;  %v1715_v17 = vld [vmem:[%s2224_s17 + $0x1d8] sm:$0xf0]  ;;  %v2136_v49 = vld [vmem:[%s2224_s17 + $0x2e4] sm:$0xf0]  ;;  %v1859_v54 = vld [vmem:[%s2224_s17 + $0x2e8] sm:$0xf0] }
  0x4f   : > { %1140 = vmatpush.bf16.msrb.mxu2 %v1554_v4  ;;  %v2118_v4 = vld [vmem:[%s2224_s17 + $0x25c] sm:$0xf]  ;;  %v1718_v24 = vor.u32 %v2086_v16, %v1715_v17  ;;  %v2119_v57 = vld [vmem:[%s2224_s17 + $0x264] sm:$0xf]  ;;  %v1858_v59 = vor.u32 %v2136_v49, %v1857_v48  ;;  %v1601_v7 = vld [vmem:[%s2224_s17 + $0x68] sm:$0xf] }
  0x50   : > { %1153 = vmatpush.bf16.msrb.mxu3 %v1558_v5  ;;  %1127 = vmatpush.bf16.msrb.mxu1 %v1550_v18  ;;  %v1843_v5 = vld [vmem:[%s2224_s17 + $0x2d8] sm:$0xf0]  ;;  %v1705_v18 = vld [vmem:[%s2224_s17 + $0x150] sm:$0xf]  ;;  %v1851_v58 = vld [vmem:[%s2224_s17 + $0x2e0] sm:$0xf0] }
  0x51   : > { %2019 = vmatmul.msk.bf16.vlgmr.msrb.gmra.mxu0 %vm947_vm0, %v2265_v52  ;;  %v1846_v11 = vor.u32 %v2118_v4, %v1843_v5  ;;  %v2103_v4 = vld [vmem:[%s2224_s17 + $0x1dc] sm:$0xf0]  ;;  %v2087_v5 = vld [vmem:[%s2224_s17 + $0x164] sm:$0xf]  ;;  %v2169_v26 = vld [vmem:[%s2224_s17 + $0x3ec] sm:$0xf0] }
  0x52   : > { %1163 = vmatpush.bf16.msra.mxu0 %v1946_v19  ;;  %2021 = vmatmul.msk.bf16.vlgmr.msrb.gmra.mxu2 %vm947_vm0, %v2265_v52  ;;  %v2101_v19 = vld [vmem:[%s2224_s17 + $0x1cc] sm:$0xf0]  ;;  %v1723_v6 = vld [vmem:[%s2224_s17 + $0x1e0] sm:$0xf0]  ;;  %v2071_v16 = vld [vmem:[%s2224_s17 + $0xdc] sm:$0xf0] }
  0x53   : > { %1189 = vmatpush.bf16.msra.mxu2 %v1954_v9  ;;  %2020 = vmatmul.msk.bf16.vlgmr.msrb.gmra.mxu1 %vm947_vm0, %v2265_v52  ;;  %v1835_v9 = vld [vmem:[%s2224_s17 + $0x2d0] sm:$0xf0]  ;;  %v1706_v28 = vor.u32 %v2101_v19, %v1705_v18  ;;  %v2055_v17 = vld [vmem:[%s2224_s17 + $0x64] sm:$0xf]  ;;  %v2001_v19 = vld [vmem:[%s2224_s17 + $0x378] sm:$0xf] }
  0x54   : > { %1202 = vmatpush.bf16.msra.mxu3 %v1958_v10  ;;  %1176 = vmatpush.bf16.msra.mxu1 %v1950_v20  ;;  %v1842_v10 = vor.u32 %v2134_v1, %v1841_v0  ;;  %v1838_v13 = vor.u32 %v2117_v8, %v1835_v9  ;;  %v2085_v20 = vld [vmem:[%s2224_s17 + $0x154] sm:$0xf]  ;;  %v2104_v0 = vld [vmem:[%s2224_s17 + $0x1e4] sm:$0xf0]  ;;  %v2088_v1 = vld [vmem:[%s2224_s17 + $0x16c] sm:$0xf] }
  0x55   : > { %2022 = vmatmul.msk.bf16.vlgmr.msrb.gmra.mxu3 %vm947_vm0, %v2265_v52  ;;  %v1595_v18 = vld [vmem:[%s2224_s17 + $0xe0] sm:$0xf0]  ;;  %v2153_v27 = vld [vmem:[%s2224_s17 + $0x374] sm:$0xf]  ;;  %v1873_v33 = vld [vmem:[%s2224_s17 + $0x278] sm:$0xf] }
  0x56   : > { %1164 = vmatpush.bf16.msra.mxu0 %v1818_v29  ;;  %v1710_v29 = vor.u32 %v2085_v20, %v1707_v21  ;;  %v2170_v20 = vld [vmem:[%s2224_s17 + $0x3f4] sm:$0xf0]  ;;  %v2154_v21 = vld [vmem:[%s2224_s17 + $0x37c] sm:$0xf] }
  0x57   : > { %1190 = vmatpush.bf16.msra.mxu2 %v1826_v22  ;;  %v1585_v22 = vld [vmem:[%s2224_s17 + $0x58] sm:$0xf]  ;;  %v2122_v37 = vld [vmem:[%s2224_s17 + $0x27c] sm:$0xf] }
  0x58   : > { %1203 = vmatpush.bf16.msra.mxu3 %v1830_v23  ;;  %1177 = vmatpush.bf16.msra.mxu1 %v1822_v30  ;;  %v1714_v23 = vor.u32 %v2102_v15, %v1713_v14  ;;  %v1577_v30 = vld [vmem:[%s2224_s17 + $0x50] sm:$0xf]  ;;  %v1726_v14 = vor.u32 %v2087_v5, %v1723_v6  ;;  %v1593_v15 = vld [vmem:[%s2224_s17 + $0x60] sm:$0xf]  ;;  %v2138_v34 = vld [vmem:[%s2224_s17 + $0x2f4] sm:$0xf0] }
  0x59   : > { %v2106_v48 = vld [vmem:[%s2224_s17 + $0x1f4] sm:$0xf0]  ;;  %v2090_v49 = vld [vmem:[%s2224_s17 + $0x17c] sm:$0xf] }
  0x5a   : > { %1165 = vmatpush.bf16.msra.mxu0 %v1690_v43  ;;  %v1979_v43 = vld [vmem:[%s2224_s17 + $0x3e0] sm:$0xf0] }
  0x5b   : > { %1191 = vmatpush.bf16.msra.mxu2 %v1698_v38  ;;  %v1977_v38 = vld [vmem:[%s2224_s17 + $0x360] sm:$0xf]  ;;  %v1982_v51 = vor.u32 %v2151_v42, %v1979_v43  ;;  %v1867_v42 = vld [vmem:[%s2224_s17 + $0x2f0] sm:$0xf0]  ;;  %v1874_v43 = vor.u32 %v2138_v34, %v1873_v33 }
  0x5c   : > { %1204 = vmatpush.bf16.msra.mxu3 %v1702_v39  ;;  %1178 = vmatpush.bf16.msra.mxu1 %v1694_v44  ;;  %v1586_v39 = vor.u32 %v2070_v25, %v1585_v22  ;;  %v1578_v44 = vor.u32 %v2069_v31, %v1577_v30  ;;  %v1978_v50 = vor.u32 %v2167_v41, %v1977_v38  ;;  %v2003_v22 = vld [vmem:[%s2224_s17 + $0x3f8] sm:$0xf0]  ;;  %v2121_v41 = vld [vmem:[%s2224_s17 + $0x274] sm:$0xf] }
  0x5d   : > { %v1598_v30 = vor.u32 %v2055_v17, %v1595_v18  ;;  %v2002_v31 = vor.u32 %v2170_v20, %v2001_v19  ;;  %v2006_v32 = vor.u32 %v2154_v21, %v2003_v22  ;;  %v1875_v38 = vld [vmem:[%s2224_s17 + $0x2f8] sm:$0xf0] }
  0x5e   : > { %1166 = vmatpush.bf16.msra.mxu0 %v1562_v60  ;;  %v1862_v60 = vor.u32 %v2120_v53, %v1859_v54  ;;  %v2105_v53 = vld [vmem:[%s2224_s17 + $0x1ec] sm:$0xf0]  ;;  %v2089_v54 = vld [vmem:[%s2224_s17 + $0x174] sm:$0xf] }
  0x5f   : > { %1192 = vmatpush.bf16.msra.mxu2 %v1570_v55  ;;  %v1849_v55 = vld [vmem:[%s2224_s17 + $0x260] sm:$0xf] }
  0x60   : > { %1205 = vmatpush.bf16.msra.mxu3 %v1574_v56  ;;  %1179 = vmatpush.bf16.msra.mxu1 %v1566_v61  ;;  %v2135_v56 = vld [vmem:[%s2224_s17 + $0x2dc] sm:$0xf0] }
  0x61   : > { %2023 = vmatmul.msk.bf16.vlgmr.msra.gmra.mxu0 %vm947_vm0, %v2265_v52  ;;  %v1850_v61 = vor.u32 %v2135_v56, %v1849_v55  ;;  %v1739_v55 = vld [vmem:[%s2224_s17 + $0x1f0] sm:$0xf0] }
  0x62   : > { %1215 = vmatpush.bf16.msrb.mxu0 %v1962_v2  ;;  %2025 = vmatmul.msk.bf16.vlgmr.msra.gmra.mxu2 %vm947_vm0, %v2265_v52  ;;  %v1731_v2 = vld [vmem:[%s2224_s17 + $0x1e8] sm:$0xf0] }
  0x63   : > { %1241 = vmatpush.bf16.msrb.mxu2 %v1970_v62  ;;  %2024 = vmatmul.msk.bf16.vlgmr.msra.gmra.mxu1 %vm947_vm0, %v2265_v52  ;;  %v1854_v62 = vor.u32 %v2119_v57, %v1851_v58  ;;  %v1734_v9 = vor.u32 %v2088_v1, %v1731_v2  ;;  %v1617_v58 = vld [vmem:[%s2224_s17 + $0x78] sm:$0xf]  ;;  %v2073_v1 = vld [vmem:[%s2224_s17 + $0xec] sm:$0xf0]  ;;  %v2057_v2 = vld [vmem:[%s2224_s17 + $0x74] sm:$0xf] }
  0x64   : > { %1254 = vmatpush.bf16.msrb.mxu3 %v1974_v63  ;;  %1228 = vmatpush.bf16.msrb.mxu1 %v1966_v3  ;;  %v1729_v63 = vld [vmem:[%s2224_s17 + $0x168] sm:$0xf]  ;;  %v1721_v3 = vld [vmem:[%s2224_s17 + $0x160] sm:$0xf] }
  0x65   : > { %2026 = vmatmul.msk.bf16.vlgmr.msra.gmra.mxu3 %vm947_vm0, %v2265_v52  ;;  %v1730_v8 = vor.u32 %v2104_v0, %v1729_v63  ;;  %v1619_v63 = vld [vmem:[%s2224_s17 + $0xf8] sm:$0xf0]  ;;  %v1609_v0 = vld [vmem:[%s2224_s17 + $0x70] sm:$0xf] }
  0x66   : > { %1216 = vmatpush.bf16.msrb.mxu0 %v1834_v12  ;;  %v1603_v12 = vld [vmem:[%s2224_s17 + $0xe8] sm:$0xf0]  ;;  %v1610_v6 = vor.u32 %v2073_v1, %v1609_v0 }
  0x67   : > { %1242 = vmatpush.bf16.msrb.mxu2 %v1842_v10  ;;  %v2072_v10 = vld [vmem:[%s2224_s17 + $0xe4] sm:$0xf0] }
  0x68   : > { %1255 = vmatpush.bf16.msrb.mxu3 %v1846_v11  ;;  %1229 = vmatpush.bf16.msrb.mxu1 %v1838_v13  ;;  %v2056_v11 = vld [vmem:[%s2224_s17 + $0x6c] sm:$0xf]  ;;  %v1722_v13 = vor.u32 %v2103_v4, %v1721_v3  ;;  %v1611_v3 = vld [vmem:[%s2224_s17 + $0xf0] sm:$0xf0] }
  0x69   : > { %v1606_v25 = vor.u32 %v2056_v11, %v1603_v12 }
  0x6a   : > { %1217 = vmatpush.bf16.msrb.mxu0 %v1706_v28  ;;  %v1995_v28 = vld [vmem:[%s2224_s17 + $0x3f0] sm:$0xf0] }
  0x6b   : > { %1243 = vmatpush.bf16.msrb.mxu2 %v1714_v23  ;;  %v1993_v23 = vld [vmem:[%s2224_s17 + $0x370] sm:$0xf]  ;;  %v1998_v36 = vor.u32 %v2153_v27, %v1995_v28 }
  0x6c   : > { %1256 = vmatpush.bf16.msrb.mxu3 %v1718_v24  ;;  %1230 = vmatpush.bf16.msrb.mxu1 %v1710_v29  ;;  %v1602_v24 = vor.u32 %v2072_v10, %v1601_v7  ;;  %v1594_v29 = vor.u32 %v2071_v16, %v1593_v15  ;;  %v1994_v35 = vor.u32 %v2169_v26, %v1993_v23 }
  0x6d   : > { %v1614_v7 = vor.u32 %v2057_v2, %v1611_v3 }
  0x6e   : > { %1218 = vmatpush.bf16.msrb.mxu0 %v1578_v44  ;;  %v1878_v44 = vor.u32 %v2122_v37, %v1875_v38 }
  0x6f   : > { %1244 = vmatpush.bf16.msrb.mxu2 %v1586_v39  ;;  %v1865_v39 = vld [vmem:[%s2224_s17 + $0x270] sm:$0xf] }
  0x70   : > { %1257 = vmatpush.bf16.msrb.mxu3 %v1590_v40  ;;  %1231 = vmatpush.bf16.msrb.mxu1 %v1582_v45  ;;  %v2137_v40 = vld [vmem:[%s2224_s17 + $0x2ec] sm:$0xf0] }
  0x71   : > { %2027 = vmatmul.msk.bf16.vlgmr.msrb.gmra.mxu0 %vm947_vm0, %v2265_v52  ;;  %v1866_v45 = vor.u32 %v2137_v40, %v1865_v39 }
  0x72   : > { %1267 = vmatpush.bf16.msra.mxu0 %v1978_v50  ;;  %2029 = vmatmul.msk.bf16.vlgmr.msrb.gmra.mxu2 %vm947_vm0, %v2265_v52  ;;  %v1747_v50 = vld [vmem:[%s2224_s17 + $0x1f8] sm:$0xf0] }
  0x73   : > { %1293 = vmatpush.bf16.msra.mxu2 %v1986_v46  ;;  %2028 = vmatmul.msk.bf16.vlgmr.msrb.gmra.mxu1 %vm947_vm0, %v2265_v52  ;;  %v1870_v46 = vor.u32 %v2121_v41, %v1867_v42  ;;  %v1750_v57 = vor.u32 %v2090_v49, %v1747_v50 }
  0x74   : > { %1306 = vmatpush.bf16.msra.mxu3 %v1990_v47  ;;  %1280 = vmatpush.bf16.msra.mxu1 %v1982_v51  ;;  %v1745_v47 = vld [vmem:[%s2224_s17 + $0x178] sm:$0xf]  ;;  %v1737_v51 = vld [vmem:[%s2224_s17 + $0x170] sm:$0xf] }
  0x75   : > { %2030 = vmatmul.msk.bf16.vlgmr.msrb.gmra.mxu3 %vm947_vm0, %v2265_v52  ;;  %v1746_v56 = vor.u32 %v2106_v48, %v1745_v47 }
  0x76   : > { %1268 = vmatpush.bf16.msra.mxu0 %v1850_v61  ;;  %v1742_v61 = vor.u32 %v2089_v54, %v1739_v55 }
  0x77   : > { %1294 = vmatpush.bf16.msra.mxu2 %v1858_v59  ;;  %v2074_v59 = vld [vmem:[%s2224_s17 + $0xf4] sm:$0xf0] }
  0x78   : > { %1307 = vmatpush.bf16.msra.mxu3 %v1862_v60  ;;  %1281 = vmatpush.bf16.msra.mxu1 %v1854_v62  ;;  %v1738_v60 = vor.u32 %v2105_v53, %v1737_v51  ;;  %v2058_v62 = vld [vmem:[%s2224_s17 + $0x7c] sm:$0xf]  ;;  %v1618_v4 = vor.u32 %v2074_v59, %v1617_v58 }
  0x79   : > { %v1622_v5 = vor.u32 %v2058_v62, %v1619_v63 }
  0x7a   : > { %1269 = vmatpush.bf16.msra.mxu0 %v1722_v13 }
  0x7b   : > { %1295 = vmatpush.bf16.msra.mxu2 %v1730_v8 }
  0x7c   : > { %1308 = vmatpush.bf16.msra.mxu3 %v1734_v9  ;;  %1282 = vmatpush.bf16.msra.mxu1 %v1726_v14 }
  0x7e   : > { %1270 = vmatpush.bf16.msra.mxu0 %v1594_v29 }
  0x7f   : > { %1296 = vmatpush.bf16.msra.mxu2 %v1602_v24 }
  0x80   : > { %1309 = vmatpush.bf16.msra.mxu3 %v1606_v25  ;;  %1283 = vmatpush.bf16.msra.mxu1 %v1598_v30 }
  0x81   : > { %2031 = vmatmul.msk.bf16.vlgmr.msra.gmra.mxu0 %vm947_vm0, %v2265_v52 }
  0x82   : > { %1319 = vmatpush.bf16.msrb.mxu0 %v1994_v35  ;;  %2033 = vmatmul.msk.bf16.vlgmr.msra.gmra.mxu2 %vm947_vm0, %v2265_v52 }
  0x83   : > { %1345 = vmatpush.bf16.msrb.mxu2 %v2002_v31  ;;  %2032 = vmatmul.msk.bf16.vlgmr.msra.gmra.mxu1 %vm947_vm0, %v2265_v52 }
  0x84   : > { %1358 = vmatpush.bf16.msrb.mxu3 %v2006_v32  ;;  %1332 = vmatpush.bf16.msrb.mxu1 %v1998_v36 }
  0x85   : > { %2034 = vmatmul.msk.bf16.vlgmr.msra.gmra.mxu3 %vm947_vm0, %v2265_v52 }
  0x86   : > { %1320 = vmatpush.bf16.msrb.mxu0 %v1866_v45 }
  0x87   : > { %1346 = vmatpush.bf16.msrb.mxu2 %v1874_v43 }
  0x88   : > { %1359 = vmatpush.bf16.msrb.mxu3 %v1878_v44  ;;  %1333 = vmatpush.bf16.msrb.mxu1 %v1870_v46 }
  0x8a   : > { %1321 = vmatpush.bf16.msrb.mxu0 %v1738_v60 }
  0x8b   : > { %1347 = vmatpush.bf16.msrb.mxu2 %v1746_v56 }
  0x8c   : > { %1360 = vmatpush.bf16.msrb.mxu3 %v1750_v57  ;;  %1334 = vmatpush.bf16.msrb.mxu1 %v1742_v61 }
  0x8e   : > { %1322 = vmatpush.bf16.msrb.mxu0 %v1610_v6 }
  0x8f   : > { %1348 = vmatpush.bf16.msrb.mxu2 %v1618_v4 }
  0x90   : > { %1361 = vmatpush.bf16.msrb.mxu3 %v1622_v5  ;;  %1335 = vmatpush.bf16.msrb.mxu1 %v1614_v7 }
  0x91   : > { %2035 = vmatmul.msk.bf16.vlgmr.msrb.gmra.mxu0 %vm947_vm0, %v2265_v52 }
  0x92   : > { %2037 = vmatmul.msk.bf16.vlgmr.msrb.gmra.mxu2 %vm947_vm0, %v2265_v52 }
  0x93   : > { %2036 = vmatmul.msk.bf16.vlgmr.msrb.gmra.mxu1 %vm947_vm0, %v2265_v52 }
  0x95   : > { %2038 = vmatmul.msk.bf16.vlgmr.msrb.gmra.mxu3 %vm947_vm0, %v2265_v52 }
  0x98   : > { %v2554_v8 = vpop.permute.xlu0 %304 }
  0x9e   : > { %v960_v9 = vpop.f32.mrf.mxu0  ;;  %v973_v10 = vpop.f32.mrf.mxu1 }
  0x9f   : > { %v961_v11 = vadd.f32 %v960_v9, %v2554_v8  ;;  %v974_v12 = vadd.f32 %v973_v10, %v2554_v8 }
  0xa1   : > { %v1367_v13 = vmax.f32 %v961_v11, 0.0  ;;  %v1368_v14 = vmax.f32 %v974_v12, 0.0 }
  0xa3   : > { %v1399_v15 = vpack.c.bf16 %v1368_v14, %v1367_v13 }
  0xa5   : > { %v986_v52 = vpop.f32.mrf.mxu2  ;;  %1415 = vst [vmem:[%s2562_s25] sm:$0xff] %v1399_v15 }
  0xa6   : > { %v987_v16 = vadd.f32 %v986_v52, %v2554_v8  ;;  %v999_v17 = vpop.f32.mrf.mxu3  ;;  %v962_v18 = vpop.f32.mrf.mxu0 }
  0xa7   : > { %v1000_v19 = vadd.f32 %v999_v17, %v2554_v8  ;;  %v975_v20 = vpop.f32.mrf.mxu1 }
  0xa8   : > { %v1369_v21 = vmax.f32 %v987_v16, 0.0 }
  0xa9   : > { %v1370_v22 = vmax.f32 %v1000_v19, 0.0 }
  0xab   : > { %v1400_v23 = vpack.c.bf16 %v1370_v22, %v1369_v21 }
  0xad   : > { %1416 = vst [vmem:[%s2562_s25 + $0x8] sm:$0xff] %v1400_v23  ;;  %v988_v24 = vpop.f32.mrf.mxu2 }
  0xae   : > { %v1001_v25 = vpop.f32.mrf.mxu3  ;;  %v1012_v26 = vpop.f32.mrf.mxu0 }
  0xaf   : > { %v1013_v27 = vadd.f32 %v1012_v26, %v2554_v8 }
  0xb0   : > { %v1025_v28 = vpop.f32.mrf.mxu1 }
  0xb1   : > { %v1026_v29 = vadd.f32 %v1025_v28, %v2554_v8  ;;  %v1371_v30 = vmax.f32 %v1013_v27, 0.0 }
  0xb3   : > { %v1372_v31 = vmax.f32 %v1026_v29, 0.0 }
  0xb5   : > { %v1401_v32 = vpack.c.bf16 %v1372_v31, %v1371_v30  ;;  %v1038_v33 = vpop.f32.mrf.mxu2 }
  0xb6   : > { %v1039_v34 = vadd.f32 %v1038_v33, %v2554_v8  ;;  %v1014_v37 = vpop.f32.mrf.mxu0 }
  0xb7   : > { %1417 = vst [vmem:[%s2562_s25 + $0x10] sm:$0xff] %v1401_v32 }
  0xb8   : > { %v1051_v35 = vpop.f32.mrf.mxu3  ;;  %v1373_v38 = vmax.f32 %v1039_v34, 0.0  ;;  %v1027_v39 = vpop.f32.mrf.mxu1 }
  0xb9   : > { %v1052_v36 = vadd.f32 %v1051_v35, %v2554_v8 }
  0xbb   : > { %v1374_v40 = vmax.f32 %v1052_v36, 0.0 }
  0xbd   : > { %v1402_v41 = vpack.c.bf16 %v1374_v40, %v1373_v38  ;;  %v1040_v42 = vpop.f32.mrf.mxu2 }
  0xbe   : > { %v1064_v44 = vpop.f32.mrf.mxu0 }
  0xbf   : > { %1418 = vst [vmem:[%s2562_s25 + $0x18] sm:$0xff] %v1402_v41  ;;  %v1065_v45 = vadd.f32 %v1064_v44, %v2554_v8 }
  0xc0   : > { %v1053_v43 = vpop.f32.mrf.mxu3  ;;  %v1077_v46 = vpop.f32.mrf.mxu1 }
  0xc1   : > { %v1078_v47 = vadd.f32 %v1077_v46, %v2554_v8  ;;  %v1375_v48 = vmax.f32 %v1065_v45, 0.0 }
  0xc3   : > { %v1376_v49 = vmax.f32 %v1078_v47, 0.0 }
  0xc5   : > { %v1403_v50 = vpack.c.bf16 %v1376_v49, %v1375_v48  ;;  %v1090_v51 = vpop.f32.mrf.mxu2 }
  0xc6   : > { %v1091_v53 = vadd.f32 %v1090_v51, %v2554_v8  ;;  %v1066_v56 = vpop.f32.mrf.mxu0 }
  0xc7   : > { %1419 = vst [vmem:[%s2562_s25 + $0x20] sm:$0xff] %v1403_v50 }
  0xc8   : > { %v1103_v54 = vpop.f32.mrf.mxu3  ;;  %v1377_v57 = vmax.f32 %v1091_v53, 0.0  ;;  %v1079_v58 = vpop.f32.mrf.mxu1 }
  0xc9   : > { %v1104_v55 = vadd.f32 %v1103_v54, %v2554_v8 }
  0xcb   : > { %v1378_v59 = vmax.f32 %v1104_v55, 0.0 }
  0xcd   : > { %v1404_v60 = vpack.c.bf16 %v1378_v59, %v1377_v57  ;;  %v1092_v61 = vpop.f32.mrf.mxu2 }
  0xce   : > { %v1116_v63 = vpop.f32.mrf.mxu0 }
  0xcf   : > { %1420 = vst [vmem:[%s2562_s25 + $0x28] sm:$0xff] %v1404_v60  ;;  %v1117_v0 = vadd.f32 %v1116_v63, %v2554_v8 }
  0xd0   : > { %v1105_v62 = vpop.f32.mrf.mxu3  ;;  %v1129_v1 = vpop.f32.mrf.mxu1 }
  0xd1   : > { %v1130_v2 = vadd.f32 %v1129_v1, %v2554_v8  ;;  %v1379_v3 = vmax.f32 %v1117_v0, 0.0 }
  0xd3   : > { %v1380_v4 = vmax.f32 %v1130_v2, 0.0 }
  0xd5   : > { %v1405_v5 = vpack.c.bf16 %v1380_v4, %v1379_v3  ;;  %v1142_v6 = vpop.f32.mrf.mxu2 }
  0xd6   : > { %v1143_v7 = vadd.f32 %v1142_v6, %v2554_v8  ;;  %v1118_v11 = vpop.f32.mrf.mxu0 }
  0xd7   : > { %1421 = vst [vmem:[%s2562_s25 + $0x30] sm:$0xff] %v1405_v5 }
  0xd8   : > { %v1155_v9 = vpop.f32.mrf.mxu3  ;;  %v1381_v12 = vmax.f32 %v1143_v7, 0.0  ;;  %v1131_v13 = vpop.f32.mrf.mxu1 }
  0xd9   : > { %v1156_v10 = vadd.f32 %v1155_v9, %v2554_v8 }
  0xdb   : > { %v1382_v14 = vmax.f32 %v1156_v10, 0.0 }
  0xdd   : > { %v1406_v15 = vpack.c.bf16 %v1382_v14, %v1381_v12  ;;  %v1144_v52 = vpop.f32.mrf.mxu2 }
  0xde   : > { %v1168_v17 = vpop.f32.mrf.mxu0 }
  0xdf   : > { %1422 = vst [vmem:[%s2562_s25 + $0x38] sm:$0xff] %v1406_v15  ;;  %v1169_v18 = vadd.f32 %v1168_v17, %v2554_v8 }
  0xe0   : > { %v1157_v16 = vpop.f32.mrf.mxu3  ;;  %v1181_v19 = vpop.f32.mrf.mxu1 }
  0xe1   : > { %v1182_v20 = vadd.f32 %v1181_v19, %v2554_v8  ;;  %v1383_v21 = vmax.f32 %v1169_v18, 0.0 }
  0xe3   : > { %v1384_v22 = vmax.f32 %v1182_v20, 0.0 }
  0xe5   : > { %v1407_v23 = vpack.c.bf16 %v1384_v22, %v1383_v21  ;;  %v1194_v24 = vpop.f32.mrf.mxu2 }
  0xe6   : > { %v1195_v25 = vadd.f32 %v1194_v24, %v2554_v8  ;;  %v1170_v28 = vpop.f32.mrf.mxu0 }
  0xe7   : > { %1423 = vst [vmem:[%s2562_s25 + $0x40] sm:$0xff] %v1407_v23 }
  0xe8   : > { %v1207_v26 = vpop.f32.mrf.mxu3  ;;  %v1385_v29 = vmax.f32 %v1195_v25, 0.0  ;;  %v1183_v30 = vpop.f32.mrf.mxu1 }
  0xe9   : > { %v1208_v27 = vadd.f32 %v1207_v26, %v2554_v8 }
  0xeb   : > { %v1386_v31 = vmax.f32 %v1208_v27, 0.0 }
  0xed   : > { %v1408_v32 = vpack.c.bf16 %v1386_v31, %v1385_v29  ;;  %v1196_v33 = vpop.f32.mrf.mxu2 }
  0xee   : > { %v1220_v35 = vpop.f32.mrf.mxu0 }
  0xef   : > { %1424 = vst [vmem:[%s2562_s25 + $0x48] sm:$0xff] %v1408_v32  ;;  %v1221_v36 = vadd.f32 %v1220_v35, %v2554_v8 }
  0xf0   : > { %v1209_v34 = vpop.f32.mrf.mxu3  ;;  %v1233_v37 = vpop.f32.mrf.mxu1 }
  0xf1   : > { %v1234_v38 = vadd.f32 %v1233_v37, %v2554_v8  ;;  %v1387_v39 = vmax.f32 %v1221_v36, 0.0 }
  0xf3   : > { %v1388_v40 = vmax.f32 %v1234_v38, 0.0 }
  0xf5   : > { %v1409_v41 = vpack.c.bf16 %v1388_v40, %v1387_v39  ;;  %v1246_v42 = vpop.f32.mrf.mxu2 }
  0xf6   : > { %v1247_v43 = vadd.f32 %v1246_v42, %v2554_v8  ;;  %v1222_v46 = vpop.f32.mrf.mxu0 }
  0xf7   : > { %1425 = vst [vmem:[%s2562_s25 + $0x50] sm:$0xff] %v1409_v41 }
  0xf8   : > { %v1259_v44 = vpop.f32.mrf.mxu3  ;;  %v1389_v47 = vmax.f32 %v1247_v43, 0.0  ;;  %v1235_v48 = vpop.f32.mrf.mxu1 }
  0xf9   : > { %v1260_v45 = vadd.f32 %v1259_v44, %v2554_v8 }
  0xfb   : > { %v1390_v49 = vmax.f32 %v1260_v45, 0.0 }
  0xfd   : > { %v1410_v50 = vpack.c.bf16 %v1390_v49, %v1389_v47  ;;  %v1248_v51 = vpop.f32.mrf.mxu2 }
  0xfe   : > { %v1272_v54 = vpop.f32.mrf.mxu0 }
  0xff   : > { %1426 = vst [vmem:[%s2562_s25 + $0x58] sm:$0xff] %v1410_v50  ;;  %v1273_v55 = vadd.f32 %v1272_v54, %v2554_v8 }
 0x100   : > { %v1261_v53 = vpop.f32.mrf.mxu3  ;;  %v1285_v56 = vpop.f32.mrf.mxu1 }
 0x101   : > { %v1286_v57 = vadd.f32 %v1285_v56, %v2554_v8  ;;  %v1391_v58 = vmax.f32 %v1273_v55, 0.0 }
 0x103   : > { %v1392_v59 = vmax.f32 %v1286_v57, 0.0 }
 0x105   : > { %v1411_v60 = vpack.c.bf16 %v1392_v59, %v1391_v58  ;;  %v1298_v61 = vpop.f32.mrf.mxu2 }
 0x106   : > { %v1299_v62 = vadd.f32 %v1298_v61, %v2554_v8  ;;  %v1274_v1 = vpop.f32.mrf.mxu0 }
 0x107   : > { %1427 = vst [vmem:[%s2562_s25 + $0x60] sm:$0xff] %v1411_v60 }
 0x108   : > { %v1311_v63 = vpop.f32.mrf.mxu3  ;;  %v1393_v2 = vmax.f32 %v1299_v62, 0.0  ;;  %v1287_v3 = vpop.f32.mrf.mxu1 }
 0x109   : > { %v1312_v0 = vadd.f32 %v1311_v63, %v2554_v8 }
 0x10b   : > { %v1394_v4 = vmax.f32 %v1312_v0, 0.0 }
 0x10d   : > { %v1412_v5 = vpack.c.bf16 %v1394_v4, %v1393_v2  ;;  %v1300_v6 = vpop.f32.mrf.mxu2 }
 0x10e   : > { %v1324_v9 = vpop.f32.mrf.mxu0 }
 0x10f   : > { %1428 = vst [vmem:[%s2562_s25 + $0x68] sm:$0xff] %v1412_v5  ;;  %v1325_v10 = vadd.f32 %v1324_v9, %v2554_v8 }
 0x110   : > { %v1313_v7 = vpop.f32.mrf.mxu3  ;;  %v1337_v11 = vpop.f32.mrf.mxu1 }
 0x111   : > { %v1338_v12 = vadd.f32 %v1337_v11, %v2554_v8  ;;  %v1395_v13 = vmax.f32 %v1325_v10, 0.0 }
 0x113   : > { %v1396_v14 = vmax.f32 %v1338_v12, 0.0 }
 0x115   : > { %v1413_v15 = vpack.c.bf16 %v1396_v14, %v1395_v13  ;;  %v1350_v52 = vpop.f32.mrf.mxu2 }
 0x116   : > { %v1351_v16 = vadd.f32 %v1350_v52, %v2554_v8  ;;  %v1326_v19 = vpop.f32.mrf.mxu0 }
 0x117   : > { %1429 = vst [vmem:[%s2562_s25 + $0x70] sm:$0xff] %v1413_v15 }
 0x118   : > { %v1363_v17 = vpop.f32.mrf.mxu3  ;;  %v1397_v20 = vmax.f32 %v1351_v16, 0.0  ;;  %v1339_v21 = vpop.f32.mrf.mxu1 }
 0x119   : > { %v1364_v18 = vadd.f32 %v1363_v17, %v2554_v8 }
 0x11b   : > { %v1398_v22 = vmax.f32 %v1364_v18, 0.0 }
 0x11d   : > { %v1414_v23 = vpack.c.bf16 %v1398_v22, %v1397_v20  ;;  %v1352_v24 = vpop.f32.mrf.mxu2 }
 0x11f   : > { %1430 = vst [vmem:[%s2562_s25 + $0x78] sm:$0xff] %v1414_v23 }
 0x120   : > { %v1365_v25 = vpop.f32.mrf.mxu3 }
 0x121 PF: > { %s13_s12 = sadd.s32 1, %s2187_s12  }
 0x122   : > { %p10_p4 = scmp.ge.s32.totalorder %s13_s12, 4  }
 0x124   :  { %12 = sbr.rel (!%p10_p4) target bundleno = 1 (0x1), region = 62 }

// kernel: whole_dis_forward.6
= control target key start
LH: loop header
LB: loop body
LE: loop exit
PB: predicated region body
PF: predicated region fallthrough
CT: control target
= control target key end

     0   :  { %s1151_s12 = smov 0   ;;  %s1331_s0 = inlined_call_operand.vmem [shape: bf16[2,128,1024], index: 0, kind: input, shape index: {}]   ;;  %s1332_s1 = inlined_call_operand.vmem [shape: bf16[16,128], index: 1, kind: input, shape index: {}]   ;;  %s1333_s2 = inlined_call_operand.vmem [shape: f32[16,1], index: 2, kind: input, shape index: {}]   ;;  %s1334_s3 = inlined_call_operand.vmem [shape: bf16[2,16,1024], index: 3, kind: output, shape index: {}]  }
   0x1 LB: > { %s774_s13 = sadd.s32 4294967295, %s1128_s12   ;;  %p778_p0 = scmp.ge.s32.totalorder %s1128_s12, 1  ;;  %s1128_s12 = sphi %s1151_s12, %s13_s12  }
   0x2   : > { %p137_p1 = scmp.lt.s32.totalorder %s1128_s12, 3 }
   0x4   : > { %p138_p2 = pnand %p778_p0, %p137_p1 }
   0x5   : > { %p161_p3 = scmp.lt.s32.totalorder (!%p138_p2), %s774_s13, 1 }
   0x6   : > { %141 = sbr.rel (%p138_p2) target bundleno = 230 (0xe6), region = 32 }
   0xb   : > { %s1336_s13 = smov (!%p161_p3, %s774_s13), 1 }
   0xc   : > { %s1045_s14 = sshll.u32 %s1336_s13, 9  ;;  %s1046_s24 = sshll.u32 %s1336_s13, 6 }
   0xd   : > { %s1165_s17 = scalar_lea.vmem %s1331_s0, %s1045_s14  ;;  %s1318_s27 = scalar_lea.vmem %s1334_s3, %s1046_s24 }
   0xe   : > { %v1013_v0 = vld [vmem:[%s1165_s17 + $0x1c0] sm:$0xf]  ;;  %v1104_v2 = vld [vmem:[%s1165_s17 + $0x1c4] sm:$0xf]  ;;  %v1021_v5 = vld [vmem:[%s1165_s17 + $0x1c8] sm:$0xf] }
   0xf   : > { %v1108_v1 = vld [vmem:[%s1165_s17 + $0x1dc] sm:$0xf0]  ;;  %v1015_v4 = vld [vmem:[%s1165_s17 + $0x1e0] sm:$0xf0]  ;;  %v1109_v6 = vld [vmem:[%s1165_s17 + $0x1e4] sm:$0xf0] }
  0x10   : > { %v1014_v3 = vor.u32 %v1108_v1, %v1013_v0  ;;  %v1018_v7 = vor.u32 %v1104_v2, %v1015_v4  ;;  %v1022_v8 = vor.u32 %v1109_v6, %v1021_v5  ;;  %v1105_v9 = vld [vmem:[%s1165_s17 + $0x1cc] sm:$0xf]  ;;  %v981_v11 = vld [vmem:[%s1165_s17 + $0x180] sm:$0xf]  ;;  %v1096_v14 = vld [vmem:[%s1165_s17 + $0x184] sm:$0xf] }
  0x11   : > { %v1023_v10 = vld [vmem:[%s1165_s17 + $0x1e8] sm:$0xf0]  ;;  %v1100_v13 = vld [vmem:[%s1165_s17 + $0x19c] sm:$0xf0]  ;;  %v983_v15 = vld [vmem:[%s1165_s17 + $0x1a0] sm:$0xf0] }
  0x12   : > { %575 = vmatpush.bf16.msra.mxu0 %v1014_v3  ;;  %v1026_v12 = vor.u32 %v1105_v9, %v1023_v10  ;;  %589 = vmatpush.bf16.msra.mxu1 %v1018_v7  ;;  %v982_v16 = vor.u32 %v1100_v13, %v981_v11  ;;  %v986_v17 = vor.u32 %v1096_v14, %v983_v15  ;;  %v989_v18 = vld [vmem:[%s1165_s17 + $0x188] sm:$0xf]  ;;  %v1097_v20 = vld [vmem:[%s1165_s17 + $0x18c] sm:$0xf]  ;;  %v949_v23 = vld [vmem:[%s1165_s17 + $0x140] sm:$0xf] }
  0x13   : > { %603 = vmatpush.bf16.msra.mxu2 %v1022_v8  ;;  %v1101_v19 = vld [vmem:[%s1165_s17 + $0x1a4] sm:$0xf0]  ;;  %v991_v22 = vld [vmem:[%s1165_s17 + $0x1a8] sm:$0xf0]  ;;  %v1092_v24 = vld [vmem:[%s1165_s17 + $0x15c] sm:$0xf0] }
  0x14   : > { %617 = vmatpush.bf16.msra.mxu3 %v1026_v12  ;;  %v990_v21 = vor.u32 %v1101_v19, %v989_v18  ;;  %v994_v25 = vor.u32 %v1097_v20, %v991_v22  ;;  %v1088_v26 = vld [vmem:[%s1165_s17 + $0x144] sm:$0xf]  ;;  %v957_v28 = vld [vmem:[%s1165_s17 + $0x148] sm:$0xf]  ;;  %v950_v29 = vor.u32 %v1092_v24, %v949_v23  ;;  %v1089_v31 = vld [vmem:[%s1165_s17 + $0x14c] sm:$0xf] }
  0x15   : > { %v951_v27 = vld [vmem:[%s1165_s17 + $0x160] sm:$0xf0]  ;;  %v1093_v30 = vld [vmem:[%s1165_s17 + $0x164] sm:$0xf0]  ;;  %v959_v32 = vld [vmem:[%s1165_s17 + $0x168] sm:$0xf0] }
  0x16   : > { %576 = vmatpush.bf16.msra.mxu0 %v982_v16  ;;  %590 = vmatpush.bf16.msra.mxu1 %v986_v17  ;;  %v954_v33 = vor.u32 %v1088_v26, %v951_v27  ;;  %v958_v34 = vor.u32 %v1093_v30, %v957_v28  ;;  %v917_v35 = vld [vmem:[%s1165_s17 + $0x100] sm:$0xf]  ;;  %v1080_v37 = vld [vmem:[%s1165_s17 + $0x104] sm:$0xf]  ;;  %v962_v38 = vor.u32 %v1089_v31, %v959_v32  ;;  %v925_v40 = vld [vmem:[%s1165_s17 + $0x108] sm:$0xf] }
  0x17   : > { %604 = vmatpush.bf16.msra.mxu2 %v990_v21  ;;  %v1084_v36 = vld [vmem:[%s1165_s17 + $0x11c] sm:$0xf0]  ;;  %v919_v39 = vld [vmem:[%s1165_s17 + $0x120] sm:$0xf0]  ;;  %v1085_v41 = vld [vmem:[%s1165_s17 + $0x124] sm:$0xf0] }
  0x18   : > { %618 = vmatpush.bf16.msra.mxu3 %v994_v25  ;;  %v1081_v42 = vld [vmem:[%s1165_s17 + $0x10c] sm:$0xf]  ;;  %v918_v44 = vor.u32 %v1084_v36, %v917_v35  ;;  %v922_v45 = vor.u32 %v1080_v37, %v919_v39  ;;  %v926_v46 = vor.u32 %v1085_v41, %v925_v40  ;;  %v885_v47 = vld [vmem:[%s1165_s17 + $0xc0] sm:$0xf]  ;;  %v1072_v49 = vld [vmem:[%s1165_s17 + $0xc4] sm:$0xf] }
  0x19   : > { %v927_v43 = vld [vmem:[%s1165_s17 + $0x128] sm:$0xf0]  ;;  %v1076_v48 = vld [vmem:[%s1165_s17 + $0xdc] sm:$0xf0]  ;;  %v887_v51 = vld [vmem:[%s1165_s17 + $0xe0] sm:$0xf0] }
  0x1a   : > { %577 = vmatpush.bf16.msra.mxu0 %v950_v29  ;;  %591 = vmatpush.bf16.msra.mxu1 %v954_v33  ;;  %v930_v50 = vor.u32 %v1081_v42, %v927_v43  ;;  %v893_v52 = vld [vmem:[%s1165_s17 + $0xc8] sm:$0xf]  ;;  %v1073_v54 = vld [vmem:[%s1165_s17 + $0xcc] sm:$0xf]  ;;  %v886_v56 = vor.u32 %v1076_v48, %v885_v47  ;;  %v890_v57 = vor.u32 %v1072_v49, %v887_v51  ;;  %v853_v59 = vld [vmem:[%s1165_s17 + $0x80] sm:$0xf] }
  0x1b   : > { %605 = vmatpush.bf16.msra.mxu2 %v958_v34  ;;  %v1077_v53 = vld [vmem:[%s1165_s17 + $0xe4] sm:$0xf0]  ;;  %v895_v55 = vld [vmem:[%s1165_s17 + $0xe8] sm:$0xf0]  ;;  %v1068_v60 = vld [vmem:[%s1165_s17 + $0x9c] sm:$0xf0] }
  0x1c   : > { %619 = vmatpush.bf16.msra.mxu3 %v962_v38  ;;  %v894_v58 = vor.u32 %v1077_v53, %v893_v52  ;;  %v1064_v61 = vld [vmem:[%s1165_s17 + $0x84] sm:$0xf]  ;;  %v898_v62 = vor.u32 %v1073_v54, %v895_v55  ;;  %v861_v0 = vld [vmem:[%s1165_s17 + $0x88] sm:$0xf]  ;;  %v1065_v2 = vld [vmem:[%s1165_s17 + $0x8c] sm:$0xf]  ;;  %v854_v4 = vor.u32 %v1068_v60, %v853_v59 }
  0x1d   : > { %v855_v63 = vld [vmem:[%s1165_s17 + $0xa0] sm:$0xf0]  ;;  %v1069_v1 = vld [vmem:[%s1165_s17 + $0xa4] sm:$0xf0]  ;;  %v863_v3 = vld [vmem:[%s1165_s17 + $0xa8] sm:$0xf0] }
  0x1e   : > { %578 = vmatpush.bf16.msra.mxu0 %v918_v44  ;;  %592 = vmatpush.bf16.msra.mxu1 %v922_v45  ;;  %v858_v5 = vor.u32 %v1064_v61, %v855_v63  ;;  %v862_v6 = vor.u32 %v1069_v1, %v861_v0  ;;  %v821_v7 = vld [vmem:[%s1165_s17 + $0x40] sm:$0xf]  ;;  %v1056_v9 = vld [vmem:[%s1165_s17 + $0x44] sm:$0xf]  ;;  %v866_v10 = vor.u32 %v1065_v2, %v863_v3  ;;  %v829_v12 = vld [vmem:[%s1165_s17 + $0x48] sm:$0xf] }
  0x1f   : > { %606 = vmatpush.bf16.msra.mxu2 %v926_v46  ;;  %v1060_v8 = vld [vmem:[%s1165_s17 + $0x5c] sm:$0xf0]  ;;  %v823_v11 = vld [vmem:[%s1165_s17 + $0x60] sm:$0xf0]  ;;  %v1061_v13 = vld [vmem:[%s1165_s17 + $0x64] sm:$0xf0] }
  0x20   : > { %620 = vmatpush.bf16.msra.mxu3 %v930_v50  ;;  %v1057_v14 = vld [vmem:[%s1165_s17 + $0x4c] sm:$0xf]  ;;  %v822_v16 = vor.u32 %v1060_v8, %v821_v7  ;;  %v789_v17 = vld [vmem:[%s1165_s17] sm:$0xf]  ;;  %v1048_v19 = vld [vmem:[%s1165_s17 + $0x4] sm:$0xf]  ;;  %v826_v20 = vor.u32 %v1056_v9, %v823_v11  ;;  %v830_v21 = vor.u32 %v1061_v13, %v829_v12 }
  0x21   : > { %v831_v15 = vld [vmem:[%s1165_s17 + $0x68] sm:$0xf0]  ;;  %v1052_v18 = vld [vmem:[%s1165_s17 + $0x1c] sm:$0xf0]  ;;  %v791_v22 = vld [vmem:[%s1165_s17 + $0x20] sm:$0xf0] }
  0x22   : > { %579 = vmatpush.bf16.msra.mxu0 %v886_v56  ;;  %593 = vmatpush.bf16.msra.mxu1 %v890_v57  ;;  %v797_v23 = vld [vmem:[%s1165_s17 + $0x8] sm:$0xf]  ;;  %v834_v25 = vor.u32 %v1057_v14, %v831_v15  ;;  %v1049_v26 = vld [vmem:[%s1165_s17 + $0xc] sm:$0xf]  ;;  %v1029_v28 = vld [vmem:[%s1165_s17 + $0x1d0] sm:$0xf]  ;;  %v790_v31 = vor.u32 %v1052_v18, %v789_v17  ;;  %v794_v36 = vor.u32 %v1048_v19, %v791_v22 }
  0x23   : > { %607 = vmatpush.bf16.msra.mxu2 %v894_v58  ;;  %v1053_v24 = vld [vmem:[%s1165_s17 + $0x24] sm:$0xf0]  ;;  %v799_v27 = vld [vmem:[%s1165_s17 + $0x28] sm:$0xf0]  ;;  %v1110_v29 = vld [vmem:[%s1165_s17 + $0x1ec] sm:$0xf0] }
  0x24   : > { %621 = vmatpush.bf16.msra.mxu3 %v898_v62  ;;  %v1106_v30 = vld [vmem:[%s1165_s17 + $0x1d4] sm:$0xf]  ;;  %v1037_v33 = vld [vmem:[%s1165_s17 + $0x1d8] sm:$0xf]  ;;  %v1130_v35 = vmov 0   ;;  %v798_v37 = vor.u32 %v1053_v24, %v797_v23  ;;  %v802_v40 = vor.u32 %v1049_v26, %v799_v27  ;;  %v1030_v41 = vor.u32 %v1110_v29, %v1029_v28  ;;  %v1248_v51 = vld [vmem:[%s1332_s1] sm:$0xff] }
  0x25   : > { %v1031_v32 = vld [vmem:[%s1165_s17 + $0x1f0] sm:$0xf0]  ;;  %v1111_v34 = vld [vmem:[%s1165_s17 + $0x1f4] sm:$0xf0]  ;;  %1121 = vset.pattern.permute.xlu0 %v1130_v35  ;;  %v1107_v38 = vld [vmem:[%s1165_s17 + $0x1dc] sm:$0xf] }
  0x26   : > { %580 = vmatpush.bf16.msra.mxu0 %v854_v4  ;;  %594 = vmatpush.bf16.msra.mxu1 %v858_v5  ;;  %v1039_v39 = vld [vmem:[%s1165_s17 + $0x1f8] sm:$0xf0]  ;;  %v997_v42 = vld [vmem:[%s1165_s17 + $0x190] sm:$0xf]  ;;  %v1034_v43 = vor.u32 %v1106_v30, %v1031_v32  ;;  %v1038_v44 = vor.u32 %v1111_v34, %v1037_v33  ;;  %v1098_v46 = vld [vmem:[%s1165_s17 + $0x194] sm:$0xf] }
  0x27   : > { %608 = vmatpush.bf16.msra.mxu2 %v862_v6  ;;  %v1102_v45 = vld [vmem:[%s1165_s17 + $0x1ac] sm:$0xf0]  ;;  %v999_v47 = vld [vmem:[%s1165_s17 + $0x1b0] sm:$0xf0]  ;;  %v1042_v48 = vor.u32 %v1107_v38, %v1039_v39  ;;  %v1005_v49 = vld [vmem:[%s1165_s17 + $0x198] sm:$0xf] }
  0x28   : > { %622 = vmatpush.bf16.msra.mxu3 %v866_v10  ;;  %v1103_v50 = vld [vmem:[%s1165_s17 + $0x1b4] sm:$0xf0]  ;;  %v1099_v52 = vld [vmem:[%s1165_s17 + $0x19c] sm:$0xf]  ;;  %v998_v54 = vor.u32 %v1102_v45, %v997_v42  ;;  %v1002_v55 = vor.u32 %v1098_v46, %v999_v47  ;;  %v965_v57 = vld [vmem:[%s1165_s17 + $0x150] sm:$0xf] }
  0x29   : > { %v1007_v53 = vld [vmem:[%s1165_s17 + $0x1b8] sm:$0xf0]  ;;  %v1006_v56 = vor.u32 %v1103_v50, %v1005_v49  ;;  %v1094_v58 = vld [vmem:[%s1165_s17 + $0x16c] sm:$0xf0]  ;;  %v1090_v59 = vld [vmem:[%s1165_s17 + $0x154] sm:$0xf] }
  0x2a   : > { %581 = vmatpush.bf16.msra.mxu0 %v822_v16  ;;  %595 = vmatpush.bf16.msra.mxu1 %v826_v20  ;;  %v1010_v60 = vor.u32 %v1099_v52, %v1007_v53  ;;  %v967_v61 = vld [vmem:[%s1165_s17 + $0x170] sm:$0xf0]  ;;  %v973_v62 = vld [vmem:[%s1165_s17 + $0x158] sm:$0xf]  ;;  %v1091_v0 = vld [vmem:[%s1165_s17 + $0x15c] sm:$0xf]  ;;  %v966_v2 = vor.u32 %v1094_v58, %v965_v57 }
  0x2b   : > { %609 = vmatpush.bf16.msra.mxu2 %v830_v21  ;;  %v1095_v63 = vld [vmem:[%s1165_s17 + $0x174] sm:$0xf0]  ;;  %v975_v1 = vld [vmem:[%s1165_s17 + $0x178] sm:$0xf0]  ;;  %v237_v3 = vld [vmem:[%s1333_s2] sm:$0xff]  ;;  %v970_v4 = vor.u32 %v1090_v59, %v967_v61 }
  0x2c   : > { %623 = vmatpush.bf16.msra.mxu3 %v834_v25  ;;  %v974_v5 = vor.u32 %v1095_v63, %v973_v62  ;;  %v933_v6 = vld [vmem:[%s1165_s17 + $0x110] sm:$0xf]  ;;  %v1082_v8 = vld [vmem:[%s1165_s17 + $0x114] sm:$0xf]  ;;  %v978_v9 = vor.u32 %v1091_v0, %v975_v1  ;;  %v941_v11 = vld [vmem:[%s1165_s17 + $0x118] sm:$0xf]  ;;  %241 = vperm.xlu0 %1121, %v237_v3  }
  0x2d   : > { %v1086_v7 = vld [vmem:[%s1165_s17 + $0x12c] sm:$0xf0]  ;;  %v935_v10 = vld [vmem:[%s1165_s17 + $0x130] sm:$0xf0]  ;;  %v1087_v12 = vld [vmem:[%s1165_s17 + $0x134] sm:$0xf0] }
  0x2e   : > { %582 = vmatpush.bf16.msra.mxu0 %v790_v31  ;;  %596 = vmatpush.bf16.msra.mxu1 %v794_v36  ;;  %v1083_v13 = vld [vmem:[%s1165_s17 + $0x11c] sm:$0xf]  ;;  %v934_v15 = vor.u32 %v1086_v7, %v933_v6  ;;  %v938_v16 = vor.u32 %v1082_v8, %v935_v10  ;;  %v942_v17 = vor.u32 %v1087_v12, %v941_v11  ;;  %v901_v18 = vld [vmem:[%s1165_s17 + $0xd0] sm:$0xf]  ;;  %v1074_v20 = vld [vmem:[%s1165_s17 + $0xd4] sm:$0xf] }
  0x2f   : > { %610 = vmatpush.bf16.msra.mxu2 %v798_v37  ;;  %v943_v14 = vld [vmem:[%s1165_s17 + $0x138] sm:$0xf0]  ;;  %v1078_v19 = vld [vmem:[%s1165_s17 + $0xec] sm:$0xf0]  ;;  %v903_v22 = vld [vmem:[%s1165_s17 + $0xf0] sm:$0xf0] }
  0x30   : > { %624 = vmatpush.bf16.msra.mxu3 %v802_v40  ;;  %v946_v21 = vor.u32 %v1083_v13, %v943_v14  ;;  %v909_v23 = vld [vmem:[%s1165_s17 + $0xd8] sm:$0xf]  ;;  %v1075_v25 = vld [vmem:[%s1165_s17 + $0xdc] sm:$0xf]  ;;  %v238_v27 = vld [vmem:[%s1333_s2 + $0x8] sm:$0xff]  ;;  %v902_v28 = vor.u32 %v1078_v19, %v901_v18  ;;  %v906_v29 = vor.u32 %v1074_v20, %v903_v22 }
  0x31   : > { %583 = vmatmul.bf16.vlgmr.msra.gmra.mxu0 %v1248_v51  ;;  %597 = vmatmul.bf16.vlgmr.msra.gmra.mxu1 %v1248_v51  ;;  %v1079_v24 = vld [vmem:[%s1165_s17 + $0xf4] sm:$0xf0]  ;;  %v911_v26 = vld [vmem:[%s1165_s17 + $0xf8] sm:$0xf0]  ;;  %v869_v31 = vld [vmem:[%s1165_s17 + $0x90] sm:$0xf] }
  0x32   : > { %631 = vmatpush.bf16.msrb.mxu0 %v1030_v41  ;;  %645 = vmatpush.bf16.msrb.mxu1 %v1034_v43  ;;  %v910_v30 = vor.u32 %v1079_v24, %v909_v23  ;;  %v1070_v32 = vld [vmem:[%s1165_s17 + $0xac] sm:$0xf0]  ;;  %v1066_v33 = vld [vmem:[%s1165_s17 + $0x94] sm:$0xf]  ;;  %v914_v34 = vor.u32 %v1075_v25, %v911_v26  ;;  %v877_v36 = vld [vmem:[%s1165_s17 + $0x98] sm:$0xf] }
  0x33   : > { %659 = vmatpush.bf16.msrb.mxu2 %v1038_v44  ;;  %625 = vmatmul.bf16.vlgmr.msra.gmra.mxu3 %v1248_v51  ;;  %v871_v35 = vld [vmem:[%s1165_s17 + $0xb0] sm:$0xf0]  ;;  %v1071_v37 = vld [vmem:[%s1165_s17 + $0xb4] sm:$0xf0]  ;;  %v1067_v38 = vld [vmem:[%s1165_s17 + $0x9c] sm:$0xf]  ;;  %v870_v40 = vor.u32 %v1070_v32, %v869_v31 }
  0x34   : > { %673 = vmatpush.bf16.msrb.mxu3 %v1042_v48  ;;  %611 = vmatmul.bf16.vlgmr.msra.gmra.mxu2 %v1248_v51  ;;  %v879_v39 = vld [vmem:[%s1165_s17 + $0xb8] sm:$0xf0]  ;;  %v874_v41 = vor.u32 %v1066_v33, %v871_v35  ;;  %v878_v42 = vor.u32 %v1071_v37, %v877_v36  ;;  %v837_v43 = vld [vmem:[%s1165_s17 + $0x50] sm:$0xf]  ;;  %v1058_v45 = vld [vmem:[%s1165_s17 + $0x54] sm:$0xf] }
  0x35   : > { %246 = vperm.xlu0 %1121, %v238_v27   ;;  %v1062_v44 = vld [vmem:[%s1165_s17 + $0x6c] sm:$0xf0]  ;;  %v882_v46 = vor.u32 %v1067_v38, %v879_v39  ;;  %v839_v47 = vld [vmem:[%s1165_s17 + $0x70] sm:$0xf0]  ;;  %v845_v48 = vld [vmem:[%s1165_s17 + $0x58] sm:$0xf] }
  0x36   : > { %632 = vmatpush.bf16.msrb.mxu0 %v998_v54  ;;  %646 = vmatpush.bf16.msrb.mxu1 %v1002_v55  ;;  %v1063_v49 = vld [vmem:[%s1165_s17 + $0x74] sm:$0xf0]  ;;  %v1059_v50 = vld [vmem:[%s1165_s17 + $0x5c] sm:$0xf]  ;;  %v838_v53 = vor.u32 %v1062_v44, %v837_v43  ;;  %v842_v54 = vor.u32 %v1058_v45, %v839_v47  ;;  %v1054_v57 = vld [vmem:[%s1165_s17 + $0x2c] sm:$0xf0] }
  0x37   : > { %660 = vmatpush.bf16.msrb.mxu2 %v1006_v56  ;;  %v847_v52 = vld [vmem:[%s1165_s17 + $0x78] sm:$0xf0]  ;;  %v846_v55 = vor.u32 %v1063_v49, %v845_v48  ;;  %v805_v56 = vld [vmem:[%s1165_s17 + $0x10] sm:$0xf]  ;;  %v1050_v58 = vld [vmem:[%s1165_s17 + $0x14] sm:$0xf] }
  0x38   : > { %674 = vmatpush.bf16.msrb.mxu3 %v1010_v60  ;;  %v850_v59 = vor.u32 %v1059_v50, %v847_v52  ;;  %v807_v60 = vld [vmem:[%s1165_s17 + $0x30] sm:$0xf0]  ;;  %v813_v61 = vld [vmem:[%s1165_s17 + $0x18] sm:$0xf]  ;;  %v1051_v63 = vld [vmem:[%s1165_s17 + $0x1c] sm:$0xf]  ;;  %v806_v1 = vor.u32 %v1054_v57, %v805_v56 }
  0x39   : > { %v1055_v62 = vld [vmem:[%s1165_s17 + $0x34] sm:$0xf0]  ;;  %v815_v0 = vld [vmem:[%s1165_s17 + $0x38] sm:$0xf0] }
  0x3a   : > { %633 = vmatpush.bf16.msrb.mxu0 %v966_v2  ;;  %647 = vmatpush.bf16.msrb.mxu1 %v970_v4  ;;  %v810_v2 = vor.u32 %v1050_v58, %v807_v60  ;;  %v814_v3 = vor.u32 %v1055_v62, %v813_v61  ;;  %v818_v4 = vor.u32 %v1051_v63, %v815_v0 }
  0x3b   : > { %661 = vmatpush.bf16.msrb.mxu2 %v974_v5 }
  0x3c   : > { %675 = vmatpush.bf16.msrb.mxu3 %v978_v9 }
  0x3e   : > { %634 = vmatpush.bf16.msrb.mxu0 %v934_v15  ;;  %648 = vmatpush.bf16.msrb.mxu1 %v938_v16 }
  0x3f   : > { %662 = vmatpush.bf16.msrb.mxu2 %v942_v17 }
  0x40   : > { %676 = vmatpush.bf16.msrb.mxu3 %v946_v21 }
  0x42   : > { %635 = vmatpush.bf16.msrb.mxu0 %v902_v28  ;;  %649 = vmatpush.bf16.msrb.mxu1 %v906_v29 }
  0x43   : > { %663 = vmatpush.bf16.msrb.mxu2 %v910_v30 }
  0x44   : > { %677 = vmatpush.bf16.msrb.mxu3 %v914_v34 }
  0x46   : > { %636 = vmatpush.bf16.msrb.mxu0 %v870_v40  ;;  %650 = vmatpush.bf16.msrb.mxu1 %v874_v41 }
  0x47   : > { %664 = vmatpush.bf16.msrb.mxu2 %v878_v42 }
  0x48   : > { %678 = vmatpush.bf16.msrb.mxu3 %v882_v46 }
  0x4a   : > { %637 = vmatpush.bf16.msrb.mxu0 %v838_v53  ;;  %651 = vmatpush.bf16.msrb.mxu1 %v842_v54 }
  0x4b   : > { %665 = vmatpush.bf16.msrb.mxu2 %v846_v55 }
  0x4c   : > { %679 = vmatpush.bf16.msrb.mxu3 %v850_v59 }
  0x4e   : > { %638 = vmatpush.bf16.msrb.mxu0 %v806_v1  ;;  %652 = vmatpush.bf16.msrb.mxu1 %v810_v2 }
  0x4f   : > { %666 = vmatpush.bf16.msrb.mxu2 %v814_v3 }
  0x50   : > { %680 = vmatpush.bf16.msrb.mxu3 %v818_v4 }
  0x51   : > { %639 = vmatmul.bf16.vlgmr.msrb.gmra.mxu0 %v1248_v51  ;;  %653 = vmatmul.bf16.vlgmr.msrb.gmra.mxu1 %v1248_v51 }
  0x52   : > { %667 = vmatmul.bf16.vlgmr.msrb.gmra.mxu2 %v1248_v51 }
  0x53   : > { %681 = vmatmul.bf16.vlgmr.msrb.gmra.mxu3 %v1248_v51 }
  0x9e   : > { %v242_v5 = vpop.permute.xlu0 %241 }
  0xa7   : > { %v247_v51 = vpop.permute.xlu0 %246 }
  0xae   : > { %v584_v6 = vpop.f32.mrf.mxu0  ;;  %v598_v8 = vpop.f32.mrf.mxu1 }
  0xaf   : > { %v585_v7 = vadd.f32 %v584_v6, %v242_v5  ;;  %v599_v9 = vadd.f32 %v598_v8, %v242_v5 }
  0xb1   : > { %v687_v10 = vmax.f32 %v585_v7, 0.0  ;;  %v688_v11 = vmax.f32 %v599_v9, 0.0 }
  0xb3   : > { %v703_v13 = vpack.c.bf16 %v688_v11, %v687_v10 }
  0xb5   : > { %711 = vst [vmem:[%s1318_s27] sm:$0xff] %v703_v13 }
  0xb6   : > { %v626_v15 = vpop.f32.mrf.mxu3  ;;  %v586_v18 = vpop.f32.mrf.mxu0 }
  0xb7   : > { %v612_v12 = vpop.f32.mrf.mxu2  ;;  %v627_v16 = vadd.f32 %v626_v15, %v242_v5  ;;  %v587_v20 = vadd.f32 %v586_v18, %v247_v51  ;;  %v600_v21 = vpop.f32.mrf.mxu1 }
  0xb8   : > { %v613_v14 = vadd.f32 %v612_v12, %v242_v5  ;;  %v601_v22 = vadd.f32 %v600_v21, %v247_v51 }
  0xb9   : > { %v690_v19 = vmax.f32 %v627_v16, 0.0  ;;  %v695_v24 = vmax.f32 %v587_v20, 0.0 }
  0xba   : > { %v689_v17 = vmax.f32 %v613_v14, 0.0  ;;  %v696_v25 = vmax.f32 %v601_v22, 0.0 }
  0xbc   : > { %v704_v23 = vpack.c.bf16 %v690_v19, %v689_v17  ;;  %v707_v27 = vpack.c.bf16 %v696_v25, %v695_v24 }
  0xbe   : > { %712 = vst [vmem:[%s1318_s27 + $0x8] sm:$0xff] %v704_v23  ;;  %v628_v29 = vpop.f32.mrf.mxu3 }
  0xbf   : > { %v614_v26 = vpop.f32.mrf.mxu2  ;;  %v629_v30 = vadd.f32 %v628_v29, %v247_v51  ;;  %715 = vst [vmem:[%s1318_s27 + $0x20] sm:$0xff] %v707_v27 }
  0xc0   : > { %v615_v28 = vadd.f32 %v614_v26, %v247_v51 }
  0xc1   : > { %v698_v32 = vmax.f32 %v629_v30, 0.0 }
  0xc2   : > { %v697_v31 = vmax.f32 %v615_v28, 0.0 }
  0xc4   : > { %v708_v33 = vpack.c.bf16 %v698_v32, %v697_v31 }
  0xc6   : > { %716 = vst [vmem:[%s1318_s27 + $0x28] sm:$0xff] %v708_v33 }
  0xce   : > { %v640_v34 = vpop.f32.mrf.mxu0  ;;  %v654_v36 = vpop.f32.mrf.mxu1 }
  0xcf   : > { %v641_v35 = vadd.f32 %v640_v34, %v242_v5  ;;  %v655_v37 = vadd.f32 %v654_v36, %v242_v5 }
  0xd1   : > { %v691_v38 = vmax.f32 %v641_v35, 0.0  ;;  %v692_v39 = vmax.f32 %v655_v37, 0.0 }
  0xd3   : > { %v705_v40 = vpack.c.bf16 %v692_v39, %v691_v38 }
  0xd5   : > { %v668_v41 = vpop.f32.mrf.mxu2  ;;  %713 = vst [vmem:[%s1318_s27 + $0x10] sm:$0xff] %v705_v40 }
  0xd6   : > { %v669_v42 = vadd.f32 %v668_v41, %v242_v5  ;;  %v682_v43 = vpop.f32.mrf.mxu3  ;;  %v642_v44 = vpop.f32.mrf.mxu0 }
  0xd7   : > { %v683_v45 = vadd.f32 %v682_v43, %v242_v5  ;;  %v643_v46 = vadd.f32 %v642_v44, %v247_v51  ;;  %v656_v47 = vpop.f32.mrf.mxu1 }
  0xd8   : > { %v693_v48 = vmax.f32 %v669_v42, 0.0  ;;  %v657_v49 = vadd.f32 %v656_v47, %v247_v51 }
  0xd9   : > { %v694_v50 = vmax.f32 %v683_v45, 0.0  ;;  %v699_v52 = vmax.f32 %v643_v46, 0.0 }
  0xda   : > { %v700_v53 = vmax.f32 %v657_v49, 0.0 }
  0xdb   : > { %v706_v54 = vpack.c.bf16 %v694_v50, %v693_v48 }
  0xdc   : > { %v709_v55 = vpack.c.bf16 %v700_v53, %v699_v52 }
  0xdd   : > { %714 = vst [vmem:[%s1318_s27 + $0x18] sm:$0xff] %v706_v54  ;;  %v670_v56 = vpop.f32.mrf.mxu2 }
  0xde   : > { %717 = vst [vmem:[%s1318_s27 + $0x30] sm:$0xff] %v709_v55  ;;  %v671_v57 = vadd.f32 %v670_v56, %v247_v51  ;;  %v684_v58 = vpop.f32.mrf.mxu3 }
  0xdf   : > { %v685_v59 = vadd.f32 %v684_v58, %v247_v51 }
  0xe0   : > { %v701_v60 = vmax.f32 %v671_v57, 0.0 }
  0xe1   : > { %v702_v61 = vmax.f32 %v685_v59, 0.0 }
  0xe3   : > { %v710_v62 = vpack.c.bf16 %v702_v61, %v701_v60 }
  0xe5   : > { %718 = vst [vmem:[%s1318_s27 + $0x38] sm:$0xff] %v710_v62 }
  0xe6 PF: > { %s13_s12 = sadd.s32 1, %s1128_s12  }
  0xe7   : > { %p10_p4 = scmp.ge.s32.totalorder %s13_s12, 4  }
  0xe9   :  { %12 = sbr.rel (!%p10_p4) target bundleno = 1 (0x1), region = 62 }

// kernel: whole_dis_forward.7
= control target key start
LH: loop header
LB: loop body
LE: loop exit
PB: predicated region body
PF: predicated region fallthrough
CT: control target
= control target key end

     0   :  { %s836_s15 = smov 0   ;;  %s983_s0 = inlined_call_operand.vmem [shape: bf16[2,256,256], index: 0, kind: input, shape index: {}]   ;;  %s984_s1 = inlined_call_operand.vmem [shape: bf16[32,256], index: 1, kind: input, shape index: {}]   ;;  %s985_s2 = inlined_call_operand.vmem [shape: f32[32,1], index: 2, kind: input, shape index: {}]   ;;  %s986_s3 = inlined_call_operand.vmem [shape: f32[32,256], index: 3, kind: input, shape index: {}]   ;;  %s987_s4 = inlined_call_operand.vmem [shape: f32[2,1,128], index: 4, kind: output, shape index: {}]  }
   0x1 LB: > { %s599_s16 = sadd.s32 4294967295, %s808_s15   ;;  %p603_p0 = scmp.ge.s32.totalorder %s808_s15, 1  ;;  %s808_s15 = sphi %s836_s15, %s14_s15  }
   0x2   : > { %p162_p1 = scmp.lt.s32.totalorder %s808_s15, 3 }
   0x4   : > { %p163_p2 = pnand %p603_p0, %p162_p1 }
   0x5   : > { %p186_p3 = scmp.lt.s32.totalorder (!%p163_p2), %s599_s16, 1 }
   0x6   : > { %166 = sbr.rel (%p163_p2) target bundleno = 395 (0x18b), region = 36 }
   0xb   : > { %s989_s16 = smov (!%p186_p3, %s599_s16), 1 }
   0xc   : > { %s752_s17 = sshll.u32 %s989_s16, 8  ;;  %s193_s13 = scalar_lea.vmem %s987_s4, %s989_s16 }
   0xd   : > { %s850_s20 = scalar_lea.vmem %s983_s0, %s752_s17 }
   0xe   : > { %v680_v0 = vld [vmem:[%s850_s20 + $0x70] sm:$0xf]  ;;  %v772_v1 = vld [vmem:[%s850_s20 + $0x74] sm:$0xf0]  ;;  %v771_v5 = vld [vmem:[%s850_s20 + $0x74] sm:$0xf] }
   0xf   : > { %v744_v2 = vld [vmem:[%s850_s20 + $0xf0] sm:$0xf]  ;;  %v681_v3 = vor.u32 %v772_v1, %v680_v0  ;;  %v788_v4 = vld [vmem:[%s850_s20 + $0xf4] sm:$0xf0]  ;;  %v682_v6 = vld [vmem:[%s850_s20 + $0x78] sm:$0xf0] }
  0x10   : > { %v745_v7 = vor.u32 %v788_v4, %v744_v2  ;;  %v685_v8 = vor.u32 %v771_v5, %v682_v6  ;;  %v787_v9 = vld [vmem:[%s850_s20 + $0xf4] sm:$0xf]  ;;  %v746_v10 = vld [vmem:[%s850_s20 + $0xf8] sm:$0xf0]  ;;  %v672_v11 = vld [vmem:[%s850_s20 + $0x60] sm:$0xf] }
  0x11   : > { %434 = vmatpush.bf16.msra.mxu0 %v681_v3  ;;  %v749_v12 = vor.u32 %v787_v9, %v746_v10  ;;  %v770_v13 = vld [vmem:[%s850_s20 + $0x64] sm:$0xf0]  ;;  %v736_v14 = vld [vmem:[%s850_s20 + $0xe0] sm:$0xf]  ;;  %v769_v18 = vld [vmem:[%s850_s20 + $0x64] sm:$0xf] }
  0x12   : > { %v786_v15 = vld [vmem:[%s850_s20 + $0xe4] sm:$0xf0]  ;;  %453 = vmatpush.bf16.msra.mxu1 %v745_v7  ;;  %472 = vmatpush.bf16.msra.mxu2 %v685_v8  ;;  %v673_v16 = vor.u32 %v770_v13, %v672_v11  ;;  %v674_v19 = vld [vmem:[%s850_s20 + $0x68] sm:$0xf0]  ;;  %v785_v20 = vld [vmem:[%s850_s20 + $0xe4] sm:$0xf] }
  0x13   : > { %v737_v17 = vor.u32 %v786_v15, %v736_v14  ;;  %491 = vmatpush.bf16.msra.mxu3 %v749_v12  ;;  %v677_v21 = vor.u32 %v769_v18, %v674_v19  ;;  %v738_v22 = vld [vmem:[%s850_s20 + $0xe8] sm:$0xf0]  ;;  %v664_v23 = vld [vmem:[%s850_s20 + $0x50] sm:$0xf]  ;;  %v768_v24 = vld [vmem:[%s850_s20 + $0x54] sm:$0xf0] }
  0x14   : > { %v741_v25 = vor.u32 %v785_v20, %v738_v22  ;;  %v728_v26 = vld [vmem:[%s850_s20 + $0xd0] sm:$0xf]  ;;  %v784_v27 = vld [vmem:[%s850_s20 + $0xd4] sm:$0xf0]  ;;  %v767_v28 = vld [vmem:[%s850_s20 + $0x54] sm:$0xf]  ;;  %v665_v29 = vor.u32 %v768_v24, %v664_v23 }
  0x15   : > { %435 = vmatpush.bf16.msra.mxu0 %v673_v16  ;;  %v666_v30 = vld [vmem:[%s850_s20 + $0x58] sm:$0xf0]  ;;  %v783_v31 = vld [vmem:[%s850_s20 + $0xd4] sm:$0xf]  ;;  %v729_v33 = vor.u32 %v784_v27, %v728_v26  ;;  %v656_v35 = vld [vmem:[%s850_s20 + $0x40] sm:$0xf] }
  0x16   : > { %v730_v32 = vld [vmem:[%s850_s20 + $0xd8] sm:$0xf0]  ;;  %454 = vmatpush.bf16.msra.mxu1 %v737_v17  ;;  %473 = vmatpush.bf16.msra.mxu2 %v677_v21  ;;  %v669_v34 = vor.u32 %v767_v28, %v666_v30  ;;  %v766_v36 = vld [vmem:[%s850_s20 + $0x44] sm:$0xf0]  ;;  %v720_v37 = vld [vmem:[%s850_s20 + $0xc0] sm:$0xf] }
  0x17   : > { %492 = vmatpush.bf16.msra.mxu3 %v741_v25  ;;  %v733_v38 = vor.u32 %v783_v31, %v730_v32  ;;  %v782_v39 = vld [vmem:[%s850_s20 + $0xc4] sm:$0xf0]  ;;  %v765_v40 = vld [vmem:[%s850_s20 + $0x44] sm:$0xf]  ;;  %v658_v41 = vld [vmem:[%s850_s20 + $0x48] sm:$0xf0]  ;;  %v657_v44 = vor.u32 %v766_v36, %v656_v35 }
  0x18   : > { %v781_v42 = vld [vmem:[%s850_s20 + $0xc4] sm:$0xf]  ;;  %v722_v43 = vld [vmem:[%s850_s20 + $0xc8] sm:$0xf0]  ;;  %v721_v45 = vor.u32 %v782_v39, %v720_v37  ;;  %v661_v46 = vor.u32 %v765_v40, %v658_v41  ;;  %v648_v47 = vld [vmem:[%s850_s20 + $0x30] sm:$0xf] }
  0x19   : > { %436 = vmatpush.bf16.msra.mxu0 %v665_v29  ;;  %v764_v48 = vld [vmem:[%s850_s20 + $0x34] sm:$0xf0]  ;;  %v712_v49 = vld [vmem:[%s850_s20 + $0xb0] sm:$0xf]  ;;  %v725_v50 = vor.u32 %v781_v42, %v722_v43  ;;  %v763_v52 = vld [vmem:[%s850_s20 + $0x34] sm:$0xf] }
  0x1a   : > { %455 = vmatpush.bf16.msra.mxu1 %v729_v33  ;;  %474 = vmatpush.bf16.msra.mxu2 %v669_v34  ;;  %v780_v51 = vld [vmem:[%s850_s20 + $0xb4] sm:$0xf0]  ;;  %v650_v53 = vld [vmem:[%s850_s20 + $0x38] sm:$0xf0]  ;;  %v779_v54 = vld [vmem:[%s850_s20 + $0xb4] sm:$0xf]  ;;  %v649_v56 = vor.u32 %v764_v48, %v648_v47 }
  0x1b   : > { %493 = vmatpush.bf16.msra.mxu3 %v733_v38  ;;  %v714_v55 = vld [vmem:[%s850_s20 + $0xb8] sm:$0xf0]  ;;  %v713_v57 = vor.u32 %v780_v51, %v712_v49  ;;  %v653_v58 = vor.u32 %v763_v52, %v650_v53  ;;  %v640_v59 = vld [vmem:[%s850_s20 + $0x20] sm:$0xf]  ;;  %v762_v60 = vld [vmem:[%s850_s20 + $0x24] sm:$0xf0] }
  0x1c   : > { %v704_v61 = vld [vmem:[%s850_s20 + $0xa0] sm:$0xf]  ;;  %v717_v62 = vor.u32 %v779_v54, %v714_v55  ;;  %v778_v63 = vld [vmem:[%s850_s20 + $0xa4] sm:$0xf0]  ;;  %v761_v0 = vld [vmem:[%s850_s20 + $0x24] sm:$0xf]  ;;  %v641_v4 = vor.u32 %v762_v60, %v640_v59 }
  0x1d   : > { %437 = vmatpush.bf16.msra.mxu0 %v657_v44  ;;  %v642_v1 = vld [vmem:[%s850_s20 + $0x28] sm:$0xf0]  ;;  %v777_v2 = vld [vmem:[%s850_s20 + $0xa4] sm:$0xf]  ;;  %v705_v5 = vor.u32 %v778_v63, %v704_v61  ;;  %v632_v7 = vld [vmem:[%s850_s20 + $0x10] sm:$0xf] }
  0x1e   : > { %456 = vmatpush.bf16.msra.mxu1 %v721_v45  ;;  %475 = vmatpush.bf16.msra.mxu2 %v661_v46  ;;  %v706_v3 = vld [vmem:[%s850_s20 + $0xa8] sm:$0xf0]  ;;  %v645_v6 = vor.u32 %v761_v0, %v642_v1  ;;  %v760_v8 = vld [vmem:[%s850_s20 + $0x14] sm:$0xf0]  ;;  %v696_v9 = vld [vmem:[%s850_s20 + $0x90] sm:$0xf] }
  0x1f   : > { %494 = vmatpush.bf16.msra.mxu3 %v725_v50  ;;  %v709_v10 = vor.u32 %v777_v2, %v706_v3  ;;  %v776_v11 = vld [vmem:[%s850_s20 + $0x94] sm:$0xf0]  ;;  %v759_v12 = vld [vmem:[%s850_s20 + $0x14] sm:$0xf]  ;;  %v634_v13 = vld [vmem:[%s850_s20 + $0x18] sm:$0xf0]  ;;  %v633_v17 = vor.u32 %v760_v8, %v632_v7 }
  0x20   : > { %v775_v14 = vld [vmem:[%s850_s20 + $0x94] sm:$0xf]  ;;  %v698_v15 = vld [vmem:[%s850_s20 + $0x98] sm:$0xf0]  ;;  %v230_v16 = vld [vmem:[%s985_s2] sm:$0xff]  ;;  %v810_v19 = vmov 0   ;;  %v697_v20 = vor.u32 %v776_v11, %v696_v9  ;;  %v637_v21 = vor.u32 %v759_v12, %v634_v13 }
  0x21   : > { %438 = vmatpush.bf16.msra.mxu0 %v649_v56  ;;  %v624_v18 = vld [vmem:[%s850_s20] sm:$0xf]  ;;  %800 = vset.pattern.permute.xlu0 %v810_v19  ;;  %v758_v22 = vld [vmem:[%s850_s20 + $0x4] sm:$0xf0]  ;;  %v232_v24 = vld [vmem:[%s985_s2 + $0x10] sm:$0xff]  ;;  %v701_v25 = vor.u32 %v775_v14, %v698_v15 }
  0x22   : > { %457 = vmatpush.bf16.msra.mxu1 %v713_v57  ;;  %476 = vmatpush.bf16.msra.mxu2 %v653_v58  ;;  %v688_v23 = vld [vmem:[%s850_s20 + $0x80] sm:$0xf]  ;;  %v774_v26 = vld [vmem:[%s850_s20 + $0x84] sm:$0xf0]  ;;  %v757_v27 = vld [vmem:[%s850_s20 + $0x4] sm:$0xf]  ;;  %v625_v31 = vor.u32 %v758_v22, %v624_v18 }
  0x23   : > { %495 = vmatpush.bf16.msra.mxu3 %v717_v62  ;;  %v626_v28 = vld [vmem:[%s850_s20 + $0x8] sm:$0xf0]  ;;  %236 = vperm.xlu0 %800, %v230_v16   ;;  %v773_v29 = vld [vmem:[%s850_s20 + $0x84] sm:$0xf]  ;;  %v608_v32 = vld [vmem:[%s984_s1] sm:$0xf]  ;;  %v689_v34 = vor.u32 %v774_v26, %v688_v23 }
  0x24   : > { %v690_v30 = vld [vmem:[%s850_s20 + $0x88] sm:$0xf0]  ;;  %801 = vset.pattern.permute.xlu1 %v810_v19  ;;  %v754_v33 = vld [vmem:[%s984_s1 + $0x4] sm:$0xf0]  ;;  %v629_v35 = vor.u32 %v757_v27, %v626_v28  ;;  %v753_v36 = vld [vmem:[%s984_s1 + $0x4] sm:$0xf] }
  0x25   : > { %439 = vmatpush.bf16.msra.mxu0 %v641_v4  ;;  %246 = vperm.xlu1 %801, %v232_v24   ;;  %v610_v37 = vld [vmem:[%s984_s1 + $0x8] sm:$0xf0]  ;;  %v693_v38 = vor.u32 %v773_v29, %v690_v30  ;;  %v609_v39 = vor.u32 %v754_v33, %v608_v32  ;;  %v233_v42 = vld [vmem:[%s985_s2 + $0x18] sm:$0xff]  ;;  %v616_v43 = vld [vmem:[%s984_s1 + $0x10] sm:$0xf] }
  0x26   : > { %458 = vmatpush.bf16.msra.mxu1 %v705_v5  ;;  %477 = vmatpush.bf16.msra.mxu2 %v645_v6  ;;  %v231_v40 = vld [vmem:[%s985_s2 + $0x8] sm:$0xff]  ;;  %v613_v41 = vor.u32 %v753_v36, %v610_v37  ;;  %v756_v44 = vld [vmem:[%s984_s1 + $0x14] sm:$0xf0]  ;;  %v755_v45 = vld [vmem:[%s984_s1 + $0x14] sm:$0xf] }
  0x27   : > { %496 = vmatpush.bf16.msra.mxu3 %v709_v10  ;;  %v618_v46 = vld [vmem:[%s984_s1 + $0x18] sm:$0xf0]  ;;  %v617_v47 = vor.u32 %v756_v44, %v616_v43  ;;  %v519_v1 = vld [vmem:[%s986_s3 + $0x8] sm:$0xff]  ;;  %v518_v7 = vld [vmem:[%s986_s3] sm:$0xff] }
  0x28   : > { %v621_v48 = vor.u32 %v755_v45, %v618_v46  ;;  %v520_v13 = vld [vmem:[%s986_s3 + $0x10] sm:$0xff]  ;;  %v522_v27 = vld [vmem:[%s986_s3 + $0x20] sm:$0xff]  ;;  %v523_v32 = vld [vmem:[%s986_s3 + $0x28] sm:$0xff] }
  0x29   : > { %440 = vmatpush.bf16.msra.mxu0 %v633_v17  ;;  %v521_v17 = vld [vmem:[%s986_s3 + $0x18] sm:$0xff] }
  0x2a   : > { %459 = vmatpush.bf16.msra.mxu1 %v697_v20  ;;  %478 = vmatpush.bf16.msra.mxu2 %v637_v21 }
  0x2b   : > { %497 = vmatpush.bf16.msra.mxu3 %v701_v25  ;;  %241 = vperm.xlu0 %800, %v231_v40  }
  0x2d   : > { %441 = vmatpush.bf16.msra.mxu0 %v625_v31  ;;  %251 = vperm.xlu1 %801, %v233_v42  }
  0x2e   : > { %460 = vmatpush.bf16.msra.mxu1 %v689_v34  ;;  %479 = vmatpush.bf16.msra.mxu2 %v629_v35 }
  0x2f   : > { %498 = vmatpush.bf16.msra.mxu3 %v693_v38 }
  0x30   : > { %442 = vmatmul.bf16.vlgmr.msra.gmra.mxu0 %v609_v39 }
  0x31   : > { %461 = vmatmul.bf16.vlgmr.msra.gmra.mxu1 %v613_v41  ;;  %480 = vmatmul.bf16.vlgmr.msra.gmra.mxu2 %v609_v39  ;;  %v524_v39 = vld [vmem:[%s986_s3 + $0x30] sm:$0xff] }
  0x32   : > { %499 = vmatmul.bf16.vlgmr.msra.gmra.mxu3 %v613_v41 }
  0x40   : > { %447 = vmatmul.bf16.gmra.mxu0 %v617_v47 }
  0x41   : > { %466 = vmatmul.bf16.gmra.mxu1 %v621_v48  ;;  %485 = vmatmul.bf16.gmra.mxu2 %v617_v47  ;;  %v525_v47 = vld [vmem:[%s986_s3 + $0x38] sm:$0xff] }
  0x42   : > { %504 = vmatmul.bf16.gmra.mxu3 %v621_v48 }
  0x95   : > { %v237_v49 = vpop.permute.xlu0 %236 }
  0x97   : > { %v247_v62 = vpop.permute.xlu1 %246 }
  0x9d   : > { %v242_v53 = vpop.permute.xlu0 %241 }
  0x9f   : > { %v252_v20 = vpop.permute.xlu1 %251 }
  0xad   : > { %v443_v50 = vpop.f32.mrf.mxu0 }
  0xae   : > { %v462_v51 = vpop.f32.mrf.mxu1  ;;  %v444_v54 = vadd.f32 %v443_v50, %v237_v49 }
  0xb0   : > { %v463_v61 = vadd.f32 %v462_v51, %v444_v54 }
  0xb2   : > { %v510_v3 = vmax.f32 %v463_v61, 0.0 }
  0xb4   : > { %v481_v52 = vpop.f32.mrf.mxu2  ;;  %v526_v14 = vmul.f32 %v518_v7, %v510_v3 }
  0xb5   : > { %v482_v55 = vadd.f32 %v481_v52, %v237_v49  ;;  %v500_v56 = vpop.f32.mrf.mxu3  ;;  %v445_v57 = vpop.f32.mrf.mxu0 }
  0xb6   : > { %v464_v58 = vpop.f32.mrf.mxu1  ;;  %v446_v60 = vadd.f32 %v445_v57, %v242_v53 }
  0xb7   : > { %v501_v59 = vadd.f32 %v500_v56, %v482_v55 }
  0xb8   : > { %v465_v0 = vadd.f32 %v464_v58, %v446_v60 }
  0xb9   : > { %v511_v63 = vmax.f32 %v501_v59, 0.0 }
  0xba   : > { %v512_v11 = vmax.f32 %v465_v0, 0.0 }
  0xbb   : > { %v527_v10 = vmul.f32 %v519_v1, %v511_v63 }
  0xbc   : > { %v483_v2 = vpop.f32.mrf.mxu2  ;;  %v528_v19 = vmul.f32 %v520_v13, %v512_v11 }
  0xbd   : > { %v484_v4 = vadd.f32 %v483_v2, %v242_v53  ;;  %v502_v5 = vpop.f32.mrf.mxu3  ;;  %v448_v6 = vpop.f32.mrf.mxu0  ;;  %v534_v18 = vadd.f32 %v527_v10, %v526_v14 }
  0xbe   : > { %v449_v8 = vadd.f32 %v448_v6, %v247_v62  ;;  %v467_v9 = vpop.f32.mrf.mxu1 }
  0xbf   : > { %v503_v12 = vadd.f32 %v502_v5, %v484_v4  ;;  %v535_v29 = vadd.f32 %v534_v18, %v528_v19 }
  0xc0   : > { %v468_v16 = vadd.f32 %v467_v9, %v449_v8 }
  0xc1   : > { %v513_v15 = vmax.f32 %v503_v12, 0.0 }
  0xc2   : > { %v514_v23 = vmax.f32 %v468_v16, 0.0 }
  0xc3   : > { %v529_v22 = vmul.f32 %v521_v17, %v513_v15 }
  0xc4   : > { %v486_v21 = vpop.f32.mrf.mxu2  ;;  %v530_v35 = vmul.f32 %v522_v27, %v514_v23 }
  0xc5   : > { %v487_v24 = vadd.f32 %v486_v21, %v247_v62  ;;  %v505_v25 = vpop.f32.mrf.mxu3  ;;  %v450_v26 = vpop.f32.mrf.mxu0  ;;  %v536_v34 = vadd.f32 %v535_v29, %v529_v22 }
  0xc6   : > { %v451_v28 = vadd.f32 %v450_v26, %v252_v20  ;;  %v469_v31 = vpop.f32.mrf.mxu1 }
  0xc7   : > { %v506_v30 = vadd.f32 %v505_v25, %v487_v24  ;;  %v537_v41 = vadd.f32 %v536_v34, %v530_v35 }
  0xc8   : > { %v470_v33 = vadd.f32 %v469_v31, %v451_v28 }
  0xc9   : > { %v515_v36 = vmax.f32 %v506_v30, 0.0 }
  0xca   : > { %v516_v38 = vmax.f32 %v470_v33, 0.0 }
  0xcb   : > { %v531_v37 = vmul.f32 %v523_v32, %v515_v36 }
  0xcc   : > { %v488_v40 = vpop.f32.mrf.mxu2  ;;  %v532_v44 = vmul.f32 %v524_v39, %v516_v38 }
  0xcd   : > { %v489_v42 = vadd.f32 %v488_v40, %v252_v20  ;;  %v507_v43 = vpop.f32.mrf.mxu3  ;;  %v538_v46 = vadd.f32 %v537_v41, %v531_v37 }
  0xcf   : > { %v508_v45 = vadd.f32 %v507_v43, %v489_v42  ;;  %v539_v50 = vadd.f32 %v538_v46, %v532_v44 }
  0xd1   : > { %v517_v48 = vmax.f32 %v508_v45, 0.0 }
  0xd3   : > { %v533_v49 = vmul.f32 %v525_v47, %v517_v48 }
  0xd5   : > { %v540_v51 = vadd.f32 %v539_v50, %v533_v49 }
  0xd7   : > { %541 = vadd.xlane.f32.xlu2 %v540_v51 }
 0x14a   : > { %v542_v52 = vpop.xlane.xlu2 %541 }
 0x14b   : > { %v543_v53 = vrot.slane %v542_v52, 4 }
 0x14d   : > { %v544_v54 = vadd.f32 %v543_v53, %v542_v52 }
 0x14f   : > { %v545_v55 = vrot.slane %v544_v54, 2 }
 0x151   : > { %v546_v56 = vadd.f32 %v545_v55, %v544_v54 }
 0x153   : > { %v547_v57 = vrot.slane %v546_v56, 1 }
 0x155   : > { %v548_v58 = vadd.f32 %v547_v57, %v546_v56 }
 0x157   : > { %789 = vpush %v548_v58 }
 0x188   : > { %s790_s14 = spop %789 }
 0x189   : > { %v550_v59 = vstv %s790_s14 }
 0x18a   : > { %551 = vst [vmem:[%s193_s13] sm:$0x1] %v550_v59 }
 0x18b PF: > { %s14_s15 = sadd.s32 1, %s808_s15  }
 0x18c   : > { %p11_p4 = scmp.ge.s32.totalorder %s14_s15, 4  }
 0x18e   :  { %13 = sbr.rel (!%p11_p4) target bundleno = 1 (0x1), region = 66 }

</bundles_post_ra>
